<compile_context>
chip_gen: v5e
topology: v5e:2x2
jax: 0.10.0
libtpu: 0.0.40
codegen_flags: <defaults>
</compile_context>

<pallas_src>
import jax
import jax.numpy as jnp
import numpy as np
from jax.experimental import pallas as pl
from jax.experimental.pallas import tpu as pltpu

TAU = 2.0
V_TH = 1.0
THRESH = TAU * V_TH          # spike = (x / tau >= v_th)  <=>  x >= tau * v_th
ATTN_SCALE = 0.125
BN_EPS = 1e-5


def make_kernel(num_heads, head_dim, tile_n, nk_tiles):
    def kernel(xq_ref, xk_ref, w_ref, s_ref, b_ref,          # inputs
               out_ref, vout_ref,                             # outputs
               q_sc, k_sc, v_sc, acc_sc, o_sc):               # scratch
        qi = pl.program_id(1)      # query tile
        ki = pl.program_id(2)      # key tile (reduction axis, innermost)

        def conv_bn_spike(x2d, idx):
            # 1x1 Conv1d as (T, C) @ (C, C) + folded BN.  Keep the pre-activation
            # accumulation in fp32 so the LIF threshold matches the fp32 reference;
            # the resulting spikes are {0, 1} so the bf16 downcast is lossless.
            y = jnp.dot(x2d, w_ref[idx], preferred_element_type=jnp.float32)
            y = y * s_ref[idx:idx + 1, :] + b_ref[idx:idx + 1, :]
            return (y >= THRESH).astype(jnp.bfloat16)

        # --- new query tile: compute q spikes once, reset the attention accumulator ---
        @pl.when(ki == 0)
        def _():
            acc_sc[...] = jnp.zeros_like(acc_sc)
            q_sp = conv_bn_spike(xq_ref[0], 0)                       # (T, C)
            for h in range(num_heads):                               # split heads once
                q_sc[h] = q_sp[:, h * head_dim:(h + 1) * head_dim]

        # --- first query pass: compute k/v spikes for this key tile and cache them ---
        @pl.when(qi == 0)
        def _():
            xk = xk_ref[0]                                           # (T, C)
            k_sp = conv_bn_spike(xk, 1)
            v_sp = conv_bn_spike(xk, 2)
            for h in range(num_heads):
                k_sc[ki, h] = k_sp[:, h * head_dim:(h + 1) * head_dim]
                v_sc[ki, h] = v_sp[:, h * head_dim:(h + 1) * head_dim]

        # --- head-batched attention on the MXU: bf16 spike operands, fp32 accumulate ---
        qh = q_sc[...]                 # (nh, T, hd) bf16 spikes
        kh = k_sc[ki]                  # (nh, T, hd) bf16 spikes (from cache)
        vh = v_sc[ki]                  # (nh, T, hd) bf16 spikes (from cache)
        scores = jnp.einsum('hqd,hkd->hqk', qh, kh,
                            preferred_element_type=jnp.float32)      # integer counts
        attn = (scores * ATTN_SCALE).astype(jnp.bfloat16)            # counts/8: exact in bf16
        acc_sc[...] += jnp.einsum('hqk,hkd->hqd', attn, vh,
                                  preferred_element_type=jnp.float32)

        # --- last key tile: attn_lif -> proj conv/bn/lif; emit outputs for this q tile ---
        @pl.when(ki == nk_tiles - 1)
        def _():
            for h in range(num_heads):
                lo = h * head_dim
                # v spikes for this query tile's tokens (same tiling as q tiles)
                vout_ref[0, :, lo:lo + head_dim] = v_sc[qi, h]
                # merge heads back to channels-last layout in a VMEM staging buffer
                o_sc[:, lo:lo + head_dim] = acc_sc[h]
            o = (o_sc[...] >= THRESH).astype(jnp.float32)            # attn_lif (fp32 for proj)
            y = jnp.dot(o, w_ref[3], preferred_element_type=jnp.float32)
            y = y * s_ref[3:4, :] + b_ref[3:4, :]                    # proj_bn (+ conv bias folded)
            out_ref[0] = (y >= THRESH).astype(out_ref.dtype)         # proj_lif

    return kernel


def _pick_tile(n, cap=512):
    """Largest multiple of 8 <= cap that divides n (falls back to the full extent)."""
    if n % 8 != 0:
        return n
    t = min(cap, n)
    t -= t % 8
    while t >= 8:
        if n % t == 0:
            return t
        t -= 8
    return n


def spike_self_attention_forward(x, params, num_heads, tile_n=None):
    """x: (B, C, D, H, W) float32.

    Returns (x_out (B, C, D, H, W), v (B, num_heads, N, C // num_heads)).
    Both outputs are bfloat16 spike tensors in {0, 1} (exact; halves HBM writeback).
    """
    B, C, D, H, W = x.shape
    N = D * H * W
    head_dim = C // num_heads
    if tile_n is None:
        tile_n = _pick_tile(N)
    assert N % tile_n == 0
    nt = N // tile_n

    # Channels-last so C maps to TPU lanes and every 1x1 Conv1d is a (T, C) @ (C, C) matmul.
    # TODO(synk): accept channels-last activations upstream to skip this HBM transpose pass.
    x_cl = x.reshape(B, C, N).transpose(0, 2, 1)                     # (B, N, C)

    # Weights transposed so the kernel computes x @ W.T  (Conv1d k=1 semantics).
    w = jnp.stack([params["wq"].T, params["wk"].T, params["wv"].T, params["wp"].T])  # (4, C, C)
    scales = jnp.stack([params["sq"], params["sk"], params["sv"], params["sp"]])     # (4, C)
    biases = jnp.stack([params["bq"], params["bk"], params["bv"], params["bp"]])     # (4, C)

    kernel = make_kernel(num_heads, head_dim, tile_n, nt)

    # x is passed twice: once blocked by query tile, once by key tile.  The key-tile copy
    # is only read on the first query pass (k/v cache fill), so its index map parks on
    # block 0 for qi > 0 to avoid refetching x from HBM every step.
    def xq_map(b, qi, ki):
        return (b, qi, 0)

    def xk_map(b, qi, ki):
        return (b, ki * jnp.maximum(1 - qi, 0), 0)

    out_cl, v_cl = pl.pallas_call(
        kernel,
        out_shape=(jax.ShapeDtypeStruct((B, N, C), jnp.bfloat16),
                   jax.ShapeDtypeStruct((B, N, C), jnp.bfloat16)),
        grid_spec=pltpu.PrefetchScalarGridSpec(
            num_scalar_prefetch=0,
            grid=(B, nt, nt),
            in_specs=[
                pl.BlockSpec((1, tile_n, C), xq_map),
                pl.BlockSpec((1, tile_n, C), xk_map),
                pl.BlockSpec((4, C, C), lambda b, qi, ki: (0, 0, 0)),   # constant: fetched once
                pl.BlockSpec((4, C), lambda b, qi, ki: (0, 0)),
                pl.BlockSpec((4, C), lambda b, qi, ki: (0, 0)),
            ],
            out_specs=[
                pl.BlockSpec((1, tile_n, C), lambda b, qi, ki: (b, qi, 0)),
                pl.BlockSpec((1, tile_n, C), lambda b, qi, ki: (b, qi, 0)),
            ],
            scratch_shapes=[
                pltpu.VMEM((num_heads, tile_n, head_dim), jnp.bfloat16),       # q spikes
                pltpu.VMEM((nt, num_heads, tile_n, head_dim), jnp.bfloat16),   # k spike cache
                pltpu.VMEM((nt, num_heads, tile_n, head_dim), jnp.bfloat16),   # v spike cache
                pltpu.VMEM((num_heads, tile_n, head_dim), jnp.float32),        # attention acc
                pltpu.VMEM((tile_n, C), jnp.float32),                          # head-merge buf
            ],
        ),
        compiler_params=pltpu.CompilerParams(
            # batch is megacore-parallel; q/k tile axes must stay 'arbitrary' because the
            # k/v spike cache in scratch is filled on the first q pass and reused after.
            dimension_semantics=("parallel", "arbitrary", "arbitrary"),
            vmem_limit_bytes=64 * 1024 * 1024,   # <= physical on all of v5e/v6e/v7x
        ),
    )(x_cl, x_cl, w, scales, biases)

    x_out = out_cl.transpose(0, 2, 1).reshape(B, C, D, H, W)
    # v returned by PyTorch is (B, num_heads, N, C // num_heads)
    v_out = v_cl.reshape(B, N, num_heads, head_dim).transpose(0, 2, 1, 3)
    return x_out, v_out


def init_params(key, C):
    ks = jax.random.split(key, 9)

    def conv_w(k):
        return jax.random.normal(k, (C, C), jnp.float32) * (1.0 / np.sqrt(C))

    wq, wk, wv, wp = conv_w(ks[0]), conv_w(ks[1]), conv_w(ks[2]), conv_w(ks[3])
    bp_conv = jax.random.normal(ks[4], (C,), jnp.float32) * 0.1  # proj_conv bias (bias=True)

    def bn(k):
        k1, k2, k3, k4 = jax.random.split(k, 4)
        gamma = 1.0 + 0.1 * jax.random.normal(k1, (C,), jnp.float32)
        beta = 0.1 * jax.random.normal(k2, (C,), jnp.float32)
        mean = 0.1 * jax.random.normal(k3, (C,), jnp.float32)
        var = jax.random.uniform(k4, (C,), jnp.float32, minval=0.5, maxval=1.5)
        fs = gamma / jnp.sqrt(var + BN_EPS)   # fused scale
        fb = beta - fs * mean                 # fused bias
        return fs, fb

    sq, bq = bn(ks[5])
    sk, bk = bn(ks[6])
    sv, bv = bn(ks[7])
    sp, bpn = bn(ks[8])
    bp = bpn + sp * bp_conv                   # fold proj conv bias into fused BN bias
    return dict(wq=wq, wk=wk, wv=wv, wp=wp,
                sq=sq, bq=bq, sk=sk, bk=bk, sv=sv, bv=bv, sp=sp, bp=bp)


def reference(x, params, num_heads):
    """Pure-JAX mirror of the PyTorch forward (for verification)."""
    B, C, D, H, W = x.shape
    N = D * H * W
    Ch = C // num_heads
    xf = x.reshape(B, C, N)

    def cbl(w, s, b):
        y = jnp.einsum('oc,bcn->bon', w, xf)
        y = y * s[None, :, None] + b[None, :, None]
        return (y / TAU >= V_TH).astype(jnp.float32)

    q = cbl(params['wq'], params['sq'], params['bq'])
    k = cbl(params['wk'], params['sk'], params['bk'])
    v = cbl(params['wv'], params['sv'], params['bv'])
    q = q.reshape(B, num_heads, Ch, N).transpose(0, 1, 3, 2)
    k = k.reshape(B, num_heads, Ch, N)
    v = v.reshape(B, num_heads, Ch, N).transpose(0, 1, 3, 2)
    attn = jnp.matmul(q, k) * ATTN_SCALE
    o = jnp.matmul(attn, v)                       # (B, nh, N, Ch)
    o = o.transpose(0, 1, 3, 2).reshape(B, C, N)
    o = (o / TAU >= V_TH).astype(jnp.float32)
    y = jnp.einsum('oc,bcn->bon', params['wp'], o)
    y = y * params['sp'][None, :, None] + params['bp'][None, :, None]
    y = (y / TAU >= V_TH).astype(jnp.float32)
    return y.reshape(B, C, D, H, W), v


if __name__ == "__main__":
    B, C, num_heads = 2, 32, 8
    D, Hh, Ww = 2, 4, 8                     # N = 64 -> 2 query tiles x 2 key tiles (tile 32)
    key = jax.random.PRNGKey(0)
    kx, kp = jax.random.split(key)
    # scale inputs so a reasonable fraction of neurons actually spike
    x = 4.0 * jax.random.normal(kx, (B, C, D, Hh, Ww), jnp.float32)
    params = init_params(kp, C)

    x_out, v_out = spike_self_attention_forward(x, params, num_heads, tile_n=32)
    jax.block_until_ready((x_out, v_out))

    x_ref, v_ref = reference(x, params, num_heads)
    N = D * Hh * Ww
    assert x_out.shape == (B, C, D, Hh, Ww)
    assert v_out.shape == (B, num_heads, N, C // num_heads)
    assert np.allclose(np.asarray(x_out.astype(jnp.float32)), np.asarray(x_ref))
    assert np.allclose(np.asarray(v_out.astype(jnp.float32)), np.asarray(v_ref))
    print("KERNEL_OK")
</pallas_src>

<mosaic_0001>
module attributes {stable_mosaic.version = 11 : i64} {
  func.func @kernel(%arg0: i32, %arg1: i32, %arg2: i32, %arg3: memref<1x32x32xf32, #tpu.memory_space<vmem>>, %arg4: memref<1x32x32xf32, #tpu.memory_space<vmem>>, %arg5: memref<4x32x32xf32, #tpu.memory_space<vmem>>, %arg6: memref<4x32xf32, #tpu.memory_space<vmem>>, %arg7: memref<4x32xf32, #tpu.memory_space<vmem>>, %arg8: memref<1x32x32xbf16, #tpu.memory_space<vmem>>, %arg9: memref<1x32x32xbf16, #tpu.memory_space<vmem>>, %arg10: memref<8x32x4xbf16, #tpu.memory_space<vmem>>, %arg11: memref<2x8x32x4xbf16, #tpu.memory_space<vmem>>, %arg12: memref<2x8x32x4xbf16, #tpu.memory_space<vmem>>, %arg13: memref<8x32x4xf32, #tpu.memory_space<vmem>>, %arg14: memref<32x32xf32, #tpu.memory_space<vmem>>) attributes {dimension_semantics = [#tpu.dimension_semantics<parallel>, #tpu.dimension_semantics<arbitrary>, #tpu.dimension_semantics<arbitrary>], iteration_bounds = array<i64: 2, 2, 2>, scalar_prefetch = 0 : i64, scratch_operands = 5 : i64, tpu.core_type = #tpu.core_type<tc>, window_params = [{transform_indices = @transform_0, window_bounds = array<i64: 1, 32, 32>}, {transform_indices = @transform_1, window_bounds = array<i64: 1, 32, 32>}, {pipeline_mode = #tpu.pipeline_mode<synchronous>, transform_indices = @transform_2, window_bounds = array<i64: 4, 32, 32>}, {pipeline_mode = #tpu.pipeline_mode<synchronous>, transform_indices = @transform_3, window_bounds = array<i64: 4, 32>}, {pipeline_mode = #tpu.pipeline_mode<synchronous>, transform_indices = @transform_4, window_bounds = array<i64: 4, 32>}, {transform_indices = @transform_5, window_bounds = array<i64: 1, 32, 32>}, {transform_indices = @transform_6, window_bounds = array<i64: 1, 32, 32>}]} {
    %c0_i32 = arith.constant 0 : i32
    %0 = arith.cmpi eq, %arg2, %c0_i32 : i32
    %1 = arith.extui %0 : i1 to i32
    %c0_i32_0 = arith.constant 0 : i32
    %2 = arith.cmpi ne, %1, %c0_i32_0 : i32
    scf.if %2 {
      %cst_20 = arith.constant 0.000000e+00 : f32
      %24 = vector.broadcast %cst_20 : f32 to vector<8x32x4xf32>
      %c0_21 = arith.constant 0 : index
      %c0_22 = arith.constant 0 : index
      %c0_23 = arith.constant 0 : index
      %25 = vector.load %arg13[%c0_21, %c0_22, %c0_23] : memref<8x32x4xf32, #tpu.memory_space<vmem>>, vector<8x32x4xf32>
      tpu.vector_store %arg13[%c0_21, %c0_22, %c0_23], %24 {strides = array<i32>} : memref<8x32x4xf32, #tpu.memory_space<vmem>>, vector<8x32x4xf32>,
      %c0_24 = arith.constant 0 : index
      %c0_25 = arith.constant 0 : index
      %c0_26 = arith.constant 0 : index
      %26 = vector.load %arg3[%c0_24, %c0_25, %c0_26] : memref<1x32x32xf32, #tpu.memory_space<vmem>>, vector<1x32x32xf32>
      %27 = vector.shape_cast %26 : vector<1x32x32xf32> to vector<32x32xf32>
      %c0_27 = arith.constant 0 : index
      %c0_28 = arith.constant 0 : index
      %c0_29 = arith.constant 0 : index
      %28 = vector.load %arg5[%c0_27, %c0_28, %c0_29] : memref<4x32x32xf32, #tpu.memory_space<vmem>>, vector<1x32x32xf32>
      %29 = vector.shape_cast %28 : vector<1x32x32xf32> to vector<32x32xf32>
      %cst_30 = arith.constant dense<0.000000e+00> : vector<32x32xf32>
      %30 = tpu.matmul %27, %29, %cst_30 {dimension_numbers = #tpu.dot_dimension_numbers<[1], [0], [0], [1], [0, 0, 1, 1], [], []>} : vector<32x32xf32>, vector<32x32xf32>, vector<32x32xf32> -> vector<32x32xf32>
      %c0_31 = arith.constant 0 : index
      %c0_32 = arith.constant 0 : index
      %31 = vector.load %arg6[%c0_31, %c0_32] : memref<4x32xf32, #tpu.memory_space<vmem>>, vector<1x32xf32>
      %32 = vector.broadcast %31 : vector<1x32xf32> to vector<32x32xf32>
      %33 = arith.mulf %30, %32 : vector<32x32xf32>
      %c0_33 = arith.constant 0 : index
      %c0_34 = arith.constant 0 : index
      %34 = vector.load %arg7[%c0_33, %c0_34] : memref<4x32xf32, #tpu.memory_space<vmem>>, vector<1x32xf32>
      %35 = vector.broadcast %34 : vector<1x32xf32> to vector<32x32xf32>
      %36 = arith.addf %33, %35 : vector<32x32xf32>
      %cst_35 = arith.constant 2.000000e+00 : f32
      %37 = vector.broadcast %cst_35 : f32 to vector<32x32xf32>
      %38 = arith.cmpf oge, %36, %37 : vector<32x32xf32>
      %39 = arith.extui %38 : vector<32x32xi1> to vector<32x32xi32>
      %40 = arith.sitofp %39 : vector<32x32xi32> to vector<32x32xf32>
      %41 = arith.truncf %40 : vector<32x32xf32> to vector<32x32xbf16>
      %42 = vector.extract_strided_slice %41 {offsets = [0, 0], sizes = [32, 4], strides = [1, 1]} : vector<32x32xbf16> to vector<32x4xbf16>
      %c0_36 = arith.constant 0 : index
      %c0_37 = arith.constant 0 : index
      %c0_38 = arith.constant 0 : index
      %43 = vector.load %arg10[%c0_36, %c0_37, %c0_38] : memref<8x32x4xbf16, #tpu.memory_space<vmem>>, vector<1x32x4xbf16>
      %44 = vector.shape_cast %43 : vector<1x32x4xbf16> to vector<32x4xbf16>
      %45 = vector.shape_cast %42 : vector<32x4xbf16> to vector<1x32x4xbf16>
      tpu.vector_store %arg10[%c0_36, %c0_37, %c0_38], %45 {strides = array<i32>} : memref<8x32x4xbf16, #tpu.memory_space<vmem>>, vector<1x32x4xbf16>,
      %46 = vector.extract_strided_slice %41 {offsets = [0, 4], sizes = [32, 4], strides = [1, 1]} : vector<32x32xbf16> to vector<32x4xbf16>
      %c1 = arith.constant 1 : index
      %c0_39 = arith.constant 0 : index
      %c0_40 = arith.constant 0 : index
      %47 = vector.load %arg10[%c1, %c0_39, %c0_40] : memref<8x32x4xbf16, #tpu.memory_space<vmem>>, vector<1x32x4xbf16>
      %48 = vector.shape_cast %47 : vector<1x32x4xbf16> to vector<32x4xbf16>
      %49 = vector.shape_cast %46 : vector<32x4xbf16> to vector<1x32x4xbf16>
      tpu.vector_store %arg10[%c1, %c0_39, %c0_40], %49 {strides = array<i32>} : memref<8x32x4xbf16, #tpu.memory_space<vmem>>, vector<1x32x4xbf16>,
      %50 = vector.extract_strided_slice %41 {offsets = [0, 8], sizes = [32, 4], strides = [1, 1]} : vector<32x32xbf16> to vector<32x4xbf16>
      %c2 = arith.constant 2 : index
      %c0_41 = arith.constant 0 : index
      %c0_42 = arith.constant 0 : index
      %51 = vector.load %arg10[%c2, %c0_41, %c0_42] : memref<8x32x4xbf16, #tpu.memory_space<vmem>>, vector<1x32x4xbf16>
      %52 = vector.shape_cast %51 : vector<1x32x4xbf16> to vector<32x4xbf16>
      %53 = vector.shape_cast %50 : vector<32x4xbf16> to vector<1x32x4xbf16>
      tpu.vector_store %arg10[%c2, %c0_41, %c0_42], %53 {strides = array<i32>} : memref<8x32x4xbf16, #tpu.memory_space<vmem>>, vector<1x32x4xbf16>,
      %54 = vector.extract_strided_slice %41 {offsets = [0, 12], sizes = [32, 4], strides = [1, 1]} : vector<32x32xbf16> to vector<32x4xbf16>
      %c3 = arith.constant 3 : index
      %c0_43 = arith.constant 0 : index
      %c0_44 = arith.constant 0 : index
      %55 = vector.load %arg10[%c3, %c0_43, %c0_44] : memref<8x32x4xbf16, #tpu.memory_space<vmem>>, vector<1x32x4xbf16>
      %56 = vector.shape_cast %55 : vector<1x32x4xbf16> to vector<32x4xbf16>
      %57 = vector.shape_cast %54 : vector<32x4xbf16> to vector<1x32x4xbf16>
      tpu.vector_store %arg10[%c3, %c0_43, %c0_44], %57 {strides = array<i32>} : memref<8x32x4xbf16, #tpu.memory_space<vmem>>, vector<1x32x4xbf16>,
      %58 = vector.extract_strided_slice %41 {offsets = [0, 16], sizes = [32, 4], strides = [1, 1]} : vector<32x32xbf16> to vector<32x4xbf16>
      %c4 = arith.constant 4 : index
      %c0_45 = arith.constant 0 : index
      %c0_46 = arith.constant 0 : index
      %59 = vector.load %arg10[%c4, %c0_45, %c0_46] : memref<8x32x4xbf16, #tpu.memory_space<vmem>>, vector<1x32x4xbf16>
      %60 = vector.shape_cast %59 : vector<1x32x4xbf16> to vector<32x4xbf16>
      %61 = vector.shape_cast %58 : vector<32x4xbf16> to vector<1x32x4xbf16>
      tpu.vector_store %arg10[%c4, %c0_45, %c0_46], %61 {strides = array<i32>} : memref<8x32x4xbf16, #tpu.memory_space<vmem>>, vector<1x32x4xbf16>,
      %62 = vector.extract_strided_slice %41 {offsets = [0, 20], sizes = [32, 4], strides = [1, 1]} : vector<32x32xbf16> to vector<32x4xbf16>
      %c5 = arith.constant 5 : index
      %c0_47 = arith.constant 0 : index
      %c0_48 = arith.constant 0 : index
      %63 = vector.load %arg10[%c5, %c0_47, %c0_48] : memref<8x32x4xbf16, #tpu.memory_space<vmem>>, vector<1x32x4xbf16>
      %64 = vector.shape_cast %63 : vector<1x32x4xbf16> to vector<32x4xbf16>
      %65 = vector.shape_cast %62 : vector<32x4xbf16> to vector<1x32x4xbf16>
      tpu.vector_store %arg10[%c5, %c0_47, %c0_48], %65 {strides = array<i32>} : memref<8x32x4xbf16, #tpu.memory_space<vmem>>, vector<1x32x4xbf16>,
      %66 = vector.extract_strided_slice %41 {offsets = [0, 24], sizes = [32, 4], strides = [1, 1]} : vector<32x32xbf16> to vector<32x4xbf16>
      %c6 = arith.constant 6 : index
      %c0_49 = arith.constant 0 : index
      %c0_50 = arith.constant 0 : index
      %67 = vector.load %arg10[%c6, %c0_49, %c0_50] : memref<8x32x4xbf16, #tpu.memory_space<vmem>>, vector<1x32x4xbf16>
      %68 = vector.shape_cast %67 : vector<1x32x4xbf16> to vector<32x4xbf16>
      %69 = vector.shape_cast %66 : vector<32x4xbf16> to vector<1x32x4xbf16>
      tpu.vector_store %arg10[%c6, %c0_49, %c0_50], %69 {strides = array<i32>} : memref<8x32x4xbf16, #tpu.memory_space<vmem>>, vector<1x32x4xbf16>,
      %70 = vector.extract_strided_slice %41 {offsets = [0, 28], sizes = [32, 4], strides = [1, 1]} : vector<32x32xbf16> to vector<32x4xbf16>
      %c7 = arith.constant 7 : index
      %c0_51 = arith.constant 0 : index
      %c0_52 = arith.constant 0 : index
      %71 = vector.load %arg10[%c7, %c0_51, %c0_52] : memref<8x32x4xbf16, #tpu.memory_space<vmem>>, vector<1x32x4xbf16>
      %72 = vector.shape_cast %71 : vector<1x32x4xbf16> to vector<32x4xbf16>
      %73 = vector.shape_cast %70 : vector<32x4xbf16> to vector<1x32x4xbf16>
      tpu.vector_store %arg10[%c7, %c0_51, %c0_52], %73 {strides = array<i32>} : memref<8x32x4xbf16, #tpu.memory_space<vmem>>, vector<1x32x4xbf16>,
    } else {
    }
    %c0_i32_1 = arith.constant 0 : i32
    %3 = arith.cmpi eq, %arg1, %c0_i32_1 : i32
    %4 = arith.extui %3 : i1 to i32
    %c0_i32_2 = arith.constant 0 : i32
    %5 = arith.cmpi ne, %4, %c0_i32_2 : i32
    scf.if %5 {
      %c0_20 = arith.constant 0 : index
      %c0_21 = arith.constant 0 : index
      %c0_22 = arith.constant 0 : index
      %24 = vector.load %arg4[%c0_20, %c0_21, %c0_22] : memref<1x32x32xf32, #tpu.memory_space<vmem>>, vector<1x32x32xf32>
      %25 = vector.shape_cast %24 : vector<1x32x32xf32> to vector<32x32xf32>
      %c1 = arith.constant 1 : index
      %c0_23 = arith.constant 0 : index
      %c0_24 = arith.constant 0 : index
      %26 = vector.load %arg5[%c1, %c0_23, %c0_24] : memref<4x32x32xf32, #tpu.memory_space<vmem>>, vector<1x32x32xf32>
      %27 = vector.shape_cast %26 : vector<1x32x32xf32> to vector<32x32xf32>
      %cst_25 = arith.constant dense<0.000000e+00> : vector<32x32xf32>
      %28 = tpu.matmul %25, %27, %cst_25 {dimension_numbers = #tpu.dot_dimension_numbers<[1], [0], [0], [1], [0, 0, 1, 1], [], []>} : vector<32x32xf32>, vector<32x32xf32>, vector<32x32xf32> -> vector<32x32xf32>
      %c1_26 = arith.constant 1 : index
      %c0_27 = arith.constant 0 : index
      %29 = vector.load %arg6[%c1_26, %c0_27] : memref<4x32xf32, #tpu.memory_space<vmem>>, vector<1x32xf32>
      %30 = vector.broadcast %29 : vector<1x32xf32> to vector<32x32xf32>
      %31 = arith.mulf %28, %30 : vector<32x32xf32>
      %c1_28 = arith.constant 1 : index
      %c0_29 = arith.constant 0 : index
      %32 = vector.load %arg7[%c1_28, %c0_29] : memref<4x32xf32, #tpu.memory_space<vmem>>, vector<1x32xf32>
      %33 = vector.broadcast %32 : vector<1x32xf32> to vector<32x32xf32>
      %34 = arith.addf %31, %33 : vector<32x32xf32>
      %cst_30 = arith.constant 2.000000e+00 : f32
      %35 = vector.broadcast %cst_30 : f32 to vector<32x32xf32>
      %36 = arith.cmpf oge, %34, %35 : vector<32x32xf32>
      %37 = arith.extui %36 : vector<32x32xi1> to vector<32x32xi32>
      %38 = arith.sitofp %37 : vector<32x32xi32> to vector<32x32xf32>
      %39 = arith.truncf %38 : vector<32x32xf32> to vector<32x32xbf16>
      %c2 = arith.constant 2 : index
      %c0_31 = arith.constant 0 : index
      %c0_32 = arith.constant 0 : index
      %40 = vector.load %arg5[%c2, %c0_31, %c0_32] : memref<4x32x32xf32, #tpu.memory_space<vmem>>, vector<1x32x32xf32>
      %41 = vector.shape_cast %40 : vector<1x32x32xf32> to vector<32x32xf32>
      %cst_33 = arith.constant dense<0.000000e+00> : vector<32x32xf32>
      %42 = tpu.matmul %25, %41, %cst_33 {dimension_numbers = #tpu.dot_dimension_numbers<[1], [0], [0], [1], [0, 0, 1, 1], [], []>} : vector<32x32xf32>, vector<32x32xf32>, vector<32x32xf32> -> vector<32x32xf32>
      %c2_34 = arith.constant 2 : index
      %c0_35 = arith.constant 0 : index
      %43 = vector.load %arg6[%c2_34, %c0_35] : memref<4x32xf32, #tpu.memory_space<vmem>>, vector<1x32xf32>
      %44 = vector.broadcast %43 : vector<1x32xf32> to vector<32x32xf32>
      %45 = arith.mulf %42, %44 : vector<32x32xf32>
      %c2_36 = arith.constant 2 : index
      %c0_37 = arith.constant 0 : index
      %46 = vector.load %arg7[%c2_36, %c0_37] : memref<4x32xf32, #tpu.memory_space<vmem>>, vector<1x32xf32>
      %47 = vector.broadcast %46 : vector<1x32xf32> to vector<32x32xf32>
      %48 = arith.addf %45, %47 : vector<32x32xf32>
      %cst_38 = arith.constant 2.000000e+00 : f32
      %49 = vector.broadcast %cst_38 : f32 to vector<32x32xf32>
      %50 = arith.cmpf oge, %48, %49 : vector<32x32xf32>
      %51 = arith.extui %50 : vector<32x32xi1> to vector<32x32xi32>
      %52 = arith.sitofp %51 : vector<32x32xi32> to vector<32x32xf32>
      %53 = arith.truncf %52 : vector<32x32xf32> to vector<32x32xbf16>
      %54 = vector.extract_strided_slice %39 {offsets = [0, 0], sizes = [32, 4], strides = [1, 1]} : vector<32x32xbf16> to vector<32x4xbf16>
      %55 = arith.index_cast %arg2 : i32 to index
      %c0_39 = arith.constant 0 : index
      %c0_40 = arith.constant 0 : index
      %c0_41 = arith.constant 0 : index
      %56 = vector.load %arg11[%55, %c0_39, %c0_40, %c0_41] : memref<2x8x32x4xbf16, #tpu.memory_space<vmem>>, vector<1x1x32x4xbf16>
      %57 = vector.shape_cast %56 : vector<1x1x32x4xbf16> to vector<32x4xbf16>
      %58 = vector.shape_cast %54 : vector<32x4xbf16> to vector<1x1x32x4xbf16>
      tpu.vector_store %arg11[%55, %c0_39, %c0_40, %c0_41], %58 {strides = array<i32>} : memref<2x8x32x4xbf16, #tpu.memory_space<vmem>>, vector<1x1x32x4xbf16>,
      %59 = vector.extract_strided_slice %53 {offsets = [0, 0], sizes = [32, 4], strides = [1, 1]} : vector<32x32xbf16> to vector<32x4xbf16>
      %60 = arith.index_cast %arg2 : i32 to index
      %c0_42 = arith.constant 0 : index
      %c0_43 = arith.constant 0 : index
      %c0_44 = arith.constant 0 : index
      %61 = vector.load %arg12[%60, %c0_42, %c0_43, %c0_44] : memref<2x8x32x4xbf16, #tpu.memory_space<vmem>>, vector<1x1x32x4xbf16>
      %62 = vector.shape_cast %61 : vector<1x1x32x4xbf16> to vector<32x4xbf16>
      %63 = vector.shape_cast %59 : vector<32x4xbf16> to vector<1x1x32x4xbf16>
      tpu.vector_store %arg12[%60, %c0_42, %c0_43, %c0_44], %63 {strides = array<i32>} : memref<2x8x32x4xbf16, #tpu.memory_space<vmem>>, vector<1x1x32x4xbf16>,
      %64 = vector.extract_strided_slice %39 {offsets = [0, 4], sizes = [32, 4], strides = [1, 1]} : vector<32x32xbf16> to vector<32x4xbf16>
      %65 = arith.index_cast %arg2 : i32 to index
      %c1_45 = arith.constant 1 : index
      %c0_46 = arith.constant 0 : index
      %c0_47 = arith.constant 0 : index
      %66 = vector.load %arg11[%65, %c1_45, %c0_46, %c0_47] : memref<2x8x32x4xbf16, #tpu.memory_space<vmem>>, vector<1x1x32x4xbf16>
      %67 = vector.shape_cast %66 : vector<1x1x32x4xbf16> to vector<32x4xbf16>
      %68 = vector.shape_cast %64 : vector<32x4xbf16> to vector<1x1x32x4xbf16>
      tpu.vector_store %arg11[%65, %c1_45, %c0_46, %c0_47], %68 {strides = array<i32>} : memref<2x8x32x4xbf16, #tpu.memory_space<vmem>>, vector<1x1x32x4xbf16>,
      %69 = vector.extract_strided_slice %53 {offsets = [0, 4], sizes = [32, 4], strides = [1, 1]} : vector<32x32xbf16> to vector<32x4xbf16>
      %70 = arith.index_cast %arg2 : i32 to index
      %c1_48 = arith.constant 1 : index
      %c0_49 = arith.constant 0 : index
      %c0_50 = arith.constant 0 : index
      %71 = vector.load %arg12[%70, %c1_48, %c0_49, %c0_50] : memref<2x8x32x4xbf16, #tpu.memory_space<vmem>>, vector<1x1x32x4xbf16>
      %72 = vector.shape_cast %71 : vector<1x1x32x4xbf16> to vector<32x4xbf16>
      %73 = vector.shape_cast %69 : vector<32x4xbf16> to vector<1x1x32x4xbf16>
      tpu.vector_store %arg12[%70, %c1_48, %c0_49, %c0_50], %73 {strides = array<i32>} : memref<2x8x32x4xbf16, #tpu.memory_space<vmem>>, vector<1x1x32x4xbf16>,
      %74 = vector.extract_strided_slice %39 {offsets = [0, 8], sizes = [32, 4], strides = [1, 1]} : vector<32x32xbf16> to vector<32x4xbf16>
      %75 = arith.index_cast %arg2 : i32 to index
      %c2_51 = arith.constant 2 : index
      %c0_52 = arith.constant 0 : index
      %c0_53 = arith.constant 0 : index
      %76 = vector.load %arg11[%75, %c2_51, %c0_52, %c0_53] : memref<2x8x32x4xbf16, #tpu.memory_space<vmem>>, vector<1x1x32x4xbf16>
      %77 = vector.shape_cast %76 : vector<1x1x32x4xbf16> to vector<32x4xbf16>
      %78 = vector.shape_cast %74 : vector<32x4xbf16> to vector<1x1x32x4xbf16>
      tpu.vector_store %arg11[%75, %c2_51, %c0_52, %c0_53], %78 {strides = array<i32>} : memref<2x8x32x4xbf16, #tpu.memory_space<vmem>>, vector<1x1x32x4xbf16>,
      %79 = vector.extract_strided_slice %53 {offsets = [0, 8], sizes = [32, 4], strides = [1, 1]} : vector<32x32xbf16> to vector<32x4xbf16>
      %80 = arith.index_cast %arg2 : i32 to index
      %c2_54 = arith.constant 2 : index
      %c0_55 = arith.constant 0 : index
      %c0_56 = arith.constant 0 : index
      %81 = vector.load %arg12[%80, %c2_54, %c0_55, %c0_56] : memref<2x8x32x4xbf16, #tpu.memory_space<vmem>>, vector<1x1x32x4xbf16>
      %82 = vector.shape_cast %81 : vector<1x1x32x4xbf16> to vector<32x4xbf16>
      %83 = vector.shape_cast %79 : vector<32x4xbf16> to vector<1x1x32x4xbf16>
      tpu.vector_store %arg12[%80, %c2_54, %c0_55, %c0_56], %83 {strides = array<i32>} : memref<2x8x32x4xbf16, #tpu.memory_space<vmem>>, vector<1x1x32x4xbf16>,
      %84 = vector.extract_strided_slice %39 {offsets = [0, 12], sizes = [32, 4], strides = [1, 1]} : vector<32x32xbf16> to vector<32x4xbf16>
      %85 = arith.index_cast %arg2 : i32 to index
      %c3 = arith.constant 3 : index
      %c0_57 = arith.constant 0 : index
      %c0_58 = arith.constant 0 : index
      %86 = vector.load %arg11[%85, %c3, %c0_57, %c0_58] : memref<2x8x32x4xbf16, #tpu.memory_space<vmem>>, vector<1x1x32x4xbf16>
      %87 = vector.shape_cast %86 : vector<1x1x32x4xbf16> to vector<32x4xbf16>
      %88 = vector.shape_cast %84 : vector<32x4xbf16> to vector<1x1x32x4xbf16>
      tpu.vector_store %arg11[%85, %c3, %c0_57, %c0_58], %88 {strides = array<i32>} : memref<2x8x32x4xbf16, #tpu.memory_space<vmem>>, vector<1x1x32x4xbf16>,
      %89 = vector.extract_strided_slice %53 {offsets = [0, 12], sizes = [32, 4], strides = [1, 1]} : vector<32x32xbf16> to vector<32x4xbf16>
      %90 = arith.index_cast %arg2 : i32 to index
      %c3_59 = arith.constant 3 : index
      %c0_60 = arith.constant 0 : index
      %c0_61 = arith.constant 0 : index
      %91 = vector.load %arg12[%90, %c3_59, %c0_60, %c0_61] : memref<2x8x32x4xbf16, #tpu.memory_space<vmem>>, vector<1x1x32x4xbf16>
      %92 = vector.shape_cast %91 : vector<1x1x32x4xbf16> to vector<32x4xbf16>
      %93 = vector.shape_cast %89 : vector<32x4xbf16> to vector<1x1x32x4xbf16>
      tpu.vector_store %arg12[%90, %c3_59, %c0_60, %c0_61], %93 {strides = array<i32>} : memref<2x8x32x4xbf16, #tpu.memory_space<vmem>>, vector<1x1x32x4xbf16>,
      %94 = vector.extract_strided_slice %39 {offsets = [0, 16], sizes = [32, 4], strides = [1, 1]} : vector<32x32xbf16> to vector<32x4xbf16>
      %95 = arith.index_cast %arg2 : i32 to index
      %c4 = arith.constant 4 : index
      %c0_62 = arith.constant 0 : index
      %c0_63 = arith.constant 0 : index
      %96 = vector.load %arg11[%95, %c4, %c0_62, %c0_63] : memref<2x8x32x4xbf16, #tpu.memory_space<vmem>>, vector<1x1x32x4xbf16>
      %97 = vector.shape_cast %96 : vector<1x1x32x4xbf16> to vector<32x4xbf16>
      %98 = vector.shape_cast %94 : vector<32x4xbf16> to vector<1x1x32x4xbf16>
      tpu.vector_store %arg11[%95, %c4, %c0_62, %c0_63], %98 {strides = array<i32>} : memref<2x8x32x4xbf16, #tpu.memory_space<vmem>>, vector<1x1x32x4xbf16>,
      %99 = vector.extract_strided_slice %53 {offsets = [0, 16], sizes = [32, 4], strides = [1, 1]} : vector<32x32xbf16> to vector<32x4xbf16>
      %100 = arith.index_cast %arg2 : i32 to index
      %c4_64 = arith.constant 4 : index
      %c0_65 = arith.constant 0 : index
      %c0_66 = arith.constant 0 : index
      %101 = vector.load %arg12[%100, %c4_64, %c0_65, %c0_66] : memref<2x8x32x4xbf16, #tpu.memory_space<vmem>>, vector<1x1x32x4xbf16>
      %102 = vector.shape_cast %101 : vector<1x1x32x4xbf16> to vector<32x4xbf16>
      %103 = vector.shape_cast %99 : vector<32x4xbf16> to vector<1x1x32x4xbf16>
      tpu.vector_store %arg12[%100, %c4_64, %c0_65, %c0_66], %103 {strides = array<i32>} : memref<2x8x32x4xbf16, #tpu.memory_space<vmem>>, vector<1x1x32x4xbf16>,
      %104 = vector.extract_strided_slice %39 {offsets = [0, 20], sizes = [32, 4], strides = [1, 1]} : vector<32x32xbf16> to vector<32x4xbf16>
      %105 = arith.index_cast %arg2 : i32 to index
      %c5 = arith.constant 5 : index
      %c0_67 = arith.constant 0 : index
      %c0_68 = arith.constant 0 : index
      %106 = vector.load %arg11[%105, %c5, %c0_67, %c0_68] : memref<2x8x32x4xbf16, #tpu.memory_space<vmem>>, vector<1x1x32x4xbf16>
      %107 = vector.shape_cast %106 : vector<1x1x32x4xbf16> to vector<32x4xbf16>
      %108 = vector.shape_cast %104 : vector<32x4xbf16> to vector<1x1x32x4xbf16>
      tpu.vector_store %arg11[%105, %c5, %c0_67, %c0_68], %108 {strides = array<i32>} : memref<2x8x32x4xbf16, #tpu.memory_space<vmem>>, vector<1x1x32x4xbf16>,
      %109 = vector.extract_strided_slice %53 {offsets = [0, 20], sizes = [32, 4], strides = [1, 1]} : vector<32x32xbf16> to vector<32x4xbf16>
      %110 = arith.index_cast %arg2 : i32 to index
      %c5_69 = arith.constant 5 : index
      %c0_70 = arith.constant 0 : index
      %c0_71 = arith.constant 0 : index
      %111 = vector.load %arg12[%110, %c5_69, %c0_70, %c0_71] : memref<2x8x32x4xbf16, #tpu.memory_space<vmem>>, vector<1x1x32x4xbf16>
      %112 = vector.shape_cast %111 : vector<1x1x32x4xbf16> to vector<32x4xbf16>
      %113 = vector.shape_cast %109 : vector<32x4xbf16> to vector<1x1x32x4xbf16>
      tpu.vector_store %arg12[%110, %c5_69, %c0_70, %c0_71], %113 {strides = array<i32>} : memref<2x8x32x4xbf16, #tpu.memory_space<vmem>>, vector<1x1x32x4xbf16>,
      %114 = vector.extract_strided_slice %39 {offsets = [0, 24], sizes = [32, 4], strides = [1, 1]} : vector<32x32xbf16> to vector<32x4xbf16>
      %115 = arith.index_cast %arg2 : i32 to index
      %c6 = arith.constant 6 : index
      %c0_72 = arith.constant 0 : index
      %c0_73 = arith.constant 0 : index
      %116 = vector.load %arg11[%115, %c6, %c0_72, %c0_73] : memref<2x8x32x4xbf16, #tpu.memory_space<vmem>>, vector<1x1x32x4xbf16>
      %117 = vector.shape_cast %116 : vector<1x1x32x4xbf16> to vector<32x4xbf16>
      %118 = vector.shape_cast %114 : vector<32x4xbf16> to vector<1x1x32x4xbf16>
      tpu.vector_store %arg11[%115, %c6, %c0_72, %c0_73], %118 {strides = array<i32>} : memref<2x8x32x4xbf16, #tpu.memory_space<vmem>>, vector<1x1x32x4xbf16>,
      %119 = vector.extract_strided_slice %53 {offsets = [0, 24], sizes = [32, 4], strides = [1, 1]} : vector<32x32xbf16> to vector<32x4xbf16>
      %120 = arith.index_cast %arg2 : i32 to index
      %c6_74 = arith.constant 6 : index
      %c0_75 = arith.constant 0 : index
      %c0_76 = arith.constant 0 : index
      %121 = vector.load %arg12[%120, %c6_74, %c0_75, %c0_76] : memref<2x8x32x4xbf16, #tpu.memory_space<vmem>>, vector<1x1x32x4xbf16>
      %122 = vector.shape_cast %121 : vector<1x1x32x4xbf16> to vector<32x4xbf16>
      %123 = vector.shape_cast %119 : vector<32x4xbf16> to vector<1x1x32x4xbf16>
      tpu.vector_store %arg12[%120, %c6_74, %c0_75, %c0_76], %123 {strides = array<i32>} : memref<2x8x32x4xbf16, #tpu.memory_space<vmem>>, vector<1x1x32x4xbf16>,
      %124 = vector.extract_strided_slice %39 {offsets = [0, 28], sizes = [32, 4], strides = [1, 1]} : vector<32x32xbf16> to vector<32x4xbf16>
      %125 = arith.index_cast %arg2 : i32 to index
      %c7 = arith.constant 7 : index
      %c0_77 = arith.constant 0 : index
      %c0_78 = arith.constant 0 : index
      %126 = vector.load %arg11[%125, %c7, %c0_77, %c0_78] : memref<2x8x32x4xbf16, #tpu.memory_space<vmem>>, vector<1x1x32x4xbf16>
      %127 = vector.shape_cast %126 : vector<1x1x32x4xbf16> to vector<32x4xbf16>
      %128 = vector.shape_cast %124 : vector<32x4xbf16> to vector<1x1x32x4xbf16>
      tpu.vector_store %arg11[%125, %c7, %c0_77, %c0_78], %128 {strides = array<i32>} : memref<2x8x32x4xbf16, #tpu.memory_space<vmem>>, vector<1x1x32x4xbf16>,
      %129 = vector.extract_strided_slice %53 {offsets = [0, 28], sizes = [32, 4], strides = [1, 1]} : vector<32x32xbf16> to vector<32x4xbf16>
      %130 = arith.index_cast %arg2 : i32 to index
      %c7_79 = arith.constant 7 : index
      %c0_80 = arith.constant 0 : index
      %c0_81 = arith.constant 0 : index
      %131 = vector.load %arg12[%130, %c7_79, %c0_80, %c0_81] : memref<2x8x32x4xbf16, #tpu.memory_space<vmem>>, vector<1x1x32x4xbf16>
      %132 = vector.shape_cast %131 : vector<1x1x32x4xbf16> to vector<32x4xbf16>
      %133 = vector.shape_cast %129 : vector<32x4xbf16> to vector<1x1x32x4xbf16>
      tpu.vector_store %arg12[%130, %c7_79, %c0_80, %c0_81], %133 {strides = array<i32>} : memref<2x8x32x4xbf16, #tpu.memory_space<vmem>>, vector<1x1x32x4xbf16>,
    } else {
    }
    %c0 = arith.constant 0 : index
    %c0_3 = arith.constant 0 : index
    %c0_4 = arith.constant 0 : index
    %6 = vector.load %arg10[%c0, %c0_3, %c0_4] : memref<8x32x4xbf16, #tpu.memory_space<vmem>>, vector<8x32x4xbf16>
    %7 = arith.index_cast %arg2 : i32 to index
    %c0_5 = arith.constant 0 : index
    %c0_6 = arith.constant 0 : index
    %c0_7 = arith.constant 0 : index
    %8 = vector.load %arg11[%7, %c0_5, %c0_6, %c0_7] : memref<2x8x32x4xbf16, #tpu.memory_space<vmem>>, vector<1x8x32x4xbf16>
    %9 = vector.shape_cast %8 : vector<1x8x32x4xbf16> to vector<8x32x4xbf16>
    %10 = arith.index_cast %arg2 : i32 to index
    %c0_8 = arith.constant 0 : index
    %c0_9 = arith.constant 0 : index
    %c0_10 = arith.constant 0 : index
    %11 = vector.load %arg12[%10, %c0_8, %c0_9, %c0_10] : memref<2x8x32x4xbf16, #tpu.memory_space<vmem>>, vector<1x8x32x4xbf16>
    %12 = vector.shape_cast %11 : vector<1x8x32x4xbf16> to vector<8x32x4xbf16>
    "tpu.trace_start"() <{level = 10 : i32, message = "hqd,hkd->hqk"}> : () -> ()
    %cst = arith.constant dense<0.000000e+00> : vector<8x32x32xf32>
    %13 = tpu.matmul %6, %9, %cst {dimension_numbers = #tpu.dot_dimension_numbers<[2], [2], [1], [1], [0, 0, 0, 1, 1, 1], [0], [0]>} : vector<8x32x4xbf16>, vector<8x32x4xbf16>, vector<8x32x32xf32> -> vector<8x32x32xf32>
    "tpu.trace_stop"() : () -> ()
    %cst_11 = arith.constant 1.250000e-01 : f32
    %14 = vector.broadcast %cst_11 : f32 to vector<8x32x32xf32>
    %15 = arith.mulf %13, %14 : vector<8x32x32xf32>
    %16 = arith.truncf %15 : vector<8x32x32xf32> to vector<8x32x32xbf16>
    %c0_12 = arith.constant 0 : index
    %c0_13 = arith.constant 0 : index
    %c0_14 = arith.constant 0 : index
    %17 = vector.load %arg13[%c0_12, %c0_13, %c0_14] : memref<8x32x4xf32, #tpu.memory_space<vmem>>, vector<8x32x4xf32>
    "tpu.trace_start"() <{level = 10 : i32, message = "hqk,hkd->hqd"}> : () -> ()
    %cst_15 = arith.constant dense<0.000000e+00> : vector<8x32x4xf32>
    %18 = tpu.matmul %16, %12, %cst_15 {dimension_numbers = #tpu.dot_dimension_numbers<[2], [1], [1], [2], [0, 0, 0, 1, 1, 2], [0], [0]>} : vector<8x32x32xbf16>, vector<8x32x4xbf16>, vector<8x32x4xf32> -> vector<8x32x4xf32>
    "tpu.trace_stop"() : () -> ()
    %19 = arith.addf %17, %18 : vector<8x32x4xf32>
    %c0_16 = arith.constant 0 : index
    %c0_17 = arith.constant 0 : index
    %c0_18 = arith.constant 0 : index
    %20 = vector.load %arg13[%c0_16, %c0_17, %c0_18] : memref<8x32x4xf32, #tpu.memory_space<vmem>>, vector<8x32x4xf32>
    tpu.vector_store %arg13[%c0_16, %c0_17, %c0_18], %19 {strides = array<i32>} : memref<8x32x4xf32, #tpu.memory_space<vmem>>, vector<8x32x4xf32>,
    %c1_i32 = arith.constant 1 : i32
    %21 = arith.cmpi eq, %arg2, %c1_i32 : i32
    %22 = arith.extui %21 : i1 to i32
    %c0_i32_19 = arith.constant 0 : i32
    %23 = arith.cmpi ne, %22, %c0_i32_19 : i32
    scf.if %23 {
      %24 = arith.index_cast %arg1 : i32 to index
      %c0_20 = arith.constant 0 : index
      %c0_21 = arith.constant 0 : index
      %c0_22 = arith.constant 0 : index
      %25 = vector.load %arg12[%24, %c0_20, %c0_21, %c0_22] : memref<2x8x32x4xbf16, #tpu.memory_space<vmem>>, vector<1x1x32x4xbf16>
      %26 = vector.shape_cast %25 : vector<1x1x32x4xbf16> to vector<32x4xbf16>
      %c0_23 = arith.constant 0 : index
      %c0_24 = arith.constant 0 : index
      %c0_25 = arith.constant 0 : index
      %27 = vector.load %arg9[%c0_23, %c0_24, %c0_25] : memref<1x32x32xbf16, #tpu.memory_space<vmem>>, vector<1x32x4xbf16>
      %28 = vector.shape_cast %27 : vector<1x32x4xbf16> to vector<32x4xbf16>
      %29 = vector.shape_cast %26 : vector<32x4xbf16> to vector<1x32x4xbf16>
      tpu.vector_store %arg9[%c0_23, %c0_24, %c0_25], %29 {strides = array<i32>} : memref<1x32x32xbf16, #tpu.memory_space<vmem>>, vector<1x32x4xbf16>,
      %c0_26 = arith.constant 0 : index
      %c0_27 = arith.constant 0 : index
      %c0_28 = arith.constant 0 : index
      %30 = vector.load %arg13[%c0_26, %c0_27, %c0_28] : memref<8x32x4xf32, #tpu.memory_space<vmem>>, vector<1x32x4xf32>
      %31 = vector.shape_cast %30 : vector<1x32x4xf32> to vector<32x4xf32>
      %c0_29 = arith.constant 0 : index
      %c0_30 = arith.constant 0 : index
      %32 = vector.load %arg14[%c0_29, %c0_30] : memref<32x32xf32, #tpu.memory_space<vmem>>, vector<32x4xf32>
      tpu.vector_store %arg14[%c0_29, %c0_30], %31 {strides = array<i32>} : memref<32x32xf32, #tpu.memory_space<vmem>>, vector<32x4xf32>,
      %33 = arith.index_cast %arg1 : i32 to index
      %c1 = arith.constant 1 : index
      %c0_31 = arith.constant 0 : index
      %c0_32 = arith.constant 0 : index
      %34 = vector.load %arg12[%33, %c1, %c0_31, %c0_32] : memref<2x8x32x4xbf16, #tpu.memory_space<vmem>>, vector<1x1x32x4xbf16>
      %35 = vector.shape_cast %34 : vector<1x1x32x4xbf16> to vector<32x4xbf16>
      %c0_33 = arith.constant 0 : index
      %c0_34 = arith.constant 0 : index
      %c4 = arith.constant 4 : index
      %36 = vector.load %arg9[%c0_33, %c0_34, %c4] : memref<1x32x32xbf16, #tpu.memory_space<vmem>>, vector<1x32x4xbf16>
      %37 = vector.shape_cast %36 : vector<1x32x4xbf16> to vector<32x4xbf16>
      %38 = vector.shape_cast %35 : vector<32x4xbf16> to vector<1x32x4xbf16>
      tpu.vector_store %arg9[%c0_33, %c0_34, %c4], %38 {strides = array<i32>} : memref<1x32x32xbf16, #tpu.memory_space<vmem>>, vector<1x32x4xbf16>,
      %c1_35 = arith.constant 1 : index
      %c0_36 = arith.constant 0 : index
      %c0_37 = arith.constant 0 : index
      %39 = vector.load %arg13[%c1_35, %c0_36, %c0_37] : memref<8x32x4xf32, #tpu.memory_space<vmem>>, vector<1x32x4xf32>
      %40 = vector.shape_cast %39 : vector<1x32x4xf32> to vector<32x4xf32>
      %c0_38 = arith.constant 0 : index
      %c4_39 = arith.constant 4 : index
      %41 = vector.load %arg14[%c0_38, %c4_39] : memref<32x32xf32, #tpu.memory_space<vmem>>, vector<32x4xf32>
      tpu.vector_store %arg14[%c0_38, %c4_39], %40 {strides = array<i32>} : memref<32x32xf32, #tpu.memory_space<vmem>>, vector<32x4xf32>,
      %42 = arith.index_cast %arg1 : i32 to index
      %c2 = arith.constant 2 : index
      %c0_40 = arith.constant 0 : index
      %c0_41 = arith.constant 0 : index
      %43 = vector.load %arg12[%42, %c2, %c0_40, %c0_41] : memref<2x8x32x4xbf16, #tpu.memory_space<vmem>>, vector<1x1x32x4xbf16>
      %44 = vector.shape_cast %43 : vector<1x1x32x4xbf16> to vector<32x4xbf16>
      %c0_42 = arith.constant 0 : index
      %c0_43 = arith.constant 0 : index
      %c8 = arith.constant 8 : index
      %45 = vector.load %arg9[%c0_42, %c0_43, %c8] : memref<1x32x32xbf16, #tpu.memory_space<vmem>>, vector<1x32x4xbf16>
      %46 = vector.shape_cast %45 : vector<1x32x4xbf16> to vector<32x4xbf16>
      %47 = vector.shape_cast %44 : vector<32x4xbf16> to vector<1x32x4xbf16>
      tpu.vector_store %arg9[%c0_42, %c0_43, %c8], %47 {strides = array<i32>} : memref<1x32x32xbf16, #tpu.memory_space<vmem>>, vector<1x32x4xbf16>,
      %c2_44 = arith.constant 2 : index
      %c0_45 = arith.constant 0 : index
      %c0_46 = arith.constant 0 : index
      %48 = vector.load %arg13[%c2_44, %c0_45, %c0_46] : memref<8x32x4xf32, #tpu.memory_space<vmem>>, vector<1x32x4xf32>
      %49 = vector.shape_cast %48 : vector<1x32x4xf32> to vector<32x4xf32>
      %c0_47 = arith.constant 0 : index
      %c8_48 = arith.constant 8 : index
      %50 = vector.load %arg14[%c0_47, %c8_48] : memref<32x32xf32, #tpu.memory_space<vmem>>, vector<32x4xf32>
      tpu.vector_store %arg14[%c0_47, %c8_48], %49 {strides = array<i32>} : memref<32x32xf32, #tpu.memory_space<vmem>>, vector<32x4xf32>,
      %51 = arith.index_cast %arg1 : i32 to index
      %c3 = arith.constant 3 : index
      %c0_49 = arith.constant 0 : index
      %c0_50 = arith.constant 0 : index
      %52 = vector.load %arg12[%51, %c3, %c0_49, %c0_50] : memref<2x8x32x4xbf16, #tpu.memory_space<vmem>>, vector<1x1x32x4xbf16>
      %53 = vector.shape_cast %52 : vector<1x1x32x4xbf16> to vector<32x4xbf16>
      %c0_51 = arith.constant 0 : index
      %c0_52 = arith.constant 0 : index
      %c12 = arith.constant 12 : index
      %54 = vector.load %arg9[%c0_51, %c0_52, %c12] : memref<1x32x32xbf16, #tpu.memory_space<vmem>>, vector<1x32x4xbf16>
      %55 = vector.shape_cast %54 : vector<1x32x4xbf16> to vector<32x4xbf16>
      %56 = vector.shape_cast %53 : vector<32x4xbf16> to vector<1x32x4xbf16>
      tpu.vector_store %arg9[%c0_51, %c0_52, %c12], %56 {strides = array<i32>} : memref<1x32x32xbf16, #tpu.memory_space<vmem>>, vector<1x32x4xbf16>,
      %c3_53 = arith.constant 3 : index
      %c0_54 = arith.constant 0 : index
      %c0_55 = arith.constant 0 : index
      %57 = vector.load %arg13[%c3_53, %c0_54, %c0_55] : memref<8x32x4xf32, #tpu.memory_space<vmem>>, vector<1x32x4xf32>
      %58 = vector.shape_cast %57 : vector<1x32x4xf32> to vector<32x4xf32>
      %c0_56 = arith.constant 0 : index
      %c12_57 = arith.constant 12 : index
      %59 = vector.load %arg14[%c0_56, %c12_57] : memref<32x32xf32, #tpu.memory_space<vmem>>, vector<32x4xf32>
      tpu.vector_store %arg14[%c0_56, %c12_57], %58 {strides = array<i32>} : memref<32x32xf32, #tpu.memory_space<vmem>>, vector<32x4xf32>,
      %60 = arith.index_cast %arg1 : i32 to index
      %c4_58 = arith.constant 4 : index
      %c0_59 = arith.constant 0 : index
      %c0_60 = arith.constant 0 : index
      %61 = vector.load %arg12[%60, %c4_58, %c0_59, %c0_60] : memref<2x8x32x4xbf16, #tpu.memory_space<vmem>>, vector<1x1x32x4xbf16>
      %62 = vector.shape_cast %61 : vector<1x1x32x4xbf16> to vector<32x4xbf16>
      %c0_61 = arith.constant 0 : index
      %c0_62 = arith.constant 0 : index
      %c16 = arith.constant 16 : index
      %63 = vector.load %arg9[%c0_61, %c0_62, %c16] : memref<1x32x32xbf16, #tpu.memory_space<vmem>>, vector<1x32x4xbf16>
      %64 = vector.shape_cast %63 : vector<1x32x4xbf16> to vector<32x4xbf16>
      %65 = vector.shape_cast %62 : vector<32x4xbf16> to vector<1x32x4xbf16>
      tpu.vector_store %arg9[%c0_61, %c0_62, %c16], %65 {strides = array<i32>} : memref<1x32x32xbf16, #tpu.memory_space<vmem>>, vector<1x32x4xbf16>,
      %c4_63 = arith.constant 4 : index
      %c0_64 = arith.constant 0 : index
      %c0_65 = arith.constant 0 : index
      %66 = vector.load %arg13[%c4_63, %c0_64, %c0_65] : memref<8x32x4xf32, #tpu.memory_space<vmem>>, vector<1x32x4xf32>
      %67 = vector.shape_cast %66 : vector<1x32x4xf32> to vector<32x4xf32>
      %c0_66 = arith.constant 0 : index
      %c16_67 = arith.constant 16 : index
      %68 = vector.load %arg14[%c0_66, %c16_67] : memref<32x32xf32, #tpu.memory_space<vmem>>, vector<32x4xf32>
      tpu.vector_store %arg14[%c0_66, %c16_67], %67 {strides = array<i32>} : memref<32x32xf32, #tpu.memory_space<vmem>>, vector<32x4xf32>,
      %69 = arith.index_cast %arg1 : i32 to index
      %c5 = arith.constant 5 : index
      %c0_68 = arith.constant 0 : index
      %c0_69 = arith.constant 0 : index
      %70 = vector.load %arg12[%69, %c5, %c0_68, %c0_69] : memref<2x8x32x4xbf16, #tpu.memory_space<vmem>>, vector<1x1x32x4xbf16>
      %71 = vector.shape_cast %70 : vector<1x1x32x4xbf16> to vector<32x4xbf16>
      %c0_70 = arith.constant 0 : index
      %c0_71 = arith.constant 0 : index
      %c20 = arith.constant 20 : index
      %72 = vector.load %arg9[%c0_70, %c0_71, %c20] : memref<1x32x32xbf16, #tpu.memory_space<vmem>>, vector<1x32x4xbf16>
      %73 = vector.shape_cast %72 : vector<1x32x4xbf16> to vector<32x4xbf16>
      %74 = vector.shape_cast %71 : vector<32x4xbf16> to vector<1x32x4xbf16>
      tpu.vector_store %arg9[%c0_70, %c0_71, %c20], %74 {strides = array<i32>} : memref<1x32x32xbf16, #tpu.memory_space<vmem>>, vector<1x32x4xbf16>,
      %c5_72 = arith.constant 5 : index
      %c0_73 = arith.constant 0 : index
      %c0_74 = arith.constant 0 : index
      %75 = vector.load %arg13[%c5_72, %c0_73, %c0_74] : memref<8x32x4xf32, #tpu.memory_space<vmem>>, vector<1x32x4xf32>
      %76 = vector.shape_cast %75 : vector<1x32x4xf32> to vector<32x4xf32>
      %c0_75 = arith.constant 0 : index
      %c20_76 = arith.constant 20 : index
      %77 = vector.load %arg14[%c0_75, %c20_76] : memref<32x32xf32, #tpu.memory_space<vmem>>, vector<32x4xf32>
      tpu.vector_store %arg14[%c0_75, %c20_76], %76 {strides = array<i32>} : memref<32x32xf32, #tpu.memory_space<vmem>>, vector<32x4xf32>,
      %78 = arith.index_cast %arg1 : i32 to index
      %c6 = arith.constant 6 : index
      %c0_77 = arith.constant 0 : index
      %c0_78 = arith.constant 0 : index
      %79 = vector.load %arg12[%78, %c6, %c0_77, %c0_78] : memref<2x8x32x4xbf16, #tpu.memory_space<vmem>>, vector<1x1x32x4xbf16>
      %80 = vector.shape_cast %79 : vector<1x1x32x4xbf16> to vector<32x4xbf16>
      %c0_79 = arith.constant 0 : index
      %c0_80 = arith.constant 0 : index
      %c24 = arith.constant 24 : index
      %81 = vector.load %arg9[%c0_79, %c0_80, %c24] : memref<1x32x32xbf16, #tpu.memory_space<vmem>>, vector<1x32x4xbf16>
      %82 = vector.shape_cast %81 : vector<1x32x4xbf16> to vector<32x4xbf16>
      %83 = vector.shape_cast %80 : vector<32x4xbf16> to vector<1x32x4xbf16>
      tpu.vector_store %arg9[%c0_79, %c0_80, %c24], %83 {strides = array<i32>} : memref<1x32x32xbf16, #tpu.memory_space<vmem>>, vector<1x32x4xbf16>,
      %c6_81 = arith.constant 6 : index
      %c0_82 = arith.constant 0 : index
      %c0_83 = arith.constant 0 : index
      %84 = vector.load %arg13[%c6_81, %c0_82, %c0_83] : memref<8x32x4xf32, #tpu.memory_space<vmem>>, vector<1x32x4xf32>
      %85 = vector.shape_cast %84 : vector<1x32x4xf32> to vector<32x4xf32>
      %c0_84 = arith.constant 0 : index
      %c24_85 = arith.constant 24 : index
      %86 = vector.load %arg14[%c0_84, %c24_85] : memref<32x32xf32, #tpu.memory_space<vmem>>, vector<32x4xf32>
      tpu.vector_store %arg14[%c0_84, %c24_85], %85 {strides = array<i32>} : memref<32x32xf32, #tpu.memory_space<vmem>>, vector<32x4xf32>,
      %87 = arith.index_cast %arg1 : i32 to index
      %c7 = arith.constant 7 : index
      %c0_86 = arith.constant 0 : index
      %c0_87 = arith.constant 0 : index
      %88 = vector.load %arg12[%87, %c7, %c0_86, %c0_87] : memref<2x8x32x4xbf16, #tpu.memory_space<vmem>>, vector<1x1x32x4xbf16>
      %89 = vector.shape_cast %88 : vector<1x1x32x4xbf16> to vector<32x4xbf16>
      %c0_88 = arith.constant 0 : index
      %c0_89 = arith.constant 0 : index
      %c28 = arith.constant 28 : index
      %90 = vector.load %arg9[%c0_88, %c0_89, %c28] : memref<1x32x32xbf16, #tpu.memory_space<vmem>>, vector<1x32x4xbf16>
      %91 = vector.shape_cast %90 : vector<1x32x4xbf16> to vector<32x4xbf16>
      %92 = vector.shape_cast %89 : vector<32x4xbf16> to vector<1x32x4xbf16>
      tpu.vector_store %arg9[%c0_88, %c0_89, %c28], %92 {strides = array<i32>} : memref<1x32x32xbf16, #tpu.memory_space<vmem>>, vector<1x32x4xbf16>,
      %c7_90 = arith.constant 7 : index
      %c0_91 = arith.constant 0 : index
      %c0_92 = arith.constant 0 : index
      %93 = vector.load %arg13[%c7_90, %c0_91, %c0_92] : memref<8x32x4xf32, #tpu.memory_space<vmem>>, vector<1x32x4xf32>
      %94 = vector.shape_cast %93 : vector<1x32x4xf32> to vector<32x4xf32>
      %c0_93 = arith.constant 0 : index
      %c28_94 = arith.constant 28 : index
      %95 = vector.load %arg14[%c0_93, %c28_94] : memref<32x32xf32, #tpu.memory_space<vmem>>, vector<32x4xf32>
      tpu.vector_store %arg14[%c0_93, %c28_94], %94 {strides = array<i32>} : memref<32x32xf32, #tpu.memory_space<vmem>>, vector<32x4xf32>,
      %c0_95 = arith.constant 0 : index
      %c0_96 = arith.constant 0 : index
      %96 = vector.load %arg14[%c0_95, %c0_96] : memref<32x32xf32, #tpu.memory_space<vmem>>, vector<32x32xf32>
      %cst_97 = arith.constant 2.000000e+00 : f32
      %97 = vector.broadcast %cst_97 : f32 to vector<32x32xf32>
      %98 = arith.cmpf oge, %96, %97 : vector<32x32xf32>
      %99 = arith.extui %98 : vector<32x32xi1> to vector<32x32xi32>
      %100 = arith.sitofp %99 : vector<32x32xi32> to vector<32x32xf32>
      %c3_98 = arith.constant 3 : index
      %c0_99 = arith.constant 0 : index
      %c0_100 = arith.constant 0 : index
      %101 = vector.load %arg5[%c3_98, %c0_99, %c0_100] : memref<4x32x32xf32, #tpu.memory_space<vmem>>, vector<1x32x32xf32>
      %102 = vector.shape_cast %101 : vector<1x32x32xf32> to vector<32x32xf32>
      %cst_101 = arith.constant dense<0.000000e+00> : vector<32x32xf32>
      %103 = tpu.matmul %100, %102, %cst_101 {dimension_numbers = #tpu.dot_dimension_numbers<[1], [0], [0], [1], [0, 0, 1, 1], [], []>} : vector<32x32xf32>, vector<32x32xf32>, vector<32x32xf32> -> vector<32x32xf32>
      %c3_102 = arith.constant 3 : index
      %c0_103 = arith.constant 0 : index
      %104 = vector.load %arg6[%c3_102, %c0_103] : memref<4x32xf32, #tpu.memory_space<vmem>>, vector<1x32xf32>
      %105 = vector.broadcast %104 : vector<1x32xf32> to vector<32x32xf32>
      %106 = arith.mulf %103, %105 : vector<32x32xf32>
      %c3_104 = arith.constant 3 : index
      %c0_105 = arith.constant 0 : index
      %107 = vector.load %arg7[%c3_104, %c0_105] : memref<4x32xf32, #tpu.memory_space<vmem>>, vector<1x32xf32>
      %108 = vector.broadcast %107 : vector<1x32xf32> to vector<32x32xf32>
      %109 = arith.addf %106, %108 : vector<32x32xf32>
      %cst_106 = arith.constant 2.000000e+00 : f32
      %110 = vector.broadcast %cst_106 : f32 to vector<32x32xf32>
      %111 = arith.cmpf oge, %109, %110 : vector<32x32xf32>
      %112 = arith.extui %111 : vector<32x32xi1> to vector<32x32xi32>
      %113 = arith.sitofp %112 : vector<32x32xi32> to vector<32x32xf32>
      %114 = arith.truncf %113 : vector<32x32xf32> to vector<32x32xbf16>
      %c0_107 = arith.constant 0 : index
      %c0_108 = arith.constant 0 : index
      %c0_109 = arith.constant 0 : index
      %115 = vector.load %arg8[%c0_107, %c0_108, %c0_109] : memref<1x32x32xbf16, #tpu.memory_space<vmem>>, vector<1x32x32xbf16>
      %116 = vector.shape_cast %115 : vector<1x32x32xbf16> to vector<32x32xbf16>
      %117 = vector.shape_cast %114 : vector<32x32xbf16> to vector<1x32x32xbf16>
      tpu.vector_store %arg8[%c0_107, %c0_108, %c0_109], %117 {strides = array<i32>} : memref<1x32x32xbf16, #tpu.memory_space<vmem>>, vector<1x32x32xbf16>,
    } else {
    }
    return
  }
  func.func @transform_0(%arg0: i32, %arg1: i32, %arg2: i32) -> (i32, i32, i32) {
    %c0_i32 = arith.constant 0 : i32
    %c0_i32_0 = arith.constant 0 : i32
    return %arg0, %arg1, %c0_i32 : i32, i32, i32
  }
  func.func @transform_1(%arg0: i32, %arg1: i32, %arg2: i32) -> (i32, i32, i32) {
    %c1_i32 = arith.constant 1 : i32
    %0 = arith.subi %c1_i32, %arg1 : i32
    %c0_i32 = arith.constant 0 : i32
    %1 = arith.maxsi %0, %c0_i32 : i32
    %2 = arith.muli %arg2, %1 : i32
    %c0_i32_0 = arith.constant 0 : i32
    %c0_i32_1 = arith.constant 0 : i32
    return %arg0, %2, %c0_i32_0 : i32, i32, i32
  }
  func.func @transform_2(%arg0: i32, %arg1: i32, %arg2: i32) -> (i32, i32, i32) {
    %c0_i32 = arith.constant 0 : i32
    %c0_i32_0 = arith.constant 0 : i32
    %c0_i32_1 = arith.constant 0 : i32
    %c0_i32_2 = arith.constant 0 : i32
    return %c0_i32, %c0_i32_0, %c0_i32_1 : i32, i32, i32
  }
  func.func @transform_3(%arg0: i32, %arg1: i32, %arg2: i32) -> (i32, i32) {
    %c0_i32 = arith.constant 0 : i32
    %c0_i32_0 = arith.constant 0 : i32
    %c0_i32_1 = arith.constant 0 : i32
    return %c0_i32, %c0_i32_0 : i32, i32
  }
  func.func @transform_4(%arg0: i32, %arg1: i32, %arg2: i32) -> (i32, i32) {
    %c0_i32 = arith.constant 0 : i32
    %c0_i32_0 = arith.constant 0 : i32
    %c0_i32_1 = arith.constant 0 : i32
    return %c0_i32, %c0_i32_0 : i32, i32
  }
  func.func @transform_5(%arg0: i32, %arg1: i32, %arg2: i32) -> (i32, i32, i32) {
    %c0_i32 = arith.constant 0 : i32
    %c0_i32_0 = arith.constant 0 : i32
    return %arg0, %arg1, %c0_i32 : i32, i32, i32
  }
  func.func @transform_6(%arg0: i32, %arg1: i32, %arg2: i32) -> (i32, i32, i32) {
    %c0_i32 = arith.constant 0 : i32
    %c0_i32_0 = arith.constant 0 : i32
    return %arg0, %arg1, %c0_i32 : i32, i32, i32
  }
}

</mosaic_0001>

<bundles_post_ra>
// kernel: tpu_custom_call.1
= control target key start
LH: loop header
LB: loop body
LE: loop exit
PB: predicated region body
PF: predicated region fallthrough
CT: control target
= control target key end

     0   :  { %s3595_s21 = smov 0   ;;  %s3597_s22 = smov 0   ;;  %s4437_s0 = inlined_call_operand.vmem [shape: f32[2,64,32], index: 0, kind: input, shape index: {}]   ;;  %s4438_s1 = inlined_call_operand.vmem [shape: f32[2,64,32], index: 1, kind: input, shape index: {}]   ;;  %s4439_s2 = inlined_call_operand.vmem [shape: f32[4,32,32], index: 2, kind: input, shape index: {}]   ;;  %s4440_s3 = inlined_call_operand.vmem [shape: f32[4,32], index: 3, kind: input, shape index: {}]   ;;  %s4441_s4 = inlined_call_operand.vmem [shape: f32[4,32], index: 4, kind: input, shape index: {}]   ;;  %s4442_s5 = inlined_call_operand.vmem [shape: bf16[2,64,32], index: 5, kind: output, shape index: {0}]   ;;  %s4443_s6 = inlined_call_operand.vmem [shape: bf16[2,64,32], index: 6, kind: output, shape index: {1}]  }
   0x1   :  { %s3599_s23 = smov 0   ;;  %s3601_s24 = smov 0  }
   0x2   :  { %s3603_s25 = smov 0   ;;  %s3605_s26 = smov 0  }
   0x3   :  { %s3607_s27 = smov 0  }
   0x4 LB: > { %s29_s28 = sadd.s32 1, %s3522_s24  ;;  %s32_s29 = sadd.s32 1, %s3526_s25  ;;  %s3534_s27 = sphi %s3607_s27, %s17_s27   ;;  %s3530_s26 = sphi %s3605_s26, %s4453_s26   ;;  %s3526_s25 = sphi %s3603_s25, %s4452_s25   ;;  %s3522_s24 = sphi %s3601_s24, %s4451_s24   ;;  %s3518_s23 = sphi %s3599_s23, %s4450_s23   ;;  %s3514_s22 = sphi %s3597_s22, %s4449_s22   ;;  %s3510_s21 = sphi %s3595_s21, %s4448_s21  }
   0x5   : > { %p30_p0 = scmp.ge.s32.totalorder %s29_s28, 2  ;;  %p2862_p1 = scmp.ge.s32.totalorder %s3534_s27, 1 }
   0x6   : > { %p278_p2 = scmp.lt.s32.totalorder %s3534_s27, 9  ;;  %s36_s30 = sadd.s32 1, %s3530_s26 }
   0x7   : > { %s4455_s28 = smov (%p30_p0, %s29_s28), 0  ;;  %s4457_s29 = smov (!%p30_p0, %s32_s29), %s3526_s25 }
   0x8   : > { %p279_p3 = pnand %p2862_p1, %p278_p2  ;;  %p34_p4 = scmp.ge.s32.totalorder %s4457_s29, 2 }
   0x9   : > { %s2863_s7 = sshll.u32 (!%p279_p3), %s3514_s22, 2  ;;  %p339_p6 = scmp.lt.s32.totalorder (!%p279_p3), %s3518_s23, 1 }
   0xa   : > { %s4459_s29 = smov (%p34_p4, %s4457_s29), 0  ;;  %s4461_s30 = smov (!%p34_p4, %s36_s30), %s3530_s26 }
   0xb   : > { %4444 = sst [smem:[#allocation7_spill]] %s4459_s29  ;;  %p38_p5 = scmp.ge.s32.totalorder %s4461_s30, 2 }
   0xc   : > { %282 = sbr.rel (%p279_p3) target bundleno = 1465 (0x5b9), region = 40  ;;  %p341_p7 = scmp.lt.s32.totalorder (!%p279_p3), %s2863_s7, 7 }
   0xd   : > { %s4463_s30 = smov (%p38_p5, %s4461_s30), 0  ;;  %s348_s8 = ssub.s32 (!%p279_p3), 1, %s3514_s22 }
   0xe   : > { %4445 = sst [smem:[#allocation8_spill]] %s4463_s30  ;;  %p349_p8 = scmp.gt.s32.totalorder (!%p279_p3), %s348_s8, 0 }
   0xf   : > { %p2875_p10 = scmp.ne.s32.totalorder (!%p279_p3), %s3510_s21, 0 }
  0x11   : > { %s4465_s23 = smov (!%p339_p6, %s3518_s23), 1  ;;  %s4467_s7 = smov (!%p341_p7, %s2863_s7), 7 }
  0x12   : > { %s2864_s9 = sshll.u32 %s4465_s23, 3  ;;  %s4469_s8 = smov (!%p349_p8, %s348_s8), 0 }
  0x13   : > { %s344_s10 = sadd.s32 %s2864_s9, %s4467_s7  ;;  %s351_s23 = smul.u32 %s3510_s21, %s4469_s8 }
  0x14   : > { %s2865_s11 = sshll.u32 %s344_s10, 3  ;;  %s2871_s12 = sshll.u32 %s344_s10, 2 }
  0x15   : > { %s3646_s15 = scalar_lea.vmem %s4437_s0, %s2865_s11  ;;  %s3651_s18 = scalar_lea.vmem %s4442_s5, %s2871_s12 }
  0x16   : > { %s3656_s30 = scalar_lea.vmem %s4443_s6, %s2871_s12  ;;  %s2866_s7 = sshll.u32 %s351_s23, 2 }
  0x17   : > { %p355_p9 = scmp.lt.s32.totalorder %s2866_s7, 7  ;;  %s3537_s13 = smov (!%p2875_p10), 112  }
  0x18   : > { %390 = sbr.rel (%p2875_p10) target bundleno = 360 (0x168), region = 44  ;;  %s3538_s11 = smov (!%p2875_p10), 120  }
  0x19   : > { %s4471_s7 = smov (!%p355_p9, %s2866_s7), 7  ;;  %s3539_s16 = smov (!%p2875_p10), 124  }
  0x1a   : > { %s358_s10 = sadd.s32 %s2864_s9, %s4471_s7  ;;  %s3540_s17 = smov (!%p2875_p10), 108  }
  0x1b   : > { %s2868_s29 = sshll.u32 %s358_s10, 3  ;;  %s3541_s12 = smov (!%p2875_p10), 116  }
  0x1c   : > { %s3662_s14 = scalar_lea.vmem %s4438_s1, %s2868_s29  ;;  %s3542_s19 = smov (!%p2875_p10), 104  }
  0x1d   : > { %v431_v0 = vld [vmem:[%s4439_s2 + $0x18] sm:$0xff]  ;;  %v430_v1 = vld [vmem:[%s4439_s2 + $0x10] sm:$0xff]  ;;  %vm391_vm0 = vcmask 31744   ;;  %v3536_v2 = vmov 0.0   ;;  %v429_v3 = vld [vmem:[%s4439_s2 + $0x8] sm:$0xff]  ;;  %vm432_vm1 = vcmask 261120  }
  0x1e   : > { %457 = vmatpush.msra.mxu0 %v431_v0  ;;  %3360 = vmatpush.msra.mxu1 %v431_v0  ;;  %392 = vst.msk [vmem:[#allocation5] sm:$0xff] %vm391_vm0, %v3536_v2  ;;  %v428_v4 = vld [vmem:[%s4439_s2] sm:$0xff]  ;;  %v425_v6 = vld [vmem:[%s3646_s15 + $0x8] sm:$0xff]  ;;  %v426_v7 = vld [vmem:[%s3646_s15 + $0x10] sm:$0xff]  ;;  %vm502_vm4 = vcmask 27648   ;;  %s3543_s29 = smov 100  }
  0x1f   : > { %3361 = vmatpush.msra.mxu2 %v431_v0  ;;  %3362 = vmatpush.msra.mxu3 %v431_v0  ;;  %393 = vst.msk [vmem:[#allocation5 + $0x8] sm:$0xff] %vm391_vm0, %v3536_v2  ;;  %v424_v5 = vld [vmem:[%s3646_s15] sm:$0xff]  ;;  %v427_v8 = vld [vmem:[%s3646_s15 + $0x18] sm:$0xff] }
  0x20   : > { %458 = vmatpush.msra.mxu0 %v430_v1  ;;  %3363 = vmatpush.msra.mxu1 %v430_v1  ;;  %394 = vst.msk [vmem:[#allocation5 + $0x10] sm:$0xff] %vm391_vm0, %v3536_v2  ;;  %v3472_v9 = vld [vmem:[%s4440_s3] ss:$0 sm:$0xff] }
  0x21   : > { %3364 = vmatpush.msra.mxu2 %v430_v1  ;;  %3365 = vmatpush.msra.mxu3 %v430_v1  ;;  %395 = vst.msk [vmem:[#allocation5 + $0x18] sm:$0xff] %vm391_vm0, %v3536_v2  ;;  %v3473_v10 = vld [vmem:[%s4441_s4] ss:$0 sm:$0xff] }
  0x22   : > { %459 = vmatpush.msra.mxu0 %v429_v3  ;;  %3366 = vmatpush.msra.mxu1 %v429_v3  ;;  %396 = vst.msk [vmem:[#allocation5 + $0x20] sm:$0xff] %vm391_vm0, %v3536_v2 }
  0x23   : > { %3367 = vmatpush.msra.mxu2 %v429_v3  ;;  %3368 = vmatpush.msra.mxu3 %v429_v3  ;;  %397 = vst.msk [vmem:[#allocation5 + $0x28] sm:$0xff] %vm391_vm0, %v3536_v2 }
  0x24   : > { %460 = vmatpush.msra.mxu0 %v428_v4  ;;  %3369 = vmatpush.msra.mxu1 %v428_v4  ;;  %398 = vst.msk [vmem:[#allocation5 + $0x30] sm:$0xff] %vm391_vm0, %v3536_v2 }
  0x25   : > { %2876 = vmatmul.msk.f32.vlgmr.msra.gmra.mxu0 %vm432_vm1, %v424_v5  ;;  %2877 = vmatmul.msk.f32.vlgmr.msra.gmra.mxu1 %vm432_vm1, %v425_v6  ;;  %399 = vst.msk [vmem:[#allocation5 + $0x38] sm:$0xff] %vm391_vm0, %v3536_v2 }
  0x26   : > { %3370 = vmatpush.msra.mxu2 %v428_v4  ;;  %3371 = vmatpush.msra.mxu3 %v428_v4  ;;  %400 = vst.msk [vmem:[#allocation5 + $0x40] sm:$0xff] %vm391_vm0, %v3536_v2 }
  0x27   : > { %2878 = vmatmul.msk.f32.vlgmr.msra.gmra.mxu2 %vm432_vm1, %v426_v7  ;;  %2879 = vmatmul.msk.f32.vlgmr.msra.gmra.mxu3 %vm432_vm1, %v427_v8  ;;  %401 = vst.msk [vmem:[#allocation5 + $0x48] sm:$0xff] %vm391_vm0, %v3536_v2 }
  0x28   : > { %402 = vst.msk [vmem:[#allocation5 + $0x50] sm:$0xff] %vm391_vm0, %v3536_v2 }
  0x29   : > { %403 = vst.msk [vmem:[#allocation5 + $0x58] sm:$0xff] %vm391_vm0, %v3536_v2 }
  0x2a   : > { %404 = vst.msk [vmem:[#allocation5 + $0x60] sm:$0xff] %vm391_vm0, %v3536_v2 }
  0x2b   : > { %405 = vst.msk [vmem:[#allocation5 + $0x68] sm:$0xff] %vm391_vm0, %v3536_v2 }
  0x2c   : > { %406 = vst.msk [vmem:[#allocation5 + $0x70] sm:$0xff] %vm391_vm0, %v3536_v2 }
  0x2d   : > { %407 = vst.msk [vmem:[#allocation5 + $0x78] sm:$0xff] %vm391_vm0, %v3536_v2 }
  0x2e   : > { %408 = vst.msk [vmem:[#allocation5 + $0x80] sm:$0xff] %vm391_vm0, %v3536_v2 }
  0x2f   : > { %409 = vst.msk [vmem:[#allocation5 + $0x88] sm:$0xff] %vm391_vm0, %v3536_v2 }
  0x30   : > { %410 = vst.msk [vmem:[#allocation5 + $0x90] sm:$0xff] %vm391_vm0, %v3536_v2 }
  0x31   : > { %411 = vst.msk [vmem:[#allocation5 + $0x98] sm:$0xff] %vm391_vm0, %v3536_v2 }
  0x32   : > { %412 = vst.msk [vmem:[#allocation5 + $0xa0] sm:$0xff] %vm391_vm0, %v3536_v2 }
  0x33   : > { %413 = vst.msk [vmem:[#allocation5 + $0xa8] sm:$0xff] %vm391_vm0, %v3536_v2 }
  0x34   : > { %414 = vst.msk [vmem:[#allocation5 + $0xb0] sm:$0xff] %vm391_vm0, %v3536_v2 }
  0x35   : > { %415 = vst.msk [vmem:[#allocation5 + $0xb8] sm:$0xff] %vm391_vm0, %v3536_v2 }
  0x36   : > { %416 = vst.msk [vmem:[#allocation5 + $0xc0] sm:$0xff] %vm391_vm0, %v3536_v2 }
  0x37   : > { %417 = vst.msk [vmem:[#allocation5 + $0xc8] sm:$0xff] %vm391_vm0, %v3536_v2 }
  0x38   : > { %418 = vst.msk [vmem:[#allocation5 + $0xd0] sm:$0xff] %vm391_vm0, %v3536_v2 }
  0x39   : > { %419 = vst.msk [vmem:[#allocation5 + $0xd8] sm:$0xff] %vm391_vm0, %v3536_v2 }
  0x3a   : > { %420 = vst.msk [vmem:[#allocation5 + $0xe0] sm:$0xff] %vm391_vm0, %v3536_v2 }
  0x3b   : > { %421 = vst.msk [vmem:[#allocation5 + $0xe8] sm:$0xff] %vm391_vm0, %v3536_v2 }
  0x3c   : > { %422 = vst.msk [vmem:[#allocation5 + $0xf0] sm:$0xff] %vm391_vm0, %v3536_v2 }
  0x3d   : > { %423 = vst.msk [vmem:[#allocation5 + $0xf8] sm:$0xff] %vm391_vm0, %v3536_v2 }
  0xa2   : > { %v462_v11 = vpop.f32.mrf.mxu0  ;;  %v465_v12 = vpop.f32.mrf.mxu1 }
  0xa3   : > { %v476_v13 = vmul.f32 %v3472_v9, %v462_v11  ;;  %v477_v14 = vmul.f32 %v3472_v9, %v465_v12 }
  0xa5   : > { %v482_v15 = vadd.f32 %v3473_v10, %v476_v13  ;;  %v483_v16 = vadd.f32 %v3473_v10, %v477_v14 }
  0xa7   : > { %vm486_vm2 = vcmp.ge.f32.partialorder %v482_v15, 2.0  ;;  %vm487_vm3 = vcmp.ge.f32.partialorder %v483_v16, 2.0 }
  0xa8   : > { %v2880_v17 = vsel %vm486_vm2, 1.0, %v3536_v2  ;;  %v2881_v18 = vsel %vm487_vm3, 1.0, %v3536_v2 }
  0xa9   : > { %v498_v19 = vpack.c.bf16 %v2880_v17, %v2880_v17  ;;  %v499_v20 = vpack.c.bf16 %v2881_v18, %v2881_v18 }
  0xaa   : > { %v468_v21 = vpop.f32.mrf.mxu2  ;;  %v471_v22 = vpop.f32.mrf.mxu3 }
  0xab   : > { %503 = vst.msk [vmem:[#allocation2] sm:$0xf] %vm502_vm4, %v498_v19  ;;  %564 = vrot.lane.b32.xlu1 %v499_v20, %s3537_s13  ;;  %528 = vrot.lane.b32.xlu2 %v498_v19, %s3538_s11  ;;  %v478_v23 = vmul.f32 %v3472_v9, %v468_v21  ;;  %v479_v24 = vmul.f32 %v3472_v9, %v471_v22 }
  0xac   : > { %504 = vst.msk [vmem:[#allocation2 + $0x4] sm:$0xf] %vm502_vm4, %v499_v20  ;;  %511 = vrot.lane.b32.xlu0 %v498_v19, %s3539_s16 }
  0xad   : > { %v484_v25 = vadd.f32 %v3473_v10, %v478_v23  ;;  %v485_v26 = vadd.f32 %v3473_v10, %v479_v24 }
  0xaf   : > { %vm488_vm5 = vcmp.ge.f32.partialorder %v484_v25, 2.0  ;;  %vm489_vm6 = vcmp.ge.f32.partialorder %v485_v26, 2.0 }
  0xb0   : > { %v2882_v27 = vsel %vm488_vm5, 1.0, %v3536_v2  ;;  %v2883_v28 = vsel %vm489_vm6, 1.0, %v3536_v2 }
  0xb1   : > { %v500_v29 = vpack.c.bf16 %v2882_v27, %v2882_v27  ;;  %v501_v30 = vpack.c.bf16 %v2883_v28, %v2883_v28 }
  0xb3   : > { %505 = vst.msk [vmem:[#allocation2 + $0x8] sm:$0xf] %vm502_vm4, %v500_v29  ;;  %579 = vrot.lane.b32.xlu1 %v498_v19, %s3540_s17  ;;  %530 = vrot.lane.b32.xlu2 %v499_v20, %s3538_s11 }
  0xb4   : > { %513 = vrot.lane.b32.xlu0 %v499_v20, %s3539_s16  ;;  %506 = vst.msk [vmem:[#allocation2 + $0xc] sm:$0xf] %vm502_vm4, %v501_v30 }
  0xbb   : > { %515 = vrot.lane.b32.xlu1 %v500_v29, %s3539_s16  ;;  %545 = vrot.lane.b32.xlu2 %v498_v19, %s3541_s12 }
  0xbc   : > { %547 = vrot.lane.b32.xlu0 %v499_v20, %s3541_s12 }
  0xc3   : > { %517 = vrot.lane.b32.xlu1 %v501_v30, %s3539_s16  ;;  %581 = vrot.lane.b32.xlu2 %v499_v20, %s3540_s17 }
  0xc4   : > { %562 = vrot.lane.b32.xlu0 %v498_v19, %s3537_s13 }
  0xcb   : > { %534 = vrot.lane.b32.xlu1 %v501_v30, %s3538_s11  ;;  %596 = vrot.lane.b32.xlu2 %v498_v19, %s3542_s19 }
  0xcc   : > { %598 = vrot.lane.b32.xlu0 %v499_v20, %s3542_s19 }
  0xd3   : > { %549 = vrot.lane.b32.xlu1 %v500_v29, %s3541_s12  ;;  %551 = vrot.lane.b32.xlu2 %v501_v30, %s3541_s12 }
  0xd4   : > { %613 = vrot.lane.b32.xlu0 %v498_v19, %s3543_s29 }
  0xdb   : > { %585 = vrot.lane.b32.xlu1 %v501_v30, %s3540_s17  ;;  %566 = vrot.lane.b32.xlu2 %v500_v29, %s3537_s13 }
  0xdc   : > { %532 = vrot.lane.b32.xlu0 %v500_v29, %s3538_s11 }
  0xe3   : > { %600 = vrot.lane.b32.xlu1 %v500_v29, %s3542_s19  ;;  %602 = vrot.lane.b32.xlu2 %v501_v30, %s3542_s19 }
  0xe4   : > { %568 = vrot.lane.b32.xlu0 %v501_v30, %s3537_s13 }
  0xeb   : > { %615 = vrot.lane.b32.xlu1 %v499_v20, %s3543_s29  ;;  %617 = vrot.lane.b32.xlu2 %v500_v29, %s3543_s29 }
  0xec   : > { %583 = vrot.lane.b32.xlu0 %v500_v29, %s3540_s17 }
  0xf4   : > { %619 = vrot.lane.b32.xlu0 %v501_v30, %s3543_s29 }
 0x105   : > { %v529_v31 = vpop.permute.xlu2 %528 }
 0x106   : > { %541 = vst.msk [vmem:[#allocation2 + $0x20] sm:$0xf] %vm502_vm4, %v529_v31 }
 0x10d   : > { %v531_v32 = vpop.permute.xlu2 %530 }
 0x10e   : > { %542 = vst.msk [vmem:[#allocation2 + $0x24] sm:$0xf] %vm502_vm4, %v531_v32 }
 0x115   : > { %v546_v33 = vpop.permute.xlu2 %545 }
 0x116   : > { %558 = vst.msk [vmem:[#allocation2 + $0x30] sm:$0xf] %vm502_vm4, %v546_v33 }
 0x11d   : > { %v565_v34 = vpop.permute.xlu1 %564  ;;  %v582_v35 = vpop.permute.xlu2 %581 }
 0x11e   : > { %576 = vst.msk [vmem:[#allocation2 + $0x44] sm:$0xf] %vm502_vm4, %v565_v34  ;;  %v512_v36 = vpop.permute.xlu0 %511 }
 0x11f   : > { %593 = vst.msk [vmem:[#allocation2 + $0x54] sm:$0xf] %vm502_vm4, %v582_v35 }
 0x120   : > { %524 = vst.msk [vmem:[#allocation2 + $0x10] sm:$0xf] %vm502_vm4, %v512_v36 }
 0x125   : > { %v580_v37 = vpop.permute.xlu1 %579  ;;  %v597_v38 = vpop.permute.xlu2 %596 }
 0x126   : > { %592 = vst.msk [vmem:[#allocation2 + $0x50] sm:$0xf] %vm502_vm4, %v580_v37  ;;  %v514_v39 = vpop.permute.xlu0 %513 }
 0x127   : > { %609 = vst.msk [vmem:[#allocation2 + $0x60] sm:$0xf] %vm502_vm4, %v597_v38 }
 0x128   : > { %525 = vst.msk [vmem:[#allocation2 + $0x14] sm:$0xf] %vm502_vm4, %v514_v39 }
 0x12d   : > { %v516_v40 = vpop.permute.xlu1 %515  ;;  %v552_v41 = vpop.permute.xlu2 %551 }
 0x12e   : > { %526 = vst.msk [vmem:[#allocation2 + $0x18] sm:$0xf] %vm502_vm4, %v516_v40  ;;  %v548_v42 = vpop.permute.xlu0 %547 }
 0x12f   : > { %561 = vst.msk [vmem:[#allocation2 + $0x3c] sm:$0xf] %vm502_vm4, %v552_v41 }
 0x130   : > { %559 = vst.msk [vmem:[#allocation2 + $0x34] sm:$0xf] %vm502_vm4, %v548_v42 }
 0x135   : > { %v518_v43 = vpop.permute.xlu1 %517  ;;  %v567_v44 = vpop.permute.xlu2 %566 }
 0x136   : > { %527 = vst.msk [vmem:[#allocation2 + $0x1c] sm:$0xf] %vm502_vm4, %v518_v43  ;;  %v563_v45 = vpop.permute.xlu0 %562 }
 0x137   : > { %577 = vst.msk [vmem:[#allocation2 + $0x48] sm:$0xf] %vm502_vm4, %v567_v44 }
 0x138   : > { %575 = vst.msk [vmem:[#allocation2 + $0x40] sm:$0xf] %vm502_vm4, %v563_v45 }
 0x13d   : > { %v535_v46 = vpop.permute.xlu1 %534  ;;  %v603_v47 = vpop.permute.xlu2 %602 }
 0x13e   : > { %544 = vst.msk [vmem:[#allocation2 + $0x2c] sm:$0xf] %vm502_vm4, %v535_v46  ;;  %v599_v48 = vpop.permute.xlu0 %598 }
 0x13f   : > { %612 = vst.msk [vmem:[#allocation2 + $0x6c] sm:$0xf] %vm502_vm4, %v603_v47 }
 0x140   : > { %610 = vst.msk [vmem:[#allocation2 + $0x64] sm:$0xf] %vm502_vm4, %v599_v48 }
 0x145   : > { %v550_v49 = vpop.permute.xlu1 %549  ;;  %v618_v50 = vpop.permute.xlu2 %617 }
 0x146   : > { %560 = vst.msk [vmem:[#allocation2 + $0x38] sm:$0xf] %vm502_vm4, %v550_v49  ;;  %v614_v51 = vpop.permute.xlu0 %613 }
 0x147   : > { %628 = vst.msk [vmem:[#allocation2 + $0x78] sm:$0xf] %vm502_vm4, %v618_v50 }
 0x148   : > { %626 = vst.msk [vmem:[#allocation2 + $0x70] sm:$0xf] %vm502_vm4, %v614_v51 }
 0x14d   : > { %v586_v52 = vpop.permute.xlu1 %585 }
 0x14e   : > { %595 = vst.msk [vmem:[#allocation2 + $0x5c] sm:$0xf] %vm502_vm4, %v586_v52  ;;  %v533_v53 = vpop.permute.xlu0 %532 }
 0x14f   : > { %543 = vst.msk [vmem:[#allocation2 + $0x28] sm:$0xf] %vm502_vm4, %v533_v53 }
 0x155   : > { %v601_v54 = vpop.permute.xlu1 %600 }
 0x156   : > { %611 = vst.msk [vmem:[#allocation2 + $0x68] sm:$0xf] %vm502_vm4, %v601_v54  ;;  %v569_v55 = vpop.permute.xlu0 %568 }
 0x157   : > { %578 = vst.msk [vmem:[#allocation2 + $0x4c] sm:$0xf] %vm502_vm4, %v569_v55 }
 0x15d   : > { %v616_v56 = vpop.permute.xlu1 %615 }
 0x15e   : > { %627 = vst.msk [vmem:[#allocation2 + $0x74] sm:$0xf] %vm502_vm4, %v616_v56  ;;  %v584_v57 = vpop.permute.xlu0 %583 }
 0x15f   : > { %594 = vst.msk [vmem:[#allocation2 + $0x58] sm:$0xf] %vm502_vm4, %v584_v57 }
 0x166   : > { %v620_v58 = vpop.permute.xlu0 %619 }
 0x167   : > { %629 = vst.msk [vmem:[#allocation2 + $0x7c] sm:$0xf] %vm502_vm4, %v620_v58 }
 0x168 PF: > { %p2884_p11 = scmp.ne.s32.totalorder %s3514_s22, 0 }
 0x169   : > { %s3286_s16 = sshll.u32 (!%p2884_p11), %s3510_s21, 7  ;;  %s3545_s12 = smov (!%p2884_p11), 124  }
 0x16a   : > { %633 = sbr.rel (%p2884_p11) target bundleno = 770 (0x302), region = 48  ;;  %s3863_s17 = scalar_lea.vmem (!%p2884_p11), [#allocation3], %s3286_s16 }
 0x16b   : > { %s3546_s19 = smov (!%p2884_p11), 116   ;;  %s3871_s29 = scalar_lea.vmem (!%p2884_p11), [#allocation4], %s3286_s16 }
 0x16c   : > { %s3547_s8 = smov (!%p2884_p11), 112   ;;  %s3548_s9 = smov (!%p2884_p11), 120  }
 0x16d   : > { %s3549_s20 = smov (!%p2884_p11), 104   ;;  %s3550_s15 = smov (!%p2884_p11), 100  }
 0x16e   : > { %s3551_s23 = smov (!%p2884_p11), 108  }
 0x16f   : > { %v2888_v59 = vld [vmem:[%s4439_s2 + $0x38] sm:$0xff]  ;;  %v2887_v61 = vld [vmem:[%s4439_s2 + $0x30] sm:$0xff]  ;;  %v2886_v63 = vld [vmem:[%s4439_s2 + $0x28] sm:$0xff]  ;;  %vm643_vm7 = vcmask 261120   ;;  %v3544_v17 = vmov 0.0   ;;  %vm778_vm10 = vcmask 27648  }
 0x170   : > { %v2900_v60 = vld [vmem:[%s4439_s2 + $0x58] sm:$0xff]  ;;  %668 = vmatpush.msra.mxu0 %v2888_v59  ;;  %v2899_v62 = vld [vmem:[%s4439_s2 + $0x50] sm:$0xff]  ;;  %v2898_v0 = vld [vmem:[%s4439_s2 + $0x48] sm:$0xff]  ;;  %3372 = vmatpush.msra.mxu2 %v2888_v59 }
 0x171   : > { %730 = vmatpush.msra.mxu1 %v2900_v60  ;;  %3376 = vmatpush.msra.mxu3 %v2900_v60  ;;  %v2885_v1 = vld [vmem:[%s4439_s2 + $0x20] sm:$0xff]  ;;  %v636_v4 = vld [vmem:[%s3662_s14 + $0x10] sm:$0xff]  ;;  %v635_v5 = vld [vmem:[%s3662_s14 + $0x8] sm:$0xff] }
 0x172   : > { %669 = vmatpush.msra.mxu0 %v2887_v61  ;;  %v2897_v2 = vld [vmem:[%s4439_s2 + $0x40] sm:$0xff]  ;;  %3373 = vmatpush.msra.mxu2 %v2887_v61  ;;  %v637_v6 = vld [vmem:[%s3662_s14 + $0x18] sm:$0xff] }
 0x173   : > { %731 = vmatpush.msra.mxu1 %v2899_v62  ;;  %3377 = vmatpush.msra.mxu3 %v2899_v62  ;;  %v634_v3 = vld [vmem:[%s3662_s14] sm:$0xff] }
 0x174   : > { %670 = vmatpush.msra.mxu0 %v2886_v63  ;;  %3374 = vmatpush.msra.mxu2 %v2886_v63  ;;  %v3839_v7 = vld [vmem:[%s4440_s3 + $0x1] ss:$0 sm:$0xff]  ;;  %v3844_v8 = vld [vmem:[%s4440_s3 + $0x2] ss:$0 sm:$0xff] }
 0x175   : > { %732 = vmatpush.msra.mxu1 %v2898_v0  ;;  %3378 = vmatpush.msra.mxu3 %v2898_v0  ;;  %v3849_v9 = vld [vmem:[%s4441_s4 + $0x1] ss:$0 sm:$0xff]  ;;  %v3854_v10 = vld [vmem:[%s4441_s4 + $0x2] ss:$0 sm:$0xff] }
 0x176   : > { %671 = vmatpush.msra.mxu0 %v2885_v1  ;;  %3375 = vmatpush.msra.mxu2 %v2885_v1 }
 0x177   : > { %733 = vmatpush.msra.mxu1 %v2897_v2  ;;  %2889 = vmatmul.msk.f32.vlgmr.msra.gmra.mxu0 %vm643_vm7, %v634_v3 }
 0x178   : > { %2901 = vmatmul.msk.f32.vlgmr.msra.gmra.mxu1 %vm643_vm7, %v634_v3  ;;  %3379 = vmatpush.msra.mxu3 %v2897_v2 }
 0x179   : > { %2891 = vmatmul.msk.f32.vlgmr.msra.gmra.mxu2 %vm643_vm7, %v636_v4  ;;  %2903 = vmatmul.msk.f32.vlgmr.msra.gmra.mxu3 %vm643_vm7, %v636_v4 }
 0x17f   : > { %2890 = vmatmul.msk.f32.gmra.mxu0 %vm643_vm7, %v635_v5 }
 0x180   : > { %2902 = vmatmul.msk.f32.gmra.mxu1 %vm643_vm7, %v635_v5 }
 0x181   : > { %2892 = vmatmul.msk.f32.gmra.mxu2 %vm643_vm7, %v637_v6  ;;  %2904 = vmatmul.msk.f32.gmra.mxu3 %vm643_vm7, %v637_v6 }
 0x1f4   : > { %v673_v11 = vpop.f32.mrf.mxu0 }
 0x1f5   : > { %v735_v12 = vpop.f32.mrf.mxu1  ;;  %v687_v13 = vmul.f32 %v3839_v7, %v673_v11 }
 0x1f6   : > { %v749_v14 = vmul.f32 %v3844_v8, %v735_v12 }
 0x1f7   : > { %v693_v15 = vadd.f32 %v3849_v9, %v687_v13 }
 0x1f8   : > { %v755_v16 = vadd.f32 %v3854_v10, %v749_v14 }
 0x1f9   : > { %vm697_vm8 = vcmp.ge.f32.partialorder %v693_v15, 2.0 }
 0x1fa   : > { %vm759_vm9 = vcmp.ge.f32.partialorder %v755_v16, 2.0  ;;  %v2893_v18 = vsel %vm697_vm8, 1.0, %v3544_v17 }
 0x1fb   : > { %v2905_v19 = vsel %vm759_vm9, 1.0, %v3544_v17  ;;  %v709_v20 = vpack.c.bf16 %v2893_v18, %v2893_v18 }
 0x1fc   : > { %v771_v21 = vpack.c.bf16 %v2905_v19, %v2905_v19  ;;  %v679_v22 = vpop.f32.mrf.mxu2  ;;  %v741_v23 = vpop.f32.mrf.mxu3 }
 0x1fd   : > { %779 = vst.msk [vmem:[%s3863_s17] sm:$0xf] %vm778_vm10, %v709_v20  ;;  %871 = vrot.lane.b32.xlu1 %v709_v20, %s3546_s19  ;;  %v689_v24 = vmul.f32 %v3839_v7, %v679_v22  ;;  %v751_v25 = vmul.f32 %v3844_v8, %v741_v23  ;;  %793 = vrot.lane.b32.xlu0 %v709_v20, %s3545_s12  ;;  %v676_v32 = vpop.f32.mrf.mxu0  ;;  %v738_v33 = vpop.f32.mrf.mxu1 }
 0x1fe   : > { %816 = vrot.lane.b32.xlu2 %v771_v21, %s3545_s12  ;;  %785 = vst.msk [vmem:[%s3871_s29] sm:$0xf] %vm778_vm10, %v771_v21  ;;  %v688_v34 = vmul.f32 %v3839_v7, %v676_v32  ;;  %v750_v35 = vmul.f32 %v3844_v8, %v738_v33 }
 0x1ff   : > { %v695_v26 = vadd.f32 %v3849_v9, %v689_v24  ;;  %v757_v27 = vadd.f32 %v3854_v10, %v751_v25 }
 0x200   : > { %v694_v36 = vadd.f32 %v3849_v9, %v688_v34  ;;  %v756_v37 = vadd.f32 %v3854_v10, %v750_v35 }
 0x201   : > { %vm699_vm11 = vcmp.ge.f32.partialorder %v695_v26, 2.0  ;;  %vm761_vm12 = vcmp.ge.f32.partialorder %v757_v27, 2.0 }
 0x202   : > { %v2895_v28 = vsel %vm699_vm11, 1.0, %v3544_v17  ;;  %v2907_v29 = vsel %vm761_vm12, 1.0, %v3544_v17  ;;  %vm698_vm13 = vcmp.ge.f32.partialorder %v694_v36, 2.0  ;;  %vm760_vm14 = vcmp.ge.f32.partialorder %v756_v37, 2.0 }
 0x203   : > { %v711_v30 = vpack.c.bf16 %v2895_v28, %v2895_v28  ;;  %v3880_v31 = vpack.c.bf16 %v2907_v29, %v2907_v29  ;;  %v2894_v38 = vsel %vm698_vm13, 1.0, %v3544_v17  ;;  %v2906_v39 = vsel %vm760_vm14, 1.0, %v3544_v17 }
 0x204   : > { %v710_v40 = vpack.c.bf16 %v2894_v38, %v2894_v38  ;;  %v3904_v41 = vpack.c.bf16 %v2906_v39, %v2906_v39  ;;  %v682_v42 = vpop.f32.mrf.mxu2  ;;  %v744_v47 = vpop.f32.mrf.mxu3 }
 0x205   : > { %927 = vrot.lane.b32.xlu1 %v771_v21, %s3547_s8  ;;  %781 = vst.msk [vmem:[%s3863_s17 + $0x8] sm:$0xf] %vm778_vm10, %v711_v30  ;;  %853 = vrot.lane.b32.xlu0 %v771_v21, %s3548_s9  ;;  %v690_v43 = vmul.f32 %v3839_v7, %v682_v42  ;;  %v752_v48 = vmul.f32 %v3844_v8, %v744_v47 }
 0x206   : > { %834 = vrot.lane.b32.xlu2 %v709_v20, %s3548_s9  ;;  %787 = vst.msk [vmem:[%s3871_s29 + $0x8] sm:$0xf] %vm778_vm10, %v3880_v31 }
 0x207   : > { %780 = vst.msk [vmem:[%s3863_s17 + $0x4] sm:$0xf] %vm778_vm10, %v710_v40  ;;  %v696_v44 = vadd.f32 %v3849_v9, %v690_v43  ;;  %v758_v49 = vadd.f32 %v3854_v10, %v752_v48 }
 0x208   : > { %786 = vst.msk [vmem:[%s3871_s29 + $0x4] sm:$0xf] %vm778_vm10, %v3904_v41 }
 0x209   : > { %vm700_vm15 = vcmp.ge.f32.partialorder %v696_v44, 2.0  ;;  %vm762_vm0 = vcmp.ge.f32.partialorder %v758_v49, 2.0 }
 0x20a   : > { %v2896_v45 = vsel %vm700_vm15, 1.0, %v3544_v17  ;;  %v2908_v50 = vsel %vm762_vm0, 1.0, %v3544_v17 }
 0x20b   : > { %v712_v46 = vpack.c.bf16 %v2896_v45, %v2896_v45  ;;  %v774_v51 = vpack.c.bf16 %v2908_v50, %v2908_v50 }
 0x20d   : > { %982 = vrot.lane.b32.xlu1 %v709_v20, %s3549_s20  ;;  %908 = vrot.lane.b32.xlu0 %v709_v20, %s3547_s8  ;;  %782 = vst.msk [vmem:[%s3863_s17 + $0xc] sm:$0xf] %vm778_vm10, %v712_v46 }
 0x20e   : > { %890 = vrot.lane.b32.xlu2 %v771_v21, %s3546_s19  ;;  %788 = vst.msk [vmem:[%s3871_s29 + $0xc] sm:$0xf] %vm778_vm10, %v774_v51 }
 0x215   : > { %1038 = vrot.lane.b32.xlu1 %v771_v21, %s3550_s15  ;;  %964 = vrot.lane.b32.xlu0 %v771_v21, %s3551_s23 }
 0x216   : > { %945 = vrot.lane.b32.xlu2 %v709_v20, %s3551_s23 }
 0x21d   : > { %797 = vrot.lane.b32.xlu1 %v711_v30, %s3545_s12  ;;  %1019 = vrot.lane.b32.xlu0 %v709_v20, %s3550_s15 }
 0x21e   : > { %1001 = vrot.lane.b32.xlu2 %v771_v21, %s3549_s20 }
 0x225   : > { %838 = vrot.lane.b32.xlu1 %v711_v30, %s3548_s9  ;;  %820 = vrot.lane.b32.xlu0 %v3880_v31, %s3545_s12 }
 0x226   : > { %857 = vrot.lane.b32.xlu2 %v3880_v31, %s3548_s9 }
 0x22d   : > { %894 = vrot.lane.b32.xlu1 %v3880_v31, %s3546_s19  ;;  %875 = vrot.lane.b32.xlu0 %v711_v30, %s3546_s19 }
 0x22e   : > { %912 = vrot.lane.b32.xlu2 %v711_v30, %s3547_s8 }
 0x235   : > { %949 = vrot.lane.b32.xlu1 %v711_v30, %s3551_s23  ;;  %931 = vrot.lane.b32.xlu0 %v3880_v31, %s3547_s8 }
 0x236   : > { %968 = vrot.lane.b32.xlu2 %v3880_v31, %s3551_s23 }
 0x23d   : > { %1005 = vrot.lane.b32.xlu1 %v3880_v31, %s3549_s20  ;;  %986 = vrot.lane.b32.xlu0 %v711_v30, %s3549_s20 }
 0x23e   : > { %1023 = vrot.lane.b32.xlu2 %v711_v30, %s3550_s15 }
 0x245   : > { %855 = vrot.lane.b32.xlu1 %v3904_v41, %s3548_s9  ;;  %795 = vrot.lane.b32.xlu0 %v710_v40, %s3545_s12 }
 0x246   : > { %818 = vrot.lane.b32.xlu2 %v3904_v41, %s3545_s12 }
 0x24d   : > { %910 = vrot.lane.b32.xlu1 %v710_v40, %s3547_s8  ;;  %836 = vrot.lane.b32.xlu0 %v710_v40, %s3548_s9 }
 0x24e   : > { %873 = vrot.lane.b32.xlu2 %v710_v40, %s3546_s19 }
 0x255   : > { %966 = vrot.lane.b32.xlu1 %v3904_v41, %s3551_s23  ;;  %892 = vrot.lane.b32.xlu0 %v3904_v41, %s3546_s19 }
 0x256   : > { %929 = vrot.lane.b32.xlu2 %v3904_v41, %s3547_s8 }
 0x258   : > { %v817_v52 = vpop.permute.xlu2 %816 }
 0x259   : > { %2920 = vst.msk [vmem:[%s3871_s29 + $0x10] sm:$0xf] %vm778_vm10, %v817_v52 }
 0x25d   : > { %1021 = vrot.lane.b32.xlu1 %v710_v40, %s3550_s15  ;;  %947 = vrot.lane.b32.xlu0 %v710_v40, %s3551_s23 }
 0x25e   : > { %984 = vrot.lane.b32.xlu2 %v710_v40, %s3549_s20 }
 0x260   : > { %v835_v53 = vpop.permute.xlu2 %834 }
 0x261   : > { %2926 = vst.msk [vmem:[%s3863_s17 + $0x20] sm:$0xf] %vm778_vm10, %v835_v53 }
 0x265   : > { %799 = vrot.lane.b32.xlu1 %v712_v46, %s3545_s12  ;;  %1003 = vrot.lane.b32.xlu0 %v3904_v41, %s3549_s20 }
 0x266   : > { %840 = vrot.lane.b32.xlu2 %v712_v46, %s3548_s9 }
 0x268   : > { %v891_v54 = vpop.permute.xlu2 %890 }
 0x269   : > { %2944 = vst.msk [vmem:[%s3871_s29 + $0x30] sm:$0xf] %vm778_vm10, %v891_v54 }
 0x26d   : > { %822 = vrot.lane.b32.xlu1 %v774_v51, %s3545_s12  ;;  %859 = vrot.lane.b32.xlu0 %v774_v51, %s3548_s9 }
 0x26e   : > { %896 = vrot.lane.b32.xlu2 %v774_v51, %s3546_s19 }
 0x26f   : > { %v872_v55 = vpop.permute.xlu1 %871  ;;  %v794_v57 = vpop.permute.xlu0 %793 }
 0x270   : > { %v946_v56 = vpop.permute.xlu2 %945  ;;  %2938 = vst.msk [vmem:[%s3863_s17 + $0x30] sm:$0xf] %vm778_vm10, %v872_v55 }
 0x271   : > { %2962 = vst.msk [vmem:[%s3863_s17 + $0x50] sm:$0xf] %vm778_vm10, %v946_v56 }
 0x272   : > { %2914 = vst.msk [vmem:[%s3863_s17 + $0x10] sm:$0xf] %vm778_vm10, %v794_v57 }
 0x275   : > { %877 = vrot.lane.b32.xlu1 %v712_v46, %s3546_s19  ;;  %914 = vrot.lane.b32.xlu0 %v712_v46, %s3547_s8 }
 0x276   : > { %951 = vrot.lane.b32.xlu2 %v712_v46, %s3551_s23 }
 0x277   : > { %v928_v58 = vpop.permute.xlu1 %927  ;;  %v854_v60 = vpop.permute.xlu0 %853 }
 0x278   : > { %v1002_v59 = vpop.permute.xlu2 %1001  ;;  %2956 = vst.msk [vmem:[%s3871_s29 + $0x40] sm:$0xf] %vm778_vm10, %v928_v58 }
 0x279   : > { %2980 = vst.msk [vmem:[%s3871_s29 + $0x60] sm:$0xf] %vm778_vm10, %v1002_v59 }
 0x27a   : > { %2932 = vst.msk [vmem:[%s3871_s29 + $0x20] sm:$0xf] %vm778_vm10, %v854_v60 }
 0x27d   : > { %933 = vrot.lane.b32.xlu1 %v774_v51, %s3547_s8  ;;  %970 = vrot.lane.b32.xlu0 %v774_v51, %s3551_s23 }
 0x27e   : > { %1007 = vrot.lane.b32.xlu2 %v774_v51, %s3549_s20 }
 0x27f   : > { %v983_v61 = vpop.permute.xlu1 %982  ;;  %v909_v63 = vpop.permute.xlu0 %908 }
 0x280   : > { %v858_v62 = vpop.permute.xlu2 %857  ;;  %2974 = vst.msk [vmem:[%s3863_s17 + $0x60] sm:$0xf] %vm778_vm10, %v983_v61 }
 0x281   : > { %2934 = vst.msk [vmem:[%s3871_s29 + $0x28] sm:$0xf] %vm778_vm10, %v858_v62 }
 0x282   : > { %2950 = vst.msk [vmem:[%s3863_s17 + $0x40] sm:$0xf] %vm778_vm10, %v909_v63 }
 0x285   : > { %988 = vrot.lane.b32.xlu1 %v712_v46, %s3549_s20  ;;  %1025 = vrot.lane.b32.xlu0 %v712_v46, %s3550_s15 }
 0x286   : > { %1040 = vrot.lane.b32.xlu2 %v3904_v41, %s3550_s15 }
 0x287   : > { %v1039_v0 = vpop.permute.xlu1 %1038  ;;  %v965_v2 = vpop.permute.xlu0 %964 }
 0x288   : > { %v913_v1 = vpop.permute.xlu2 %912  ;;  %2992 = vst.msk [vmem:[%s3871_s29 + $0x70] sm:$0xf] %vm778_vm10, %v1039_v0 }
 0x289   : > { %2952 = vst.msk [vmem:[%s3863_s17 + $0x48] sm:$0xf] %vm778_vm10, %v913_v1 }
 0x28a   : > { %2968 = vst.msk [vmem:[%s3871_s29 + $0x50] sm:$0xf] %vm778_vm10, %v965_v2 }
 0x28d   : > { %1044 = vrot.lane.b32.xlu1 %v774_v51, %s3550_s15  ;;  %1042 = vrot.lane.b32.xlu0 %v3880_v31, %s3550_s15 }
 0x28f   : > { %v798_v3 = vpop.permute.xlu1 %797  ;;  %v1020_v5 = vpop.permute.xlu0 %1019 }
 0x290   : > { %v969_v4 = vpop.permute.xlu2 %968  ;;  %2916 = vst.msk [vmem:[%s3863_s17 + $0x18] sm:$0xf] %vm778_vm10, %v798_v3 }
 0x291   : > { %2970 = vst.msk [vmem:[%s3871_s29 + $0x58] sm:$0xf] %vm778_vm10, %v969_v4 }
 0x292   : > { %2986 = vst.msk [vmem:[%s3863_s17 + $0x70] sm:$0xf] %vm778_vm10, %v1020_v5 }
 0x297   : > { %v839_v6 = vpop.permute.xlu1 %838  ;;  %v821_v8 = vpop.permute.xlu0 %820 }
 0x298   : > { %v1024_v7 = vpop.permute.xlu2 %1023  ;;  %2928 = vst.msk [vmem:[%s3863_s17 + $0x28] sm:$0xf] %vm778_vm10, %v839_v6 }
 0x299   : > { %2988 = vst.msk [vmem:[%s3863_s17 + $0x78] sm:$0xf] %vm778_vm10, %v1024_v7 }
 0x29a   : > { %2922 = vst.msk [vmem:[%s3871_s29 + $0x18] sm:$0xf] %vm778_vm10, %v821_v8 }
 0x29f   : > { %v895_v9 = vpop.permute.xlu1 %894  ;;  %v876_v11 = vpop.permute.xlu0 %875 }
 0x2a0   : > { %v819_v10 = vpop.permute.xlu2 %818  ;;  %2946 = vst.msk [vmem:[%s3871_s29 + $0x38] sm:$0xf] %vm778_vm10, %v895_v9 }
 0x2a1   : > { %2921 = vst.msk [vmem:[%s3871_s29 + $0x14] sm:$0xf] %vm778_vm10, %v819_v10 }
 0x2a2   : > { %2940 = vst.msk [vmem:[%s3863_s17 + $0x38] sm:$0xf] %vm778_vm10, %v876_v11 }
 0x2a7   : > { %v950_v12 = vpop.permute.xlu1 %949  ;;  %v932_v14 = vpop.permute.xlu0 %931 }
 0x2a8   : > { %v874_v13 = vpop.permute.xlu2 %873  ;;  %2964 = vst.msk [vmem:[%s3863_s17 + $0x58] sm:$0xf] %vm778_vm10, %v950_v12 }
 0x2a9   : > { %2958 = vst.msk [vmem:[%s3871_s29 + $0x48] sm:$0xf] %vm778_vm10, %v932_v14 }
 0x2aa   : > { %2939 = vst.msk [vmem:[%s3863_s17 + $0x34] sm:$0xf] %vm778_vm10, %v874_v13 }
 0x2af   : > { %v1006_v15 = vpop.permute.xlu1 %1005  ;;  %v987_v17 = vpop.permute.xlu0 %986 }
 0x2b0   : > { %v930_v16 = vpop.permute.xlu2 %929  ;;  %2982 = vst.msk [vmem:[%s3871_s29 + $0x68] sm:$0xf] %vm778_vm10, %v1006_v15 }
 0x2b1   : > { %2976 = vst.msk [vmem:[%s3863_s17 + $0x68] sm:$0xf] %vm778_vm10, %v987_v17 }
 0x2b2   : > { %2957 = vst.msk [vmem:[%s3871_s29 + $0x44] sm:$0xf] %vm778_vm10, %v930_v16 }
 0x2b7   : > { %v856_v18 = vpop.permute.xlu1 %855  ;;  %v796_v20 = vpop.permute.xlu0 %795 }
 0x2b8   : > { %v985_v19 = vpop.permute.xlu2 %984  ;;  %2933 = vst.msk [vmem:[%s3871_s29 + $0x24] sm:$0xf] %vm778_vm10, %v856_v18 }
 0x2b9   : > { %2975 = vst.msk [vmem:[%s3863_s17 + $0x64] sm:$0xf] %vm778_vm10, %v985_v19 }
 0x2ba   : > { %2915 = vst.msk [vmem:[%s3863_s17 + $0x14] sm:$0xf] %vm778_vm10, %v796_v20 }
 0x2bf   : > { %v911_v21 = vpop.permute.xlu1 %910  ;;  %v837_v23 = vpop.permute.xlu0 %836 }
 0x2c0   : > { %v841_v22 = vpop.permute.xlu2 %840  ;;  %2951 = vst.msk [vmem:[%s3863_s17 + $0x44] sm:$0xf] %vm778_vm10, %v911_v21 }
 0x2c1   : > { %2929 = vst.msk [vmem:[%s3863_s17 + $0x2c] sm:$0xf] %vm778_vm10, %v841_v22 }
 0x2c2   : > { %2927 = vst.msk [vmem:[%s3863_s17 + $0x24] sm:$0xf] %vm778_vm10, %v837_v23 }
 0x2c7   : > { %v967_v24 = vpop.permute.xlu1 %966  ;;  %v893_v26 = vpop.permute.xlu0 %892 }
 0x2c8   : > { %v897_v25 = vpop.permute.xlu2 %896  ;;  %2969 = vst.msk [vmem:[%s3871_s29 + $0x54] sm:$0xf] %vm778_vm10, %v967_v24 }
 0x2c9   : > { %2947 = vst.msk [vmem:[%s3871_s29 + $0x3c] sm:$0xf] %vm778_vm10, %v897_v25 }
 0x2ca   : > { %2945 = vst.msk [vmem:[%s3871_s29 + $0x34] sm:$0xf] %vm778_vm10, %v893_v26 }
 0x2cf   : > { %v1022_v27 = vpop.permute.xlu1 %1021  ;;  %v948_v29 = vpop.permute.xlu0 %947 }
 0x2d0   : > { %v952_v28 = vpop.permute.xlu2 %951  ;;  %2987 = vst.msk [vmem:[%s3863_s17 + $0x74] sm:$0xf] %vm778_vm10, %v1022_v27 }
 0x2d1   : > { %2965 = vst.msk [vmem:[%s3863_s17 + $0x5c] sm:$0xf] %vm778_vm10, %v952_v28 }
 0x2d2   : > { %2963 = vst.msk [vmem:[%s3863_s17 + $0x54] sm:$0xf] %vm778_vm10, %v948_v29 }
 0x2d7   : > { %v800_v30 = vpop.permute.xlu1 %799  ;;  %v1004_v32 = vpop.permute.xlu0 %1003 }
 0x2d8   : > { %v1008_v31 = vpop.permute.xlu2 %1007  ;;  %2917 = vst.msk [vmem:[%s3863_s17 + $0x1c] sm:$0xf] %vm778_vm10, %v800_v30 }
 0x2d9   : > { %2983 = vst.msk [vmem:[%s3871_s29 + $0x6c] sm:$0xf] %vm778_vm10, %v1008_v31 }
 0x2da   : > { %2981 = vst.msk [vmem:[%s3871_s29 + $0x64] sm:$0xf] %vm778_vm10, %v1004_v32 }
 0x2df   : > { %v823_v33 = vpop.permute.xlu1 %822  ;;  %v860_v35 = vpop.permute.xlu0 %859 }
 0x2e0   : > { %v1041_v34 = vpop.permute.xlu2 %1040  ;;  %2923 = vst.msk [vmem:[%s3871_s29 + $0x1c] sm:$0xf] %vm778_vm10, %v823_v33 }
 0x2e1   : > { %2993 = vst.msk [vmem:[%s3871_s29 + $0x74] sm:$0xf] %vm778_vm10, %v1041_v34 }
 0x2e2   : > { %2935 = vst.msk [vmem:[%s3871_s29 + $0x2c] sm:$0xf] %vm778_vm10, %v860_v35 }
 0x2e7   : > { %v878_v36 = vpop.permute.xlu1 %877  ;;  %v915_v37 = vpop.permute.xlu0 %914 }
 0x2e8   : > { %2941 = vst.msk [vmem:[%s3863_s17 + $0x3c] sm:$0xf] %vm778_vm10, %v878_v36 }
 0x2e9   : > { %2953 = vst.msk [vmem:[%s3863_s17 + $0x4c] sm:$0xf] %vm778_vm10, %v915_v37 }
 0x2ef   : > { %v934_v38 = vpop.permute.xlu1 %933  ;;  %v971_v39 = vpop.permute.xlu0 %970 }
 0x2f0   : > { %2959 = vst.msk [vmem:[%s3871_s29 + $0x4c] sm:$0xf] %vm778_vm10, %v934_v38 }
 0x2f1   : > { %2971 = vst.msk [vmem:[%s3871_s29 + $0x5c] sm:$0xf] %vm778_vm10, %v971_v39 }
 0x2f7   : > { %v989_v40 = vpop.permute.xlu1 %988  ;;  %v1026_v41 = vpop.permute.xlu0 %1025 }
 0x2f8   : > { %2977 = vst.msk [vmem:[%s3863_s17 + $0x6c] sm:$0xf] %vm778_vm10, %v989_v40 }
 0x2f9   : > { %2989 = vst.msk [vmem:[%s3863_s17 + $0x7c] sm:$0xf] %vm778_vm10, %v1026_v41 }
 0x2ff   : > { %v1045_v42 = vpop.permute.xlu1 %1044  ;;  %v1043_v43 = vpop.permute.xlu0 %1042 }
 0x300   : > { %2995 = vst.msk [vmem:[%s3871_s29 + $0x7c] sm:$0xf] %vm778_vm10, %v1045_v42 }
 0x301   : > { %2994 = vst.msk [vmem:[%s3871_s29 + $0x78] sm:$0xf] %vm778_vm10, %v1043_v43 }
 0x302 PF: > { %s3318_s7 = sshll.u32 %s3510_s21, 7  ;;  %vm1177_vm1 = vcmask 31744   ;;  %v3302_v4 = vld [vmem:[#allocation2] sm:$0xff]  ;;  %v3304_v5 = vld [vmem:[#allocation2 + $0x10] sm:$0xff]  ;;  %v3303_v16 = vld [vmem:[#allocation2 + $0x8] sm:$0xff]  ;;  %vm1684_vm2 = vcmask 261120  }
 0x303   : > { %s4092_s10 = scalar_lea.vmem [#allocation3], %s3318_s7  ;;  %v3306_v6 = vld [vmem:[#allocation2 + $0x20] sm:$0xff]  ;;  %v3308_v9 = vld [vmem:[#allocation2 + $0x30] sm:$0xff]  ;;  %v3305_v17 = vld [vmem:[#allocation2 + $0x18] sm:$0xff]  ;;  %s4136_s14 = scalar_lea.vmem [#allocation4], %s3318_s7 }
 0x304   : > { %v3320_v44 = vld [vmem:[%s4092_s10 + $0x8] sm:$0xff]  ;;  %v3322_v45 = vld [vmem:[%s4092_s10 + $0x18] sm:$0xff]  ;;  %v3319_v52 = vld [vmem:[%s4092_s10] sm:$0xff]  ;;  %p3223_p12 = scmp.ne.s32.totalorder %s3510_s21, 1 }
 0x305   : > { %v3324_v46 = vld [vmem:[%s4092_s10 + $0x28] sm:$0xff]  ;;  %v3326_v47 = vld [vmem:[%s4092_s10 + $0x38] sm:$0xff]  ;;  %v1188_v48 = vsel %vm1177_vm1, %v3320_v44, 0  ;;  %v1239_v49 = vsel %vm1177_vm1, %v3322_v45, 0  ;;  %v3321_v53 = vld [vmem:[%s4092_s10 + $0x10] sm:$0xff]  ;;  %v1185_v60 = vsel %vm1177_vm1, %v3319_v52, 0 }
 0x306   : > { %v1290_v50 = vsel %vm1177_vm1, %v3324_v46, 0  ;;  %1196 = vmatpush.bf16.xpose.msra.mxu0 %v1188_v48  ;;  %1247 = vmatpush.bf16.xpose.msra.mxu1 %v1239_v49  ;;  %v1341_v51 = vsel %vm1177_vm1, %v3326_v47, 0  ;;  %v3323_v54 = vld [vmem:[%s4092_s10 + $0x20] sm:$0xff]  ;;  %v3325_v55 = vld [vmem:[%s4092_s10 + $0x30] sm:$0xff]  ;;  %v3332_v56 = vld [vmem:[%s4092_s10 + $0x68] sm:$0xff]  ;;  %v1236_v61 = vsel %vm1177_vm1, %v3321_v53, 0 }
 0x307   : > { %1298 = vmatpush.bf16.xpose.msra.mxu2 %v1290_v50  ;;  %1349 = vmatpush.bf16.xpose.msra.mxu3 %v1341_v51  ;;  %v3334_v57 = vld [vmem:[%s4092_s10 + $0x78] sm:$0xff]  ;;  %v3328_v58 = vld [vmem:[%s4092_s10 + $0x48] sm:$0xff]  ;;  %v1287_v62 = vsel %vm1177_vm1, %v3323_v54, 0  ;;  %v1338_v63 = vsel %vm1177_vm1, %v3325_v55, 0  ;;  %v1494_v0 = vsel %vm1177_vm1, %v3332_v56, 0  ;;  %v3331_v7 = vld [vmem:[%s4092_s10 + $0x60] sm:$0xff] }
 0x308   : > { %v3330_v59 = vld [vmem:[%s4092_s10 + $0x58] sm:$0xff]  ;;  %v1545_v1 = vsel %vm1177_vm1, %v3334_v57, 0  ;;  %v1392_v2 = vsel %vm1177_vm1, %v3328_v58, 0  ;;  %v3333_v8 = vld [vmem:[%s4092_s10 + $0x70] sm:$0xff]  ;;  %v3327_v10 = vld [vmem:[%s4092_s10 + $0x40] sm:$0xff]  ;;  %v1491_v12 = vsel %vm1177_vm1, %v3331_v7, 0 }
 0x309   : > { %v1443_v3 = vsel %vm1177_vm1, %v3330_v59, 0  ;;  %v3329_v11 = vld [vmem:[%s4092_s10 + $0x50] sm:$0xff]  ;;  %v1542_v13 = vsel %vm1177_vm1, %v3333_v8, 0  ;;  %v1389_v14 = vsel %vm1177_vm1, %v3327_v10, 0  ;;  %v3307_v18 = vld [vmem:[#allocation2 + $0x28] sm:$0xff]  ;;  %v3309_v19 = vld [vmem:[#allocation2 + $0x38] sm:$0xff] }
 0x30a   : > { %v1440_v15 = vsel %vm1177_vm1, %v3329_v11, 0  ;;  %v3341_v20 = vld [vmem:[%s4136_s14 + $0x28] sm:$0xff]  ;;  %v3343_v21 = vld [vmem:[%s4136_s14 + $0x38] sm:$0xff]  ;;  %v3310_v24 = vld [vmem:[#allocation2 + $0x40] sm:$0xff]  ;;  %s3552_s13 = smov (!%p3223_p12), 4   ;;  %s3553_s11 = smov (!%p3223_p12), 8  }
 0x30b   : > { %v3337_v22 = vld [vmem:[%s4136_s14 + $0x8] sm:$0xff]  ;;  %v3339_v23 = vld [vmem:[%s4136_s14 + $0x18] sm:$0xff]  ;;  %v3312_v25 = vld [vmem:[#allocation2 + $0x50] sm:$0xff]  ;;  %s3554_s16 = smov (!%p3223_p12), 12   ;;  %s3555_s21 = smov (!%p3223_p12), 16  }
 0x30c   : > { %v3314_v26 = vld [vmem:[#allocation2 + $0x60] sm:$0xff]  ;;  %v3316_v27 = vld [vmem:[#allocation2 + $0x70] sm:$0xff]  ;;  %v3311_v28 = vld [vmem:[#allocation2 + $0x48] sm:$0xff]  ;;  %s3556_s17 = smov (!%p3223_p12), 20   ;;  %s3557_s12 = smov (!%p3223_p12), 24  }
 0x30d   : > { %v3313_v29 = vld [vmem:[#allocation2 + $0x58] sm:$0xff]  ;;  %v3315_v30 = vld [vmem:[#allocation2 + $0x68] sm:$0xff]  ;;  %v3340_v32 = vld [vmem:[%s4136_s14 + $0x20] sm:$0xff]  ;;  %s3558_s19 = smov (!%p3223_p12), 28   ;;  %s3352_s29 = sshll.u32 (!%p3223_p12), %s3514_s22, 7 }
 0x30e   : > { %1197 = vmatpush.bf16.xpose.msra.mxu0 %v1185_v60  ;;  %1248 = vmatpush.bf16.xpose.msra.mxu1 %v1236_v61  ;;  %v3317_v31 = vld [vmem:[#allocation2 + $0x78] sm:$0xff]  ;;  %v3342_v33 = vld [vmem:[%s4136_s14 + $0x30] sm:$0xff]  ;;  %v3336_v34 = vld [vmem:[%s4136_s14] sm:$0xff]  ;;  %s4242_s8 = scalar_lea.vmem (!%p3223_p12), [#allocation4], %s3352_s29 }
 0x30f   : > { %1299 = vmatpush.bf16.xpose.msra.mxu2 %v1287_v62  ;;  %1350 = vmatpush.bf16.xpose.msra.mxu3 %v1338_v63  ;;  %v3338_v35 = vld [vmem:[%s4136_s14 + $0x10] sm:$0xff]  ;;  %v3349_v36 = vld [vmem:[%s4136_s14 + $0x68] sm:$0xff]  ;;  %v3351_v37 = vld [vmem:[%s4136_s14 + $0x78] sm:$0xff] }
 0x310   : > { %v3345_v38 = vld [vmem:[%s4136_s14 + $0x48] sm:$0xff]  ;;  %v3347_v39 = vld [vmem:[%s4136_s14 + $0x58] sm:$0xff]  ;;  %v3348_v58 = vld [vmem:[%s4136_s14 + $0x60] sm:$0xff] }
 0x311   : > { %v3350_v59 = vld [vmem:[%s4136_s14 + $0x70] sm:$0xff]  ;;  %v3344_v62 = vld [vmem:[%s4136_s14 + $0x40] sm:$0xff] }
 0x312   : > { %v3346_v63 = vld [vmem:[%s4136_s14 + $0x50] sm:$0xff] }
 0x315   : > { %3015 = vmatmul.msk.bf16.vlgmr.msra.gmra.mxu0 %vm1177_vm1, %v3302_v4  ;;  %3033 = vmatmul.msk.bf16.vlgmr.msra.gmra.mxu1 %vm1177_vm1, %v3304_v5 }
 0x316   : > { %1400 = vmatpush.bf16.xpose.msrb.mxu0 %v1392_v2  ;;  %1451 = vmatpush.bf16.xpose.msrb.mxu1 %v1443_v3 }
 0x317   : > { %1502 = vmatpush.bf16.xpose.msrb.mxu2 %v1494_v0  ;;  %1553 = vmatpush.bf16.xpose.msrb.mxu3 %v1545_v1 }
 0x318   : > { %3051 = vmatmul.msk.bf16.vlgmr.msra.gmra.mxu2 %vm1177_vm1, %v3306_v6  ;;  %3069 = vmatmul.msk.bf16.vlgmr.msra.gmra.mxu3 %vm1177_vm1, %v3308_v9 }
 0x31e   : > { %1401 = vmatpush.bf16.xpose.msrb.mxu0 %v1389_v14  ;;  %1452 = vmatpush.bf16.xpose.msrb.mxu1 %v1440_v15 }
 0x31f   : > { %1503 = vmatpush.bf16.xpose.msrb.mxu2 %v1491_v12  ;;  %1554 = vmatpush.bf16.xpose.msrb.mxu3 %v1542_v13 }
 0x325   : > { %3016 = vmatmul.msk.bf16.gmra.mxu0 %vm1177_vm1, %v3303_v16  ;;  %3034 = vmatmul.msk.bf16.gmra.mxu1 %vm1177_vm1, %v3305_v17 }
 0x326   : > { %1697 = vmatpush.bf16.msra.mxu0 %v3337_v22  ;;  %1744 = vmatpush.bf16.msra.mxu1 %v3339_v23 }
 0x327   : > { %1791 = vmatpush.bf16.msra.mxu2 %v3341_v20  ;;  %1838 = vmatpush.bf16.msra.mxu3 %v3343_v21 }
 0x328   : > { %3052 = vmatmul.msk.bf16.gmra.mxu2 %vm1177_vm1, %v3307_v18  ;;  %3070 = vmatmul.msk.bf16.gmra.mxu3 %vm1177_vm1, %v3309_v19 }
 0x32a   : > { %1698 = vmatpush.bf16.msra.mxu0 %v3336_v34  ;;  %1745 = vmatpush.bf16.msra.mxu1 %v3338_v35 }
 0x32b   : > { %1792 = vmatpush.bf16.msra.mxu2 %v3340_v32  ;;  %1839 = vmatpush.bf16.msra.mxu3 %v3342_v33 }
 0x335   : > { %3087 = vmatmul.msk.bf16.vlgmr.msrb.gmra.mxu0 %vm1177_vm1, %v3310_v24  ;;  %3105 = vmatmul.msk.bf16.vlgmr.msrb.gmra.mxu1 %vm1177_vm1, %v3312_v25 }
 0x336   : > { %1885 = vmatpush.bf16.msrb.mxu0 %v3345_v38  ;;  %1932 = vmatpush.bf16.msrb.mxu1 %v3347_v39 }
 0x338   : > { %3123 = vmatmul.msk.bf16.vlgmr.msrb.gmra.mxu2 %vm1177_vm1, %v3314_v26  ;;  %3141 = vmatmul.msk.bf16.vlgmr.msrb.gmra.mxu3 %vm1177_vm1, %v3316_v27 }
 0x339   : > { %1979 = vmatpush.bf16.msrb.mxu2 %v3349_v36  ;;  %2026 = vmatpush.bf16.msrb.mxu3 %v3351_v37 }
 0x33a   : > { %1886 = vmatpush.bf16.msrb.mxu0 %v3344_v62  ;;  %1933 = vmatpush.bf16.msrb.mxu1 %v3346_v63 }
 0x33d   : > { %1980 = vmatpush.bf16.msrb.mxu2 %v3348_v58  ;;  %2027 = vmatpush.bf16.msrb.mxu3 %v3350_v59 }
 0x345   : > { %3088 = vmatmul.msk.bf16.gmra.mxu0 %vm1177_vm1, %v3311_v28  ;;  %3106 = vmatmul.msk.bf16.gmra.mxu1 %vm1177_vm1, %v3313_v29 }
 0x348   : > { %3124 = vmatmul.msk.bf16.gmra.mxu2 %vm1177_vm1, %v3315_v30  ;;  %3142 = vmatmul.msk.bf16.gmra.mxu3 %vm1177_vm1, %v3317_v31 }
 0x392   : > { %v1199_v40 = vpop.f32.mrf.mxu0  ;;  %v1250_v41 = vpop.f32.mrf.mxu1 }
 0x393   : > { %v1566_v42 = vmul.f32 0.125, %v1199_v40  ;;  %v1570_v43 = vmul.f32 0.125, %v1250_v41 }
 0x395   : > { %v1598_v44 = vpack.c.bf16 %v1566_v42, %v1566_v42  ;;  %v1602_v45 = vpack.c.bf16 %v1570_v43, %v1570_v43 }
 0x397   : > { %v1666_v52 = vunpack.c.l.b16 %v1598_v44  ;;  %v1714_v53 = vunpack.c.l.b16 %v1602_v45 }
 0x39a   : > { %v1201_v48 = vpop.f32.mrf.mxu0  ;;  %v1252_v49 = vpop.f32.mrf.mxu1 }
 0x39b   : > { %v1301_v46 = vpop.f32.mrf.mxu2  ;;  %v1352_v47 = vpop.f32.mrf.mxu3  ;;  %v1567_v50 = vmul.f32 0.125, %v1201_v48  ;;  %v1571_v51 = vmul.f32 0.125, %v1252_v49 }
 0x39c   : > { %v1574_v56 = vmul.f32 0.125, %v1301_v46  ;;  %v1578_v57 = vmul.f32 0.125, %v1352_v47 }
 0x39d   : > { %v1599_v54 = vpack.c.bf16 %v1567_v50, %v1567_v50  ;;  %v1603_v55 = vpack.c.bf16 %v1571_v51, %v1571_v51 }
 0x39e   : > { %v1606_v4 = vpack.c.bf16 %v1574_v56, %v1574_v56  ;;  %v1610_v5 = vpack.c.bf16 %v1578_v57, %v1578_v57 }
 0x39f   : > { %v1667_v60 = vunpack.c.l.b16 %v1599_v54  ;;  %v1715_v61 = vunpack.c.l.b16 %v1603_v55 }
 0x3a0   : > { %v1761_v14 = vunpack.c.l.b16 %v1606_v4  ;;  %v1808_v15 = vunpack.c.l.b16 %v1610_v5 }
 0x3a1   : > { %v1670_v0 = vpack.c.b16 %v1667_v60, %v1666_v52  ;;  %v1718_v1 = vpack.c.b16 %v1715_v61, %v1714_v53 }
 0x3a2   : > { %v1204_v8 = vpop.f32.mrf.mxu0  ;;  %v1255_v9 = vpop.f32.mrf.mxu1 }
 0x3a3   : > { %v1303_v2 = vpop.f32.mrf.mxu2  ;;  %v1354_v3 = vpop.f32.mrf.mxu3  ;;  %3151 = vmatmul.msk.bf16.vlgmr.msra.gmra.mxu0 %vm1684_vm2, %v1670_v0  ;;  %3161 = vmatmul.msk.bf16.vlgmr.msra.gmra.mxu1 %vm1684_vm2, %v1718_v1  ;;  %v1568_v12 = vmul.f32 0.125, %v1204_v8  ;;  %v1572_v13 = vmul.f32 0.125, %v1255_v9 }
 0x3a4   : > { %v1575_v6 = vmul.f32 0.125, %v1303_v2  ;;  %v1579_v7 = vmul.f32 0.125, %v1354_v3 }
 0x3a5   : > { %v1600_v20 = vpack.c.bf16 %v1568_v12, %v1568_v12  ;;  %v1604_v21 = vpack.c.bf16 %v1572_v13, %v1572_v13 }
 0x3a6   : > { %v1607_v10 = vpack.c.bf16 %v1575_v6, %v1575_v6  ;;  %v1611_v11 = vpack.c.bf16 %v1579_v7, %v1579_v7 }
 0x3a7   : > { %v1668_v28 = vunpack.c.l.b16 %v1600_v20  ;;  %v1716_v29 = vunpack.c.l.b16 %v1604_v21 }
 0x3a8   : > { %v1762_v16 = vunpack.c.l.b16 %v1607_v10  ;;  %v1809_v17 = vunpack.c.l.b16 %v1611_v11 }
 0x3aa   : > { %v1765_v18 = vpack.c.b16 %v1762_v16, %v1761_v14  ;;  %v1812_v19 = vpack.c.b16 %v1809_v17, %v1808_v15  ;;  %v1206_v24 = vpop.f32.mrf.mxu0  ;;  %v1257_v25 = vpop.f32.mrf.mxu1 }
 0x3ab   : > { %v1306_v22 = vpop.f32.mrf.mxu2  ;;  %v1357_v23 = vpop.f32.mrf.mxu3  ;;  %v1569_v26 = vmul.f32 0.125, %v1206_v24  ;;  %v1573_v27 = vmul.f32 0.125, %v1257_v25 }
 0x3ac   : > { %3171 = vmatmul.msk.bf16.vlgmr.msra.gmra.mxu2 %vm1684_vm2, %v1765_v18  ;;  %3181 = vmatmul.msk.bf16.vlgmr.msra.gmra.mxu3 %vm1684_vm2, %v1812_v19  ;;  %v1576_v32 = vmul.f32 0.125, %v1306_v22  ;;  %v1580_v33 = vmul.f32 0.125, %v1357_v23 }
 0x3ad   : > { %v1601_v30 = vpack.c.bf16 %v1569_v26, %v1569_v26  ;;  %v1605_v31 = vpack.c.bf16 %v1573_v27, %v1573_v27 }
 0x3ae   : > { %v1608_v40 = vpack.c.bf16 %v1576_v32, %v1576_v32  ;;  %v1612_v41 = vpack.c.bf16 %v1580_v33, %v1580_v33 }
 0x3af   : > { %v1669_v34 = vunpack.c.l.b16 %v1601_v30  ;;  %v1717_v35 = vunpack.c.l.b16 %v1605_v31 }
 0x3b0   : > { %v1763_v50 = vunpack.c.l.b16 %v1608_v40  ;;  %v1810_v51 = vunpack.c.l.b16 %v1612_v41 }
 0x3b1   : > { %v1671_v36 = vpack.c.b16 %v1669_v34, %v1668_v28  ;;  %v1719_v37 = vpack.c.b16 %v1717_v35, %v1716_v29 }
 0x3b2   : > { %v1403_v44 = vpop.f32.mrf.mxu0  ;;  %v1454_v45 = vpop.f32.mrf.mxu1 }
 0x3b3   : > { %v1308_v38 = vpop.f32.mrf.mxu2  ;;  %v1359_v39 = vpop.f32.mrf.mxu3  ;;  %3152 = vmatmul.msk.bf16.gmra.mxu0 %vm1684_vm2, %v1671_v36  ;;  %3162 = vmatmul.msk.bf16.gmra.mxu1 %vm1684_vm2, %v1719_v37  ;;  %v1582_v48 = vmul.f32 0.125, %v1403_v44  ;;  %v1586_v49 = vmul.f32 0.125, %v1454_v45 }
 0x3b4   : > { %v1577_v42 = vmul.f32 0.125, %v1308_v38  ;;  %v1581_v43 = vmul.f32 0.125, %v1359_v39 }
 0x3b5   : > { %v1614_v56 = vpack.c.bf16 %v1582_v48, %v1582_v48  ;;  %v1618_v57 = vpack.c.bf16 %v1586_v49, %v1586_v49 }
 0x3b6   : > { %v1609_v46 = vpack.c.bf16 %v1577_v42, %v1577_v42  ;;  %v1613_v47 = vpack.c.bf16 %v1581_v43, %v1581_v43 }
 0x3b7   : > { %v1855_v0 = vunpack.c.l.b16 %v1614_v56  ;;  %v1902_v1 = vunpack.c.l.b16 %v1618_v57 }
 0x3b8   : > { %v1764_v52 = vunpack.c.l.b16 %v1609_v46  ;;  %v1811_v53 = vunpack.c.l.b16 %v1613_v47 }
 0x3ba   : > { %v1766_v54 = vpack.c.b16 %v1764_v52, %v1763_v50  ;;  %v1813_v55 = vpack.c.b16 %v1811_v53, %v1810_v51  ;;  %v1405_v60 = vpop.f32.mrf.mxu0  ;;  %v1456_v61 = vpop.f32.mrf.mxu1 }
 0x3bb   : > { %v1505_v58 = vpop.f32.mrf.mxu2  ;;  %v1556_v59 = vpop.f32.mrf.mxu3  ;;  %v1583_v62 = vmul.f32 0.125, %v1405_v60  ;;  %v1587_v63 = vmul.f32 0.125, %v1456_v61  ;;  %v1630_v60 = vld [vmem:[#allocation5] sm:$0xff] }
 0x3bc   : > { %3172 = vmatmul.msk.bf16.gmra.mxu2 %vm1684_vm2, %v1766_v54  ;;  %3182 = vmatmul.msk.bf16.gmra.mxu3 %vm1684_vm2, %v1813_v55  ;;  %v1590_v4 = vmul.f32 0.125, %v1505_v58  ;;  %v1594_v5 = vmul.f32 0.125, %v1556_v59  ;;  %v1634_v61 = vld [vmem:[#allocation5 + $0x20] sm:$0xff] }
 0x3bd   : > { %v1615_v2 = vpack.c.bf16 %v1583_v62, %v1583_v62  ;;  %v1619_v3 = vpack.c.bf16 %v1587_v63, %v1587_v63 }
 0x3be   : > { %v1622_v12 = vpack.c.bf16 %v1590_v4, %v1590_v4  ;;  %v1626_v13 = vpack.c.bf16 %v1594_v5, %v1594_v5 }
 0x3bf   : > { %v1856_v6 = vunpack.c.l.b16 %v1615_v2  ;;  %v1903_v7 = vunpack.c.l.b16 %v1619_v3  ;;  %v1631_v2 = vld [vmem:[#allocation5 + $0x8] sm:$0xff] }
 0x3c0   : > { %v1949_v22 = vunpack.c.l.b16 %v1622_v12  ;;  %v1996_v23 = vunpack.c.l.b16 %v1626_v13  ;;  %v1635_v3 = vld [vmem:[#allocation5 + $0x28] sm:$0xff] }
 0x3c1   : > { %v1859_v8 = vpack.c.b16 %v1856_v6, %v1855_v0  ;;  %v1906_v9 = vpack.c.b16 %v1903_v7, %v1902_v1 }
 0x3c2   : > { %v1408_v16 = vpop.f32.mrf.mxu0  ;;  %v1459_v17 = vpop.f32.mrf.mxu1 }
 0x3c3   : > { %v1507_v10 = vpop.f32.mrf.mxu2  ;;  %v1558_v11 = vpop.f32.mrf.mxu3  ;;  %3191 = vmatmul.msk.bf16.vlgmr.msrb.gmra.mxu0 %vm1684_vm2, %v1859_v8  ;;  %3201 = vmatmul.msk.bf16.vlgmr.msrb.gmra.mxu1 %vm1684_vm2, %v1906_v9  ;;  %v1584_v20 = vmul.f32 0.125, %v1408_v16  ;;  %v1588_v21 = vmul.f32 0.125, %v1459_v17  ;;  %v1638_v8 = vld [vmem:[#allocation5 + $0x40] sm:$0xff] }
 0x3c4   : > { %v1591_v14 = vmul.f32 0.125, %v1507_v10  ;;  %v1595_v15 = vmul.f32 0.125, %v1558_v11  ;;  %v1642_v9 = vld [vmem:[#allocation5 + $0x60] sm:$0xff] }
 0x3c5   : > { %v1616_v28 = vpack.c.bf16 %v1584_v20, %v1584_v20  ;;  %v1620_v29 = vpack.c.bf16 %v1588_v21, %v1588_v21  ;;  %v1639_v20 = vld [vmem:[#allocation5 + $0x48] sm:$0xff] }
 0x3c6   : > { %v1623_v18 = vpack.c.bf16 %v1591_v14, %v1591_v14  ;;  %v1627_v19 = vpack.c.bf16 %v1595_v15, %v1595_v15  ;;  %v1632_v14 = vld [vmem:[#allocation5 + $0x10] sm:$0xff]  ;;  %v1643_v21 = vld [vmem:[#allocation5 + $0x68] sm:$0xff] }
 0x3c7   : > { %v1857_v36 = vunpack.c.l.b16 %v1616_v28  ;;  %v1904_v37 = vunpack.c.l.b16 %v1620_v29  ;;  %v1636_v15 = vld [vmem:[#allocation5 + $0x30] sm:$0xff] }
 0x3c8   : > { %v1950_v24 = vunpack.c.l.b16 %v1623_v18  ;;  %v1997_v25 = vunpack.c.l.b16 %v1627_v19 }
 0x3ca   : > { %v1953_v26 = vpack.c.b16 %v1950_v24, %v1949_v22  ;;  %v2000_v27 = vpack.c.b16 %v1997_v25, %v1996_v23  ;;  %v1410_v32 = vpop.f32.mrf.mxu0  ;;  %v1461_v33 = vpop.f32.mrf.mxu1 }
 0x3cb   : > { %v1510_v30 = vpop.f32.mrf.mxu2  ;;  %v1561_v31 = vpop.f32.mrf.mxu3  ;;  %v1585_v34 = vmul.f32 0.125, %v1410_v32  ;;  %v1589_v35 = vmul.f32 0.125, %v1461_v33  ;;  %v1640_v32 = vld [vmem:[#allocation5 + $0x50] sm:$0xff] }
 0x3cc   : > { %3211 = vmatmul.msk.bf16.vlgmr.msrb.gmra.mxu2 %vm1684_vm2, %v1953_v26  ;;  %3221 = vmatmul.msk.bf16.vlgmr.msrb.gmra.mxu3 %vm1684_vm2, %v2000_v27  ;;  %v1592_v40 = vmul.f32 0.125, %v1510_v30  ;;  %v1596_v41 = vmul.f32 0.125, %v1561_v31  ;;  %v1633_v26 = vld [vmem:[#allocation5 + $0x18] sm:$0xff]  ;;  %v1644_v33 = vld [vmem:[#allocation5 + $0x70] sm:$0xff] }
 0x3cd   : > { %v1617_v38 = vpack.c.bf16 %v1585_v34, %v1585_v34  ;;  %v1621_v39 = vpack.c.bf16 %v1589_v35, %v1589_v35  ;;  %v1637_v27 = vld [vmem:[#allocation5 + $0x38] sm:$0xff] }
 0x3ce   : > { %v1624_v48 = vpack.c.bf16 %v1592_v40, %v1592_v40  ;;  %v1628_v49 = vpack.c.bf16 %v1596_v41, %v1596_v41 }
 0x3cf   : > { %v1858_v42 = vunpack.c.l.b16 %v1617_v38  ;;  %v1905_v43 = vunpack.c.l.b16 %v1621_v39  ;;  %v1646_v38 = vld [vmem:[#allocation5 + $0x80] sm:$0xff] }
 0x3d0   : > { %v1951_v54 = vunpack.c.l.b16 %v1624_v48  ;;  %v1998_v55 = vunpack.c.l.b16 %v1628_v49  ;;  %v1650_v39 = vld [vmem:[#allocation5 + $0xa0] sm:$0xff] }
 0x3d1   : > { %v1860_v44 = vpack.c.b16 %v1858_v42, %v1857_v36  ;;  %v1907_v45 = vpack.c.b16 %v1905_v43, %v1904_v37 }
 0x3d3   : > { %v1512_v46 = vpop.f32.mrf.mxu2  ;;  %v1563_v47 = vpop.f32.mrf.mxu3  ;;  %3192 = vmatmul.msk.bf16.gmra.mxu0 %vm1684_vm2, %v1860_v44  ;;  %3202 = vmatmul.msk.bf16.gmra.mxu1 %vm1684_vm2, %v1907_v45  ;;  %v1641_v44 = vld [vmem:[#allocation5 + $0x58] sm:$0xff] }
 0x3d4   : > { %v1593_v50 = vmul.f32 0.125, %v1512_v46  ;;  %v1597_v51 = vmul.f32 0.125, %v1563_v47  ;;  %v1645_v45 = vld [vmem:[#allocation5 + $0x78] sm:$0xff] }
 0x3d6   : > { %v1625_v52 = vpack.c.bf16 %v1593_v50, %v1593_v50  ;;  %v1629_v53 = vpack.c.bf16 %v1597_v51, %v1597_v51  ;;  %v1647_v50 = vld [vmem:[#allocation5 + $0x88] sm:$0xff] }
 0x3d7   : > { %v1651_v51 = vld [vmem:[#allocation5 + $0xa8] sm:$0xff] }
 0x3d8   : > { %v1952_v56 = vunpack.c.l.b16 %v1625_v52  ;;  %v1999_v57 = vunpack.c.l.b16 %v1629_v53 }
 0x3da   : > { %v1954_v58 = vpack.c.b16 %v1952_v56, %v1951_v54  ;;  %v2001_v59 = vpack.c.b16 %v1999_v57, %v1998_v55  ;;  %v1654_v56 = vld [vmem:[#allocation5 + $0xc0] sm:$0xff] }
 0x3db   : > { %v1658_v57 = vld [vmem:[#allocation5 + $0xe0] sm:$0xff] }
 0x3dc   : > { %3212 = vmatmul.msk.bf16.gmra.mxu2 %vm1684_vm2, %v1954_v58  ;;  %3222 = vmatmul.msk.bf16.gmra.mxu3 %vm1684_vm2, %v2001_v59 }
 0x420   : > { %v1700_v62 = vpop.f32.mrf.mxu0  ;;  %v1747_v63 = vpop.f32.mrf.mxu1 }
 0x421   : > { %v2039_v0 = vadd.f32 %v1700_v62, %v1630_v60  ;;  %v2043_v1 = vadd.f32 %v1747_v63, %v1634_v61  ;;  %v1648_v62 = vld [vmem:[#allocation5 + $0x90] sm:$0xff] }
 0x422   : > { %v1652_v63 = vld [vmem:[#allocation5 + $0xb0] sm:$0xff] }
 0x423   : > { %2071 = vst.msk [vmem:[#allocation5] sm:$0xff] %vm1177_vm1, %v2039_v0 }
 0x424   : > { %2075 = vst.msk [vmem:[#allocation5 + $0x20] sm:$0xff] %vm1177_vm1, %v2043_v1 }
 0x428   : > { %v1702_v4 = vpop.f32.mrf.mxu0  ;;  %v1749_v5 = vpop.f32.mrf.mxu1 }
 0x429   : > { %v2040_v6 = vadd.f32 %v1702_v4, %v1631_v2  ;;  %v2044_v7 = vadd.f32 %v1749_v5, %v1635_v3  ;;  %v1655_v4 = vld [vmem:[#allocation5 + $0xc8] sm:$0xff] }
 0x42a   : > { %v1659_v5 = vld [vmem:[#allocation5 + $0xe8] sm:$0xff] }
 0x42b   : > { %2072 = vst.msk [vmem:[#allocation5 + $0x8] sm:$0xff] %vm1177_vm1, %v2040_v6 }
 0x42c   : > { %2076 = vst.msk [vmem:[#allocation5 + $0x28] sm:$0xff] %vm1177_vm1, %v2044_v7 }
 0x42f   : > { %v1794_v10 = vpop.f32.mrf.mxu2  ;;  %v1841_v11 = vpop.f32.mrf.mxu3 }
 0x430   : > { %v2047_v12 = vadd.f32 %v1794_v10, %v1638_v8  ;;  %v2051_v13 = vadd.f32 %v1841_v11, %v1642_v9  ;;  %v1705_v16 = vpop.f32.mrf.mxu0  ;;  %v1752_v17 = vpop.f32.mrf.mxu1  ;;  %v1649_v10 = vld [vmem:[#allocation5 + $0x98] sm:$0xff] }
 0x431   : > { %v2041_v18 = vadd.f32 %v1705_v16, %v1632_v14  ;;  %v2045_v19 = vadd.f32 %v1752_v17, %v1636_v15  ;;  %v1653_v11 = vld [vmem:[#allocation5 + $0xb8] sm:$0xff]  ;;  %v1656_v16 = vld [vmem:[#allocation5 + $0xd0] sm:$0xff] }
 0x432   : > { %2079 = vst.msk [vmem:[#allocation5 + $0x40] sm:$0xff] %vm1177_vm1, %v2047_v12  ;;  %v1660_v17 = vld [vmem:[#allocation5 + $0xf0] sm:$0xff] }
 0x433   : > { %2083 = vst.msk [vmem:[#allocation5 + $0x60] sm:$0xff] %vm1177_vm1, %v2051_v13 }
 0x434   : > { %2073 = vst.msk [vmem:[#allocation5 + $0x10] sm:$0xff] %vm1177_vm1, %v2041_v18 }
 0x435   : > { %2077 = vst.msk [vmem:[#allocation5 + $0x30] sm:$0xff] %vm1177_vm1, %v2045_v19 }
 0x437   : > { %v1796_v22 = vpop.f32.mrf.mxu2  ;;  %v1843_v23 = vpop.f32.mrf.mxu3 }
 0x438   : > { %v2048_v24 = vadd.f32 %v1796_v22, %v1639_v20  ;;  %v2052_v25 = vadd.f32 %v1843_v23, %v1643_v21  ;;  %v1707_v28 = vpop.f32.mrf.mxu0  ;;  %v1754_v29 = vpop.f32.mrf.mxu1  ;;  %v1657_v22 = vld [vmem:[#allocation5 + $0xd8] sm:$0xff] }
 0x439   : > { %v2042_v30 = vadd.f32 %v1707_v28, %v1633_v26  ;;  %v2046_v31 = vadd.f32 %v1754_v29, %v1637_v27  ;;  %v1661_v23 = vld [vmem:[#allocation5 + $0xf8] sm:$0xff] }
 0x43a   : > { %2080 = vst.msk [vmem:[#allocation5 + $0x48] sm:$0xff] %vm1177_vm1, %v2048_v24 }
 0x43b   : > { %2084 = vst.msk [vmem:[#allocation5 + $0x68] sm:$0xff] %vm1177_vm1, %v2052_v25 }
 0x43c   : > { %2074 = vst.msk [vmem:[#allocation5 + $0x18] sm:$0xff] %vm1177_vm1, %v2042_v30 }
 0x43d   : > { %2078 = vst.msk [vmem:[#allocation5 + $0x38] sm:$0xff] %vm1177_vm1, %v2046_v31 }
 0x43f   : > { %v1799_v34 = vpop.f32.mrf.mxu2  ;;  %v1846_v35 = vpop.f32.mrf.mxu3 }
 0x440   : > { %v2049_v36 = vadd.f32 %v1799_v34, %v1640_v32  ;;  %v2053_v37 = vadd.f32 %v1846_v35, %v1644_v33  ;;  %v1888_v40 = vpop.f32.mrf.mxu0  ;;  %v1935_v41 = vpop.f32.mrf.mxu1 }
 0x441   : > { %v2055_v42 = vadd.f32 %v1888_v40, %v1646_v38  ;;  %v2059_v43 = vadd.f32 %v1935_v41, %v1650_v39 }
 0x442   : > { %2081 = vst.msk [vmem:[#allocation5 + $0x50] sm:$0xff] %vm1177_vm1, %v2049_v36 }
 0x443   : > { %2085 = vst.msk [vmem:[#allocation5 + $0x70] sm:$0xff] %vm1177_vm1, %v2053_v37 }
 0x444   : > { %2087 = vst.msk [vmem:[#allocation5 + $0x80] sm:$0xff] %vm1177_vm1, %v2055_v42 }
 0x445   : > { %2091 = vst.msk [vmem:[#allocation5 + $0xa0] sm:$0xff] %vm1177_vm1, %v2059_v43 }
 0x447   : > { %v1801_v46 = vpop.f32.mrf.mxu2  ;;  %v1848_v47 = vpop.f32.mrf.mxu3 }
 0x448   : > { %v2050_v48 = vadd.f32 %v1801_v46, %v1641_v44  ;;  %v2054_v49 = vadd.f32 %v1848_v47, %v1645_v45  ;;  %v1890_v52 = vpop.f32.mrf.mxu0  ;;  %v1937_v53 = vpop.f32.mrf.mxu1 }
 0x449   : > { %v2056_v54 = vadd.f32 %v1890_v52, %v1647_v50  ;;  %v2060_v55 = vadd.f32 %v1937_v53, %v1651_v51 }
 0x44a   : > { %2082 = vst.msk [vmem:[#allocation5 + $0x58] sm:$0xff] %vm1177_vm1, %v2050_v48 }
 0x44b   : > { %2086 = vst.msk [vmem:[#allocation5 + $0x78] sm:$0xff] %vm1177_vm1, %v2054_v49 }
 0x44c   : > { %2088 = vst.msk [vmem:[#allocation5 + $0x88] sm:$0xff] %vm1177_vm1, %v2056_v54 }
 0x44d   : > { %2092 = vst.msk [vmem:[#allocation5 + $0xa8] sm:$0xff] %vm1177_vm1, %v2060_v55 }
 0x44f   : > { %v1982_v58 = vpop.f32.mrf.mxu2  ;;  %v2029_v59 = vpop.f32.mrf.mxu3 }
 0x450   : > { %v2063_v60 = vadd.f32 %v1982_v58, %v1654_v56  ;;  %v2067_v61 = vadd.f32 %v2029_v59, %v1658_v57  ;;  %v1893_v0 = vpop.f32.mrf.mxu0  ;;  %v1940_v1 = vpop.f32.mrf.mxu1 }
 0x451   : > { %v2057_v2 = vadd.f32 %v1893_v0, %v1648_v62  ;;  %v2061_v3 = vadd.f32 %v1940_v1, %v1652_v63 }
 0x452   : > { %2095 = vst.msk [vmem:[#allocation5 + $0xc0] sm:$0xff] %vm1177_vm1, %v2063_v60 }
 0x453   : > { %2099 = vst.msk [vmem:[#allocation5 + $0xe0] sm:$0xff] %vm1177_vm1, %v2067_v61 }
 0x454   : > { %2089 = vst.msk [vmem:[#allocation5 + $0x90] sm:$0xff] %vm1177_vm1, %v2057_v2 }
 0x455   : > { %2093 = vst.msk [vmem:[#allocation5 + $0xb0] sm:$0xff] %vm1177_vm1, %v2061_v3 }
 0x457   : > { %v1984_v6 = vpop.f32.mrf.mxu2  ;;  %v2031_v7 = vpop.f32.mrf.mxu3 }
 0x458   : > { %v2064_v8 = vadd.f32 %v1984_v6, %v1655_v4  ;;  %v2068_v9 = vadd.f32 %v2031_v7, %v1659_v5  ;;  %v1895_v12 = vpop.f32.mrf.mxu0  ;;  %v1942_v13 = vpop.f32.mrf.mxu1 }
 0x459   : > { %v2058_v14 = vadd.f32 %v1895_v12, %v1649_v10  ;;  %v2062_v15 = vadd.f32 %v1942_v13, %v1653_v11 }
 0x45a   : > { %2096 = vst.msk [vmem:[#allocation5 + $0xc8] sm:$0xff] %vm1177_vm1, %v2064_v8 }
 0x45b   : > { %2100 = vst.msk [vmem:[#allocation5 + $0xe8] sm:$0xff] %vm1177_vm1, %v2068_v9 }
 0x45c   : > { %2090 = vst.msk [vmem:[#allocation5 + $0x98] sm:$0xff] %vm1177_vm1, %v2058_v14 }
 0x45d   : > { %2094 = vst.msk [vmem:[#allocation5 + $0xb8] sm:$0xff] %vm1177_vm1, %v2062_v15 }
 0x45f   : > { %v1987_v18 = vpop.f32.mrf.mxu2  ;;  %v2034_v19 = vpop.f32.mrf.mxu3 }
 0x460   : > { %v2065_v20 = vadd.f32 %v1987_v18, %v1656_v16  ;;  %v2069_v21 = vadd.f32 %v2034_v19, %v1660_v17 }
 0x462   : > { %2097 = vst.msk [vmem:[#allocation5 + $0xd0] sm:$0xff] %vm1177_vm1, %v2065_v20 }
 0x463   : > { %2101 = vst.msk [vmem:[#allocation5 + $0xf0] sm:$0xff] %vm1177_vm1, %v2069_v21 }
 0x467   : > { %v1989_v24 = vpop.f32.mrf.mxu2  ;;  %v2036_v25 = vpop.f32.mrf.mxu3  ;;  %2106 = sbr.rel (%p3223_p12) target bundleno = 1465 (0x5b9), region = 52 }
 0x468   : > { %v2066_v26 = vadd.f32 %v1989_v24, %v1657_v22  ;;  %v2070_v27 = vadd.f32 %v2036_v25, %v1661_v23 }
 0x46a   : > { %2098 = vst.msk [vmem:[#allocation5 + $0xd8] sm:$0xff] %vm1177_vm1, %v2066_v26 }
 0x46b   : > { %2102 = vst.msk [vmem:[#allocation5 + $0xf8] sm:$0xff] %vm1177_vm1, %v2070_v27 }
 0x46c   : > { %v2158_v28 = vld [vmem:[#allocation5 + $0x30] sm:$0xff]  ;;  %v2159_v31 = vld [vmem:[#allocation5 + $0x38] sm:$0xff]  ;;  %v2156_v40 = vld [vmem:[#allocation5 + $0x20] sm:$0xff]  ;;  %vm2176_vm3 = vcmask 64544   ;;  %vm2230_vm4 = vcmask 97344   ;;  %vm2284_vm5 = vcmask 130144  }
 0x46d   : > { %v2212_v29 = vld [vmem:[#allocation5 + $0x50] sm:$0xff]  ;;  %2168 = vrot.lane.b32.xlu0 %v2158_v28, %s3552_s13  ;;  %v2213_v32 = vld [vmem:[#allocation5 + $0x58] sm:$0xff]  ;;  %v2157_v41 = vld [vmem:[#allocation5 + $0x28] sm:$0xff]  ;;  %vm2338_vm6 = vcmask 162944   ;;  %vm2392_vm7 = vcmask 195744   ;;  %vm2446_vm8 = vcmask 228544  }
 0x46e   : > { %2222 = vrot.lane.b32.xlu1 %v2212_v29, %s3553_s11  ;;  %v2266_v30 = vld [vmem:[#allocation5 + $0x70] sm:$0xff]  ;;  %v2267_v33 = vld [vmem:[#allocation5 + $0x78] sm:$0xff]  ;;  %v2210_v44 = vld [vmem:[#allocation5 + $0x40] sm:$0xff]  ;;  %vm2500_vm9 = vcmask 261344   ;;  %vm2114_vm12 = vcmask 27648   ;;  %vm2150_vm15 = vcmask 60448  }
 0x46f   : > { %2276 = vrot.lane.b32.xlu2 %v2266_v30, %s3554_s16  ;;  %v2320_v34 = vld [vmem:[#allocation5 + $0x90] sm:$0xff]  ;;  %v2321_v35 = vld [vmem:[#allocation5 + $0x98] sm:$0xff]  ;;  %v2211_v45 = vld [vmem:[#allocation5 + $0x48] sm:$0xff]  ;;  %v3559_v30 = vmov 0.0   ;;  %vm2204_vm0 = vcmask 93248  }
 0x470   : > { %v2374_v36 = vld [vmem:[#allocation5 + $0xb0] sm:$0xff]  ;;  %v2375_v37 = vld [vmem:[#allocation5 + $0xb8] sm:$0xff]  ;;  %v2264_v46 = vld [vmem:[#allocation5 + $0x60] sm:$0xff] }
 0x471   : > { %v2428_v38 = vld [vmem:[#allocation5 + $0xd0] sm:$0xff]  ;;  %v2429_v39 = vld [vmem:[#allocation5 + $0xd8] sm:$0xff]  ;;  %v2265_v47 = vld [vmem:[#allocation5 + $0x68] sm:$0xff] }
 0x472   : > { %v2482_v42 = vld [vmem:[#allocation5 + $0xf0] sm:$0xff]  ;;  %v2483_v43 = vld [vmem:[#allocation5 + $0xf8] sm:$0xff]  ;;  %v2318_v48 = vld [vmem:[#allocation5 + $0x80] sm:$0xff] }
 0x473   : > { %v2319_v49 = vld [vmem:[#allocation5 + $0x88] sm:$0xff]  ;;  %v2372_v50 = vld [vmem:[#allocation5 + $0xa0] sm:$0xff]  ;;  %v2121_v56 = vld [vmem:[#allocation5 + $0x10] sm:$0xff] }
 0x474   : > { %v2373_v51 = vld [vmem:[#allocation5 + $0xa8] sm:$0xff]  ;;  %v2426_v52 = vld [vmem:[#allocation5 + $0xc0] sm:$0xff]  ;;  %2125 = vst.msk [vmem:[#allocation6 + $0x10] sm:$0xff] %vm1177_vm1, %v2121_v56  ;;  %v2122_v57 = vld [vmem:[#allocation5 + $0x18] sm:$0xff] }
 0x475   : > { %2170 = vrot.lane.b32.xlu0 %v2159_v31, %s3552_s13  ;;  %v2427_v53 = vld [vmem:[#allocation5 + $0xc8] sm:$0xff]  ;;  %v2480_v54 = vld [vmem:[#allocation5 + $0xe0] sm:$0xff]  ;;  %2126 = vst.msk [vmem:[#allocation6 + $0x18] sm:$0xff] %vm1177_vm1, %v2122_v57  ;;  %v3228_v60 = vld [vmem:[%s4242_s8 + $0x10] sm:$0xf] }
 0x476   : > { %2224 = vrot.lane.b32.xlu1 %v2213_v32, %s3553_s11  ;;  %v2481_v55 = vld [vmem:[#allocation5 + $0xe8] sm:$0xff]  ;;  %v2119_v61 = vld [vmem:[#allocation5] sm:$0xff]  ;;  %v3230_v1 = vld [vmem:[%s4242_s8 + $0x18] sm:$0xf] }
 0x477   : > { %2278 = vrot.lane.b32.xlu2 %v2267_v33, %s3554_s16  ;;  %2123 = vst.msk [vmem:[#allocation6] sm:$0xff] %vm1177_vm1, %v2119_v61  ;;  %v3231_v2 = vld [vmem:[%s4242_s8 + $0x1c] sm:$0xf]  ;;  %v2120_v3 = vld [vmem:[#allocation5 + $0x8] sm:$0xff]  ;;  %v3274_v7 = vld [vmem:[%s4439_s2 + $0x70] sm:$0xff] }
 0x478   : > { %2124 = vst.msk [vmem:[#allocation6 + $0x8] sm:$0xff] %vm1177_vm1, %v2120_v3  ;;  %v3275_v6 = vld [vmem:[%s4439_s2 + $0x78] sm:$0xff]  ;;  %v3235_v8 = vld [vmem:[%s4242_s8 + $0x24] sm:$0xf]  ;;  %v3236_v9 = vld [vmem:[%s4242_s8 + $0x28] sm:$0xf] }
 0x479   : > { %3381 = vmatpush.msra.mxu2 %v3275_v6  ;;  %3382 = vmatpush.msra.mxu3 %v3275_v6  ;;  %v3273_v11 = vld [vmem:[%s4439_s2 + $0x68] sm:$0xff]  ;;  %v3272_v14 = vld [vmem:[%s4439_s2 + $0x60] sm:$0xff]  ;;  %v3240_v15 = vld [vmem:[%s4242_s8 + $0x30] sm:$0xf]  ;;  %vm2258_vm1 = vcmask 126048  }
 0x47a   : > { %2550 = vmatpush.msra.mxu0 %v3275_v6  ;;  %3380 = vmatpush.msra.mxu1 %v3275_v6  ;;  %v3241_v16 = vld [vmem:[%s4242_s8 + $0x34] sm:$0xf]  ;;  %v3243_v20 = vld [vmem:[%s4242_s8 + $0x3c] sm:$0xf]  ;;  %v3246_v22 = vld [vmem:[%s4242_s8 + $0x40] sm:$0xf] }
 0x47b   : > { %3384 = vmatpush.msra.mxu2 %v3274_v7  ;;  %3385 = vmatpush.msra.mxu3 %v3274_v7  ;;  %v3229_v21 = vld [vmem:[%s4242_s8 + $0x14] sm:$0xf]  ;;  %v3248_v26 = vld [vmem:[%s4242_s8 + $0x48] sm:$0xf]  ;;  %v3234_v27 = vld [vmem:[%s4242_s8 + $0x20] sm:$0xf] }
 0x47c   : > { %2551 = vmatpush.msra.mxu0 %v3274_v7  ;;  %3383 = vmatpush.msra.mxu1 %v3274_v7  ;;  %v3249_v28 = vld [vmem:[%s4242_s8 + $0x4c] sm:$0xf]  ;;  %v3267_v56 = vld [vmem:[%s4242_s8 + $0x7c] sm:$0xf]  ;;  %v2110_v61 = vld [vmem:[%s4242_s8] sm:$0xf] }
 0x47d   : > { %2330 = vrot.lane.b32.xlu0 %v2320_v34, %s3555_s21  ;;  %3387 = vmatpush.msra.mxu2 %v3273_v11  ;;  %v3253_v34 = vld [vmem:[%s4242_s8 + $0x54] sm:$0xf]  ;;  %2115 = vst.msk [vmem:[%s3656_s30] sm:$0xf] %vm2114_vm12, %v2110_v61  ;;  %v2113_v3 = vld [vmem:[%s4242_s8 + $0xc] sm:$0xf] }
 0x47e   : > { %2332 = vrot.lane.b32.xlu1 %v2321_v35, %s3555_s21  ;;  %3388 = vmatpush.msra.mxu3 %v3273_v11  ;;  %v3237_v35 = vld [vmem:[%s4242_s8 + $0x2c] sm:$0xf]  ;;  %2118 = vst.msk [vmem:[%s3656_s30 + $0xc] sm:$0xf] %vm2114_vm12, %v2113_v3 }
 0x47f   : > { %2384 = vrot.lane.b32.xlu2 %v2374_v36, %s3556_s17  ;;  %2552 = vmatpush.msra.mxu0 %v3273_v11  ;;  %v3254_v36 = vld [vmem:[%s4242_s8 + $0x58] sm:$0xf] }
 0x480   : > { %3386 = vmatpush.msra.mxu1 %v3273_v11  ;;  %3390 = vmatpush.msra.mxu2 %v3272_v14 }
 0x481   : > { %3391 = vmatpush.msra.mxu3 %v3272_v14  ;;  %2553 = vmatpush.msra.mxu0 %v3272_v14 }
 0x482   : > { %3389 = vmatpush.msra.mxu1 %v3272_v14 }
 0x485   : > { %2386 = vrot.lane.b32.xlu0 %v2375_v37, %s3556_s17 }
 0x486   : > { %2438 = vrot.lane.b32.xlu1 %v2428_v38, %s3557_s12 }
 0x487   : > { %2440 = vrot.lane.b32.xlu2 %v2429_v39, %s3557_s12 }
 0x48d   : > { %2164 = vrot.lane.b32.xlu0 %v2156_v40, %s3552_s13 }
 0x48e   : > { %2166 = vrot.lane.b32.xlu1 %v2157_v41, %s3552_s13 }
 0x48f   : > { %2492 = vrot.lane.b32.xlu2 %v2482_v42, %s3558_s19  ;;  %v3258_v42 = vld [vmem:[%s4242_s8 + $0x60] sm:$0xf] }
 0x495   : > { %2494 = vrot.lane.b32.xlu0 %v2483_v43, %s3558_s19  ;;  %v3242_v43 = vld [vmem:[%s4242_s8 + $0x38] sm:$0xf] }
 0x496   : > { %2218 = vrot.lane.b32.xlu1 %v2210_v44, %s3553_s11  ;;  %v3259_v44 = vld [vmem:[%s4242_s8 + $0x64] sm:$0xf] }
 0x497   : > { %2220 = vrot.lane.b32.xlu2 %v2211_v45, %s3553_s11 }
 0x49d   : > { %2272 = vrot.lane.b32.xlu0 %v2264_v46, %s3554_s16 }
 0x49e   : > { %2274 = vrot.lane.b32.xlu1 %v2265_v47, %s3554_s16 }
 0x49f   : > { %2326 = vrot.lane.b32.xlu2 %v2318_v48, %s3555_s21  ;;  %v3261_v48 = vld [vmem:[%s4242_s8 + $0x6c] sm:$0xf] }
 0x4a5   : > { %2328 = vrot.lane.b32.xlu0 %v2319_v49, %s3555_s21  ;;  %v3247_v49 = vld [vmem:[%s4242_s8 + $0x44] sm:$0xf] }
 0x4a6   : > { %2380 = vrot.lane.b32.xlu1 %v2372_v50, %s3556_s17  ;;  %v3264_v50 = vld [vmem:[%s4242_s8 + $0x70] sm:$0xf] }
 0x4a7   : > { %2382 = vrot.lane.b32.xlu2 %v2373_v51, %s3556_s17 }
 0x4ad   : > { %2434 = vrot.lane.b32.xlu0 %v2426_v52, %s3557_s12 }
 0x4ae   : > { %2436 = vrot.lane.b32.xlu1 %v2427_v53, %s3557_s12 }
 0x4af   : > { %2488 = vrot.lane.b32.xlu2 %v2480_v54, %s3558_s19  ;;  %v3266_v54 = vld [vmem:[%s4242_s8 + $0x78] sm:$0xf] }
 0x4b5   : > { %2490 = vrot.lane.b32.xlu0 %v2481_v55, %s3558_s19  ;;  %v3252_v55 = vld [vmem:[%s4242_s8 + $0x50] sm:$0xf] }
 0x4b6   : > { %2138 = vrot.lane.b32.xlu1 %v3228_v60, %s3552_s13 }
 0x4b7   : > { %2140 = vrot.lane.b32.xlu2 %v3229_v21, %s3552_s13 }
 0x4bd   : > { %2142 = vrot.lane.b32.xlu0 %v3230_v1, %s3552_s13  ;;  %v2112_v1 = vld [vmem:[%s4242_s8 + $0x8] sm:$0xf] }
 0x4be   : > { %2144 = vrot.lane.b32.xlu1 %v3231_v2, %s3552_s13  ;;  %2117 = vst.msk [vmem:[%s3656_s30 + $0x8] sm:$0xf] %vm2114_vm12, %v2112_v1  ;;  %v2111_v2 = vld [vmem:[%s4242_s8 + $0x4] sm:$0xf] }
 0x4bf   : > { %2192 = vrot.lane.b32.xlu2 %v3234_v27, %s3553_s11  ;;  %2116 = vst.msk [vmem:[%s3656_s30 + $0x4] sm:$0xf] %vm2114_vm12, %v2111_v2 }
 0x4c5   : > { %2194 = vrot.lane.b32.xlu0 %v3235_v8, %s3553_s11 }
 0x4c6   : > { %2196 = vrot.lane.b32.xlu1 %v3236_v9, %s3553_s11 }
 0x4c7   : > { %2198 = vrot.lane.b32.xlu2 %v3237_v35, %s3553_s11 }
 0x4c9   : > { %v2277_v58 = vpop.permute.xlu2 %2276 }
 0x4cd   : > { %2246 = vrot.lane.b32.xlu0 %v3240_v15, %s3554_s16 }
 0x4ce   : > { %2248 = vrot.lane.b32.xlu1 %v3241_v16, %s3554_s16 }
 0x4cf   : > { %2250 = vrot.lane.b32.xlu2 %v3242_v43, %s3554_s16 }
 0x4d1   : > { %v2279_v59 = vpop.permute.xlu2 %2278 }
 0x4d5   : > { %2252 = vrot.lane.b32.xlu0 %v3243_v20, %s3554_s16 }
 0x4d6   : > { %2300 = vrot.lane.b32.xlu1 %v3246_v22, %s3555_s21 }
 0x4d7   : > { %2302 = vrot.lane.b32.xlu2 %v3247_v49, %s3555_s21 }
 0x4d9   : > { %v2385_v0 = vpop.permute.xlu2 %2384 }
 0x4dd   : > { %2304 = vrot.lane.b32.xlu0 %v3248_v26, %s3555_s21 }
 0x4de   : > { %2306 = vrot.lane.b32.xlu1 %v3249_v28, %s3555_s21 }
 0x4df   : > { %v2169_v62 = vpop.permute.xlu0 %2168  ;;  %2354 = vrot.lane.b32.xlu2 %v3252_v55, %s3556_s17 }
 0x4e0   : > { %v2223_v63 = vpop.permute.xlu1 %2222  ;;  %2179 = vst.msk [vmem:[#allocation6 + $0x10] sm:$0xff] %vm2176_vm3, %v2169_v62 }
 0x4e1   : > { %2233 = vst.msk [vmem:[#allocation6 + $0x10] sm:$0xff] %vm2230_vm4, %v2223_v63  ;;  %v2441_v10 = vpop.permute.xlu2 %2440  ;;  %v3260_v63 = vld [vmem:[%s4242_s8 + $0x68] sm:$0xf] }
 0x4e2   : > { %2287 = vst.msk [vmem:[#allocation6 + $0x10] sm:$0xff] %vm2284_vm5, %v2277_v58  ;;  %v3255_v58 = vld [vmem:[%s4242_s8 + $0x5c] sm:$0xf] }
 0x4e5   : > { %2356 = vrot.lane.b32.xlu0 %v3253_v34, %s3556_s17 }
 0x4e6   : > { %2358 = vrot.lane.b32.xlu1 %v3254_v36, %s3556_s17 }
 0x4e7   : > { %v2171_v4 = vpop.permute.xlu0 %2170  ;;  %2360 = vrot.lane.b32.xlu2 %v3255_v58, %s3556_s17 }
 0x4e8   : > { %v2225_v5 = vpop.permute.xlu1 %2224  ;;  %2180 = vst.msk [vmem:[#allocation6 + $0x18] sm:$0xff] %vm2176_vm3, %v2171_v4  ;;  %v3265_v4 = vld [vmem:[%s4242_s8 + $0x74] sm:$0xf] }
 0x4e9   : > { %2234 = vst.msk [vmem:[#allocation6 + $0x18] sm:$0xff] %vm2230_vm4, %v2225_v5  ;;  %v2493_v17 = vpop.permute.xlu2 %2492 }
 0x4ea   : > { %2288 = vst.msk [vmem:[#allocation6 + $0x18] sm:$0xff] %vm2284_vm5, %v2279_v59 }
 0x4ed   : > { %2408 = vrot.lane.b32.xlu0 %v3258_v42, %s3557_s12 }
 0x4ee   : > { %2410 = vrot.lane.b32.xlu1 %v3259_v44, %s3557_s12 }
 0x4ef   : > { %v2331_v12 = vpop.permute.xlu0 %2330  ;;  %2412 = vrot.lane.b32.xlu2 %v3260_v63, %s3557_s12 }
 0x4f0   : > { %v2333_v13 = vpop.permute.xlu1 %2332  ;;  %2341 = vst.msk [vmem:[#allocation6 + $0x10] sm:$0xff] %vm2338_vm6, %v2331_v12 }
 0x4f1   : > { %2342 = vst.msk [vmem:[#allocation6 + $0x18] sm:$0xff] %vm2338_vm6, %v2333_v13  ;;  %v2221_v23 = vpop.permute.xlu2 %2220 }
 0x4f2   : > { %2395 = vst.msk [vmem:[#allocation6 + $0x10] sm:$0xff] %vm2392_vm7, %v2385_v0 }
 0x4f5   : > { %2414 = vrot.lane.b32.xlu0 %v3261_v48, %s3557_s12 }
 0x4f6   : > { %2462 = vrot.lane.b32.xlu1 %v3264_v50, %s3558_s19 }
 0x4f7   : > { %v2387_v18 = vpop.permute.xlu0 %2386  ;;  %2464 = vrot.lane.b32.xlu2 %v3265_v4, %s3558_s19 }
 0x4f8   : > { %v2439_v19 = vpop.permute.xlu1 %2438  ;;  %2396 = vst.msk [vmem:[#allocation6 + $0x18] sm:$0xff] %vm2392_vm7, %v2387_v18 }
 0x4f9   : > { %2449 = vst.msk [vmem:[#allocation6 + $0x10] sm:$0xff] %vm2446_vm8, %v2439_v19  ;;  %v2327_v37 = vpop.permute.xlu2 %2326 }
 0x4fa   : > { %2450 = vst.msk [vmem:[#allocation6 + $0x18] sm:$0xff] %vm2446_vm8, %v2441_v10 }
 0x4fb   : > { %2503 = vst.msk [vmem:[#allocation6 + $0x10] sm:$0xff] %vm2500_vm9, %v2493_v17 }
 0x4fd   : > { %2466 = vrot.lane.b32.xlu0 %v3266_v54, %s3558_s19 }
 0x4fe   : > { %2468 = vrot.lane.b32.xlu1 %v3267_v56, %s3558_s19 }
 0x4ff   : > { %v2165_v24 = vpop.permute.xlu0 %2164 }
 0x500   : > { %v2167_v25 = vpop.permute.xlu1 %2166  ;;  %2177 = vst.msk [vmem:[#allocation6] sm:$0xff] %vm2176_vm3, %v2165_v24  ;;  %v3478_v24 = vld [vmem:[%s4440_s3 + $0x3] ss:$0 sm:$0xff] }
 0x501   : > { %2178 = vst.msk [vmem:[#allocation6 + $0x8] sm:$0xff] %vm2176_vm3, %v2167_v25  ;;  %v2383_v45 = vpop.permute.xlu2 %2382  ;;  %vm2366_vm3 = vcmask 191648   ;;  %v3479_v25 = vld [vmem:[%s4441_s4 + $0x3] ss:$0 sm:$0xff] }
 0x502   : > { %2232 = vst.msk [vmem:[#allocation6 + $0x8] sm:$0xff] %vm2230_vm4, %v2221_v23  ;;  %v2507_v29 = vld [vmem:[#allocation6 + $0x10] sm:$0xff] }
 0x503   : > { %vm2511_vm10 = vcmp.ge.f32.partialorder %v2507_v29, 2.0 }
 0x504   : > { %v3270_v31 = vsel %vm2511_vm10, 1.0, %v3559_v30 }
 0x505   : > { %3278 = vmatmul.msk.f32.vlgmr.msra.gmra.mxu2 %vm1684_vm2, %v3270_v31 }
 0x507   : > { %v2495_v32 = vpop.permute.xlu0 %2494 }
 0x508   : > { %v2219_v33 = vpop.permute.xlu1 %2218  ;;  %2504 = vst.msk [vmem:[#allocation6 + $0x18] sm:$0xff] %vm2500_vm9, %v2495_v32 }
 0x509   : > { %2231 = vst.msk [vmem:[#allocation6] sm:$0xff] %vm2230_vm4, %v2219_v33  ;;  %v2489_v51 = vpop.permute.xlu2 %2488  ;;  %vm2420_vm4 = vcmask 224448  }
 0x50f   : > { %v2273_v38 = vpop.permute.xlu0 %2272  ;;  %v2508_v39 = vld [vmem:[#allocation6 + $0x18] sm:$0xff] }
 0x510   : > { %v2275_v40 = vpop.permute.xlu1 %2274  ;;  %2285 = vst.msk [vmem:[#allocation6] sm:$0xff] %vm2284_vm5, %v2273_v38  ;;  %vm2512_vm11 = vcmp.ge.f32.partialorder %v2508_v39, 2.0 }
 0x511   : > { %v3271_v41 = vsel %vm2512_vm11, 1.0, %v3559_v30  ;;  %2286 = vst.msk [vmem:[#allocation6 + $0x8] sm:$0xff] %vm2284_vm5, %v2275_v40  ;;  %v2141_v7 = vpop.permute.xlu2 %2140 }
 0x512   : > { %3279 = vmatmul.msk.f32.vlgmr.msra.gmra.mxu3 %vm1684_vm2, %v3271_v41  ;;  %2339 = vst.msk [vmem:[#allocation6] sm:$0xff] %vm2338_vm6, %v2327_v37 }
 0x513   : > { %2152 = vst.msk [vmem:[%s3656_s30 + $0x4] sm:$0xf] %vm2150_vm15, %v2141_v7 }
 0x517   : > { %v2329_v46 = vpop.permute.xlu0 %2328 }
 0x518   : > { %v2381_v47 = vpop.permute.xlu1 %2380  ;;  %2340 = vst.msk [vmem:[#allocation6 + $0x8] sm:$0xff] %vm2338_vm6, %v2329_v46  ;;  %vm2595_vm6 = vcmask 257024  }
 0x519   : > { %2393 = vst.msk [vmem:[#allocation6] sm:$0xff] %vm2392_vm7, %v2381_v47  ;;  %v2193_v9 = vpop.permute.xlu2 %2192 }
 0x51a   : > { %2394 = vst.msk [vmem:[#allocation6 + $0x8] sm:$0xff] %vm2392_vm7, %v2383_v45  ;;  %vm2474_vm7 = vcmask 257248  }
 0x51f   : > { %v2435_v52 = vpop.permute.xlu0 %2434 }
 0x520   : > { %v2437_v53 = vpop.permute.xlu1 %2436  ;;  %2447 = vst.msk [vmem:[#allocation6] sm:$0xff] %vm2446_vm8, %v2435_v52 }
 0x521   : > { %2448 = vst.msk [vmem:[#allocation6 + $0x8] sm:$0xff] %vm2446_vm8, %v2437_v53  ;;  %v2199_v12 = vpop.permute.xlu2 %2198 }
 0x522   : > { %2501 = vst.msk [vmem:[#allocation6] sm:$0xff] %vm2500_vm9, %v2489_v51 }
 0x527   : > { %v2491_v57 = vpop.permute.xlu0 %2490 }
 0x528   : > { %2502 = vst.msk [vmem:[#allocation6 + $0x8] sm:$0xff] %vm2500_vm9, %v2491_v57  ;;  %v2139_v5 = vpop.permute.xlu1 %2138 }
 0x529   : > { %v2505_v59 = vld [vmem:[#allocation6] sm:$0xff]  ;;  %2151 = vst.msk [vmem:[%s3656_s30] sm:$0xf] %vm2150_vm15, %v2139_v5  ;;  %v2251_v16 = vpop.permute.xlu2 %2250 }
 0x52a   : > { %vm2509_vm13 = vcmp.ge.f32.partialorder %v2505_v59, 2.0  ;;  %2205 = vst.msk [vmem:[%s3656_s30] sm:$0xf] %vm2204_vm0, %v2193_v9 }
 0x52b   : > { %v3268_v60 = vsel %vm2509_vm13, 1.0, %v3559_v30 }
 0x52c   : > { %3276 = vmatmul.msk.f32.vlgmr.msra.gmra.mxu0 %vm1684_vm2, %v3268_v60 }
 0x52f   : > { %v2506_v62 = vld [vmem:[#allocation6 + $0x8] sm:$0xff]  ;;  %v2143_v6 = vpop.permute.xlu0 %2142 }
 0x530   : > { %vm2510_vm14 = vcmp.ge.f32.partialorder %v2506_v62, 2.0  ;;  %2153 = vst.msk [vmem:[%s3656_s30 + $0x8] sm:$0xf] %vm2150_vm15, %v2143_v6  ;;  %v2145_v8 = vpop.permute.xlu1 %2144 }
 0x531   : > { %v3269_v0 = vsel %vm2510_vm14, 1.0, %v3559_v30  ;;  %2154 = vst.msk [vmem:[%s3656_s30 + $0xc] sm:$0xf] %vm2150_vm15, %v2145_v8  ;;  %v2303_v19 = vpop.permute.xlu2 %2302 }
 0x532   : > { %3277 = vmatmul.msk.f32.vlgmr.msra.gmra.mxu1 %vm1684_vm2, %v3269_v0  ;;  %2208 = vst.msk [vmem:[%s3656_s30 + $0xc] sm:$0xf] %vm2204_vm0, %v2199_v12  ;;  %vm2312_vm2 = vcmask 158848  }
 0x537   : > { %v2195_v10 = vpop.permute.xlu0 %2194 }
 0x538   : > { %v2197_v11 = vpop.permute.xlu1 %2196  ;;  %2206 = vst.msk [vmem:[%s3656_s30 + $0x4] sm:$0xf] %vm2204_vm0, %v2195_v10 }
 0x539   : > { %2207 = vst.msk [vmem:[%s3656_s30 + $0x8] sm:$0xf] %vm2204_vm0, %v2197_v11  ;;  %v2355_v22 = vpop.permute.xlu2 %2354 }
 0x53a   : > { %2261 = vst.msk [vmem:[%s3656_s30 + $0x8] sm:$0xf] %vm2258_vm1, %v2251_v16 }
 0x53f   : > { %v2247_v13 = vpop.permute.xlu0 %2246 }
 0x540   : > { %v2249_v14 = vpop.permute.xlu1 %2248  ;;  %2259 = vst.msk [vmem:[%s3656_s30] sm:$0xf] %vm2258_vm1, %v2247_v13 }
 0x541   : > { %2260 = vst.msk [vmem:[%s3656_s30 + $0x4] sm:$0xf] %vm2258_vm1, %v2249_v14  ;;  %v2361_v27 = vpop.permute.xlu2 %2360 }
 0x542   : > { %2314 = vst.msk [vmem:[%s3656_s30 + $0x4] sm:$0xf] %vm2312_vm2, %v2303_v19 }
 0x547   : > { %v2253_v15 = vpop.permute.xlu0 %2252 }
 0x548   : > { %2262 = vst.msk [vmem:[%s3656_s30 + $0xc] sm:$0xf] %vm2258_vm1, %v2253_v15  ;;  %v2301_v17 = vpop.permute.xlu1 %2300 }
 0x549   : > { %2313 = vst.msk [vmem:[%s3656_s30] sm:$0xf] %vm2312_vm2, %v2301_v17  ;;  %v2413_v36 = vpop.permute.xlu2 %2412 }
 0x54a   : > { %2367 = vst.msk [vmem:[%s3656_s30] sm:$0xf] %vm2366_vm3, %v2355_v22 }
 0x54f   : > { %v2305_v18 = vpop.permute.xlu0 %2304 }
 0x550   : > { %2315 = vst.msk [vmem:[%s3656_s30 + $0x8] sm:$0xf] %vm2312_vm2, %v2305_v18  ;;  %v2307_v20 = vpop.permute.xlu1 %2306 }
 0x551   : > { %2316 = vst.msk [vmem:[%s3656_s30 + $0xc] sm:$0xf] %vm2312_vm2, %v2307_v20  ;;  %v2465_v41 = vpop.permute.xlu2 %2464 }
 0x552   : > { %2370 = vst.msk [vmem:[%s3656_s30 + $0xc] sm:$0xf] %vm2366_vm3, %v2361_v27 }
 0x557   : > { %v2357_v21 = vpop.permute.xlu0 %2356 }
 0x558   : > { %2368 = vst.msk [vmem:[%s3656_s30 + $0x4] sm:$0xf] %vm2366_vm3, %v2357_v21  ;;  %v2359_v23 = vpop.permute.xlu1 %2358 }
 0x559   : > { %2369 = vst.msk [vmem:[%s3656_s30 + $0x8] sm:$0xf] %vm2366_vm3, %v2359_v23 }
 0x55a   : > { %2423 = vst.msk [vmem:[%s3656_s30 + $0x8] sm:$0xf] %vm2420_vm4, %v2413_v36 }
 0x55f   : > { %v2409_v26 = vpop.permute.xlu0 %2408 }
 0x560   : > { %2421 = vst.msk [vmem:[%s3656_s30] sm:$0xf] %vm2420_vm4, %v2409_v26  ;;  %v2411_v29 = vpop.permute.xlu1 %2410 }
 0x561   : > { %2422 = vst.msk [vmem:[%s3656_s30 + $0x4] sm:$0xf] %vm2420_vm4, %v2411_v29 }
 0x562   : > { %2476 = vst.msk [vmem:[%s3656_s30 + $0x4] sm:$0xf] %vm2474_vm7, %v2465_v41 }
 0x567   : > { %v2415_v35 = vpop.permute.xlu0 %2414 }
 0x568   : > { %2424 = vst.msk [vmem:[%s3656_s30 + $0xc] sm:$0xf] %vm2420_vm4, %v2415_v35  ;;  %v2463_v37 = vpop.permute.xlu1 %2462 }
 0x569   : > { %2475 = vst.msk [vmem:[%s3656_s30] sm:$0xf] %vm2474_vm7, %v2463_v37 }
 0x56f   : > { %v2467_v40 = vpop.permute.xlu0 %2466 }
 0x570   : > { %2477 = vst.msk [vmem:[%s3656_s30 + $0x8] sm:$0xf] %vm2474_vm7, %v2467_v40  ;;  %v2469_v43 = vpop.permute.xlu1 %2468 }
 0x571   : > { %2478 = vst.msk [vmem:[%s3656_s30 + $0xc] sm:$0xf] %vm2474_vm7, %v2469_v43 }
 0x588   : > { %v2561_v28 = vpop.f32.mrf.mxu2 }
 0x589   : > { %v2571_v31 = vmul.f32 %v3478_v24, %v2561_v28 }
 0x58b   : > { %v2577_v32 = vadd.f32 %v3479_v25, %v2571_v31 }
 0x58d   : > { %vm2581_vm5 = vcmp.ge.f32.partialorder %v2577_v32, 2.0 }
 0x58e   : > { %v3282_v33 = vsel %vm2581_vm5, 1.0, %v3559_v30 }
 0x58f   : > { %v2593_v34 = vpack.c.bf16 %v3282_v33, %v3282_v33 }
 0x591   : > { %2598 = vst.msk [vmem:[%s3651_s18 + $0x8] sm:$0xf] %vm2595_vm6, %v2593_v34 }
 0x595   : > { %v2564_v38 = vpop.f32.mrf.mxu3 }
 0x596   : > { %v2572_v39 = vmul.f32 %v3478_v24, %v2564_v38 }
 0x598   : > { %v2578_v42 = vadd.f32 %v3479_v25, %v2572_v39 }
 0x59a   : > { %vm2582_vm8 = vcmp.ge.f32.partialorder %v2578_v42, 2.0 }
 0x59b   : > { %v3283_v44 = vsel %vm2582_vm8, 1.0, %v3559_v30 }
 0x59c   : > { %v2594_v45 = vpack.c.bf16 %v3283_v44, %v3283_v44 }
 0x59e   : > { %2599 = vst.msk [vmem:[%s3651_s18 + $0xc] sm:$0xf] %vm2595_vm6, %v2594_v45 }
 0x5a9   : > { %v2555_v46 = vpop.f32.mrf.mxu0 }
 0x5aa   : > { %v2569_v47 = vmul.f32 %v3478_v24, %v2555_v46 }
 0x5ac   : > { %v2575_v48 = vadd.f32 %v3479_v25, %v2569_v47 }
 0x5ae   : > { %vm2579_vm9 = vcmp.ge.f32.partialorder %v2575_v48, 2.0 }
 0x5af   : > { %v3280_v49 = vsel %vm2579_vm9, 1.0, %v3559_v30  ;;  %v2558_v50 = vpop.f32.mrf.mxu1 }
 0x5b0   : > { %v2591_v51 = vpack.c.bf16 %v3280_v49, %v3280_v49  ;;  %v2570_v52 = vmul.f32 %v3478_v24, %v2558_v50 }
 0x5b2   : > { %2596 = vst.msk [vmem:[%s3651_s18] sm:$0xf] %vm2595_vm6, %v2591_v51  ;;  %v2576_v53 = vadd.f32 %v3479_v25, %v2570_v52 }
 0x5b4   : > { %vm2580_vm10 = vcmp.ge.f32.partialorder %v2576_v53, 2.0 }
 0x5b5   : > { %v3281_v54 = vsel %vm2580_vm10, 1.0, %v3559_v30 }
 0x5b6   : > { %v2592_v55 = vpack.c.bf16 %v3281_v54, %v3281_v54 }
 0x5b8   : > { %2597 = vst.msk [vmem:[%s3651_s18 + $0x4] sm:$0xf] %vm2595_vm6, %v2592_v55 }
 0x5b9 PF: > { %s17_s27 = sadd.s32 1, %s3534_s27   ;;  %s4446_s30 = sld [smem:[#allocation7_spill]] }
 0x5ba   : > { %p14_p13 = scmp.ge.s32.totalorder %s17_s27, 10   ;;  %s4447_s17 = sld [smem:[#allocation8_spill]] }
 0x5bb   : > { %s4448_s21 = smov %s3522_s24  ;;  %s4449_s22 = smov %s3526_s25 }
 0x5bc   : > { %s4450_s23 = smov %s3530_s26  ;;  %s4451_s24 = smov %s4455_s28 }
 0x5bd   :  { %16 = sbr.rel (!%p14_p13) target bundleno = 4 (0x4), region = 140 }
 0x5bf   : > { %s4452_s25 = smov %s4446_s30 }
 0x5c0   : > { %s4453_s26 = smov %s4447_s17 }

</bundles_post_ra>
